<compile_context>
chip_gen: v7x
topology: tpu7x:2x2x1
jax: 0.10.0
libtpu: 0.0.40
codegen_flags: <defaults>
</compile_context>

<pallas_src>
import functools

import numpy as np
import jax
import jax.numpy as jnp
from jax.experimental import pallas as pl
from jax.experimental.pallas import tpu as pltpu


def _band_matrix(n, win):
    """B[in, out] = 1 iff input index `in` lies in the window of output `out`.

    Window of output o (zero-padded, matching the PyTorch cumsum trick):
        [o - half_win, o + win - half_win - 1]
    """
    h = win // 2
    d = np.arange(n)[:, None] - np.arange(n)[None, :]  # in - out
    return ((d >= -h) & (d <= win - h - 1)).astype(np.float32)


def _ncc_kernel(i_ref, j_ref, byt_ref, bz_ref, out_ref, *, win, eps):
    bt, X, Y, Z = i_ref.shape
    G0 = 5 * bt * X

    Iv = i_ref[...].reshape(bt * X, Y, Z)
    Jv = j_ref[...].reshape(bt * X, Y, Z)

    # Stack the five fields along the leading axis (cheap: does not touch the
    # last two (sublane, lane) dims).  Order: [I, J, I*I, J*J, I*J].
    F = jnp.concatenate([Iv, Jv, Iv * Iv, Jv * Jv, Iv * Jv], axis=0)   # (G0, Y, Z)

    # ---- Z pass (lane axis): single 2-D MXU matmul with M = G0*Y rows. ----
    F = jnp.dot(F.reshape(G0 * Y, Z), bz_ref[...],
                preferred_element_type=jnp.float32).reshape(G0, Y, Z)

    # ---- Y pass (sublane axis): canonical batched matmul, batch = G0. ----
    byt_b = jnp.broadcast_to(byt_ref[...][None, :, :], (G0, Y, Y))
    F = jax.lax.dot_general(
        byt_b, F,
        dimension_numbers=(((2,), (1,)), ((0,), (0,))),
        preferred_element_type=jnp.float32)                            # (G0, Y, Z)

    # ---- X pass (leading axis): static unrolled cumsum-difference (VPU). ----
    F4 = F.reshape(5 * bt, X, Y, Z)
    cs = []
    acc = F4[:, 0]
    cs.append(acc)
    for x in range(1, X):
        acc = acc + F4[:, x]
        cs.append(acc)

    h = win // 2
    outs = []
    for xo in range(X):
        lo = max(xo - h, 0)
        hi = min(xo + (win - h - 1), X - 1)
        if lo > 0:
            w = cs[hi] - cs[lo - 1]
        else:
            w = cs[hi]
        outs.append(w)
    W = jnp.stack(outs, axis=1)                                        # (5*bt, X, Y, Z)

    I_sum = W[0 * bt:1 * bt]
    J_sum = W[1 * bt:2 * bt]
    I2_sum = W[2 * bt:3 * bt]
    J2_sum = W[3 * bt:4 * bt]
    IJ_sum = W[4 * bt:5 * bt]

    win_size = float(win) ** 3
    u_I = I_sum / win_size
    u_J = J_sum / win_size

    cross = IJ_sum - u_J * I_sum - u_I * J_sum + u_I * u_J * win_size
    I_var = I2_sum - 2.0 * u_I * I_sum + u_I * u_I * win_size
    J_var = J2_sum - 2.0 * u_J * J_sum + u_J * u_J * win_size
    cc = cross * cross / (I_var * J_var + eps)

    # Per-block partial sum (reduced in the wrapper) -> grid can be "parallel".
    out_ref[...] = jnp.sum(cc).reshape(1, 1, 1)


def ncc_pallas(I, J, win=21, eps=1e-5, block_batches=1):
    """Pallas implementation of NCC.forward.  I, J: (N, C, X, Y, Z)."""
    N, C, X, Y, Z = I.shape
    B = N * C
    bt = block_batches
    assert B % bt == 0, (B, bt)
    nb = B // bt

    I4 = jnp.asarray(I, jnp.float32).reshape(B, X, Y, Z)
    J4 = jnp.asarray(J, jnp.float32).reshape(B, X, Y, Z)

    # Banded 0/1 matrices encoding the zero-padded window (Y and Z passes only;
    # the X pass is done with the cumsum-difference trick on the VPU).
    ByT = jnp.asarray(_band_matrix(Y, win).T)   # (Y, Y): ByT[y_out, y_in]
    Bz = jnp.asarray(_band_matrix(Z, win))      # (Z, Z): Bz[z_in, z_out]

    partials = pl.pallas_call(
        functools.partial(_ncc_kernel, win=win, eps=eps),
        out_shape=jax.ShapeDtypeStruct((nb, 1, 1), jnp.float32),
        grid=(nb,),
        in_specs=[
            pl.BlockSpec((bt, X, Y, Z), lambda b: (b, 0, 0, 0)),
            pl.BlockSpec((bt, X, Y, Z), lambda b: (b, 0, 0, 0)),
            pl.BlockSpec((Y, Y), lambda b: (0, 0)),
            pl.BlockSpec((Z, Z), lambda b: (0, 0)),
        ],
        out_specs=pl.BlockSpec((1, 1, 1), lambda b: (b, 0, 0)),
        compiler_params=pltpu.CompilerParams(
            dimension_semantics=("parallel",)),
    )(I4, J4, ByT, Bz)

    total = jnp.sum(partials)
    mean_cc = total / float(B * X * Y * Z)
    return (1.0 - mean_cc).astype(jnp.float32)


def _ncc_reference_np(I, J, win=21, eps=1e-5):
    """Host float64 reference mirroring the PyTorch cumsum implementation."""
    I = np.asarray(I, np.float64)
    J = np.asarray(J, np.float64)

    def window_sum(V):
        h = win // 2
        pad = [(0, 0), (0, 0), (h + 1, h), (h + 1, h), (h + 1, h)]
        P = np.pad(V, pad)
        cs = P.cumsum(2).cumsum(3).cumsum(4)
        x, y, z = V.shape[2:]
        return (cs[:, :, win:, win:, win:] - cs[:, :, win:, win:, :z]
                - cs[:, :, win:, :y, win:] - cs[:, :, :x, win:, win:]
                + cs[:, :, win:, :y, :z] + cs[:, :, :x, win:, :z]
                + cs[:, :, :x, :y, win:] - cs[:, :, :x, :y, :z])

    I_sum = window_sum(I)
    J_sum = window_sum(J)
    I2_sum = window_sum(I * I)
    J2_sum = window_sum(J * J)
    IJ_sum = window_sum(I * J)
    w = float(win) ** 3
    u_I, u_J = I_sum / w, J_sum / w
    cross = IJ_sum - u_J * I_sum - u_I * J_sum + u_I * u_J * w
    I_var = I2_sum - 2 * u_I * I_sum + u_I * u_I * w
    J_var = J2_sum - 2 * u_J * J_sum + u_J * u_J * w
    cc = cross * cross / (I_var * J_var + eps)
    return np.float32(1.0 - cc.mean())


if __name__ == "__main__":
    key = jax.random.PRNGKey(0)
    k1, k2 = jax.random.split(key)
    shape = (2, 1, 16, 16, 16)  # (N, C, X, Y, Z)
    I = jax.random.normal(k1, shape, dtype=jnp.float32)
    J = jax.random.normal(k2, shape, dtype=jnp.float32)

    out = ncc_pallas(I, J, win=21, eps=1e-5)
    out = jax.block_until_ready(out)

    ref = _ncc_reference_np(np.asarray(I), np.asarray(J), win=21, eps=1e-5)
    assert np.abs(float(out) - float(ref)) < 1e-2, (float(out), float(ref))

    print("KERNEL_OK")
</pallas_src>

<mosaic_0001>
module attributes {stable_mosaic.version = 11 : i64} {
  func.func @_ncc_kernel(%arg0: i32, %arg1: memref<1x16x16x16xf32, #tpu.memory_space<vmem>>, %arg2: memref<1x16x16x16xf32, #tpu.memory_space<vmem>>, %arg3: memref<16x16xf32, #tpu.memory_space<vmem>>, %arg4: memref<16x16xf32, #tpu.memory_space<vmem>>, %arg5: memref<1x1x1xf32, #tpu.memory_space<vmem>>) attributes {dimension_semantics = [#tpu.dimension_semantics<parallel>], iteration_bounds = array<i64: 2>, scalar_prefetch = 0 : i64, scratch_operands = 0 : i64, tpu.core_type = #tpu.core_type<tc>, window_params = [{transform_indices = @transform_0, window_bounds = array<i64: 1, 16, 16, 16>}, {transform_indices = @transform_1, window_bounds = array<i64: 1, 16, 16, 16>}, {pipeline_mode = #tpu.pipeline_mode<synchronous>, transform_indices = @transform_2, window_bounds = array<i64: 16, 16>}, {pipeline_mode = #tpu.pipeline_mode<synchronous>, transform_indices = @transform_3, window_bounds = array<i64: 16, 16>}, {transform_indices = @transform_4, window_bounds = array<i64: 1, 1, 1>}]} {
    %c0 = arith.constant 0 : index
    %c0_0 = arith.constant 0 : index
    %c0_1 = arith.constant 0 : index
    %c0_2 = arith.constant 0 : index
    %0 = vector.load %arg1[%c0, %c0_0, %c0_1, %c0_2] : memref<1x16x16x16xf32, #tpu.memory_space<vmem>>, vector<1x16x16x16xf32>
    %1 = vector.shape_cast %0 : vector<1x16x16x16xf32> to vector<16x16x16xf32>
    %c0_3 = arith.constant 0 : index
    %c0_4 = arith.constant 0 : index
    %c0_5 = arith.constant 0 : index
    %c0_6 = arith.constant 0 : index
    %2 = vector.load %arg2[%c0_3, %c0_4, %c0_5, %c0_6] : memref<1x16x16x16xf32, #tpu.memory_space<vmem>>, vector<1x16x16x16xf32>
    %3 = vector.shape_cast %2 : vector<1x16x16x16xf32> to vector<16x16x16xf32>
    %4 = arith.mulf %1, %1 : vector<16x16x16xf32>
    %5 = arith.mulf %3, %3 : vector<16x16x16xf32>
    %6 = arith.mulf %1, %3 : vector<16x16x16xf32>
    %7 = tpu.concatenate %1, %3, %4, %5, %6 in 0 : vector<16x16x16xf32>, vector<16x16x16xf32>, vector<16x16x16xf32>, vector<16x16x16xf32>, vector<16x16x16xf32> -> vector<80x16x16xf32>
    %8 = vector.shape_cast %7 : vector<80x16x16xf32> to vector<1280x16xf32>
    %c0_7 = arith.constant 0 : index
    %c0_8 = arith.constant 0 : index
    %9 = vector.load %arg4[%c0_7, %c0_8] : memref<16x16xf32, #tpu.memory_space<vmem>>, vector<16x16xf32>
    %cst = arith.constant dense<0.000000e+00> : vector<1280x16xf32>
    %10 = tpu.matmul %8, %9, %cst {dimension_numbers = #tpu.dot_dimension_numbers<[1], [0], [0], [1], [0, 0, 1, 1], [], []>} : vector<1280x16xf32>, vector<16x16xf32>, vector<1280x16xf32> -> vector<1280x16xf32>
    %11 = vector.shape_cast %10 : vector<1280x16xf32> to vector<80x16x16xf32>
    %c0_9 = arith.constant 0 : index
    %c0_10 = arith.constant 0 : index
    %12 = vector.load %arg3[%c0_9, %c0_10] : memref<16x16xf32, #tpu.memory_space<vmem>>, vector<16x16xf32>
    %13 = vector.shape_cast %12 : vector<16x16xf32> to vector<1x16x16xf32>
    %14 = vector.shape_cast %13 : vector<1x16x16xf32> to vector<1x16x16xf32>
    %15 = vector.broadcast %14 : vector<1x16x16xf32> to vector<80x16x16xf32>
    %cst_11 = arith.constant dense<0.000000e+00> : vector<80x16x16xf32>
    %16 = tpu.matmul %15, %11, %cst_11 {dimension_numbers = #tpu.dot_dimension_numbers<[2], [1], [1], [2], [0, 0, 0, 1, 1, 2], [0], [0]>} : vector<80x16x16xf32>, vector<80x16x16xf32>, vector<80x16x16xf32> -> vector<80x16x16xf32>
    %17 = vector.shape_cast %16 : vector<80x16x16xf32> to vector<5x16x16x16xf32>
    %18 = vector.extract_strided_slice %17 {offsets = [0, 0, 0, 0], sizes = [5, 1, 16, 16], strides = [1, 1, 1, 1]} : vector<5x16x16x16xf32> to vector<5x1x16x16xf32>
    %19 = vector.shape_cast %18 : vector<5x1x16x16xf32> to vector<5x16x16xf32>
    %20 = vector.extract_strided_slice %17 {offsets = [0, 1, 0, 0], sizes = [5, 1, 16, 16], strides = [1, 1, 1, 1]} : vector<5x16x16x16xf32> to vector<5x1x16x16xf32>
    %21 = vector.shape_cast %20 : vector<5x1x16x16xf32> to vector<5x16x16xf32>
    %22 = arith.addf %19, %21 : vector<5x16x16xf32>
    %23 = vector.extract_strided_slice %17 {offsets = [0, 2, 0, 0], sizes = [5, 1, 16, 16], strides = [1, 1, 1, 1]} : vector<5x16x16x16xf32> to vector<5x1x16x16xf32>
    %24 = vector.shape_cast %23 : vector<5x1x16x16xf32> to vector<5x16x16xf32>
    %25 = arith.addf %22, %24 : vector<5x16x16xf32>
    %26 = vector.extract_strided_slice %17 {offsets = [0, 3, 0, 0], sizes = [5, 1, 16, 16], strides = [1, 1, 1, 1]} : vector<5x16x16x16xf32> to vector<5x1x16x16xf32>
    %27 = vector.shape_cast %26 : vector<5x1x16x16xf32> to vector<5x16x16xf32>
    %28 = arith.addf %25, %27 : vector<5x16x16xf32>
    %29 = vector.extract_strided_slice %17 {offsets = [0, 4, 0, 0], sizes = [5, 1, 16, 16], strides = [1, 1, 1, 1]} : vector<5x16x16x16xf32> to vector<5x1x16x16xf32>
    %30 = vector.shape_cast %29 : vector<5x1x16x16xf32> to vector<5x16x16xf32>
    %31 = arith.addf %28, %30 : vector<5x16x16xf32>
    %32 = vector.extract_strided_slice %17 {offsets = [0, 5, 0, 0], sizes = [5, 1, 16, 16], strides = [1, 1, 1, 1]} : vector<5x16x16x16xf32> to vector<5x1x16x16xf32>
    %33 = vector.shape_cast %32 : vector<5x1x16x16xf32> to vector<5x16x16xf32>
    %34 = arith.addf %31, %33 : vector<5x16x16xf32>
    %35 = vector.extract_strided_slice %17 {offsets = [0, 6, 0, 0], sizes = [5, 1, 16, 16], strides = [1, 1, 1, 1]} : vector<5x16x16x16xf32> to vector<5x1x16x16xf32>
    %36 = vector.shape_cast %35 : vector<5x1x16x16xf32> to vector<5x16x16xf32>
    %37 = arith.addf %34, %36 : vector<5x16x16xf32>
    %38 = vector.extract_strided_slice %17 {offsets = [0, 7, 0, 0], sizes = [5, 1, 16, 16], strides = [1, 1, 1, 1]} : vector<5x16x16x16xf32> to vector<5x1x16x16xf32>
    %39 = vector.shape_cast %38 : vector<5x1x16x16xf32> to vector<5x16x16xf32>
    %40 = arith.addf %37, %39 : vector<5x16x16xf32>
    %41 = vector.extract_strided_slice %17 {offsets = [0, 8, 0, 0], sizes = [5, 1, 16, 16], strides = [1, 1, 1, 1]} : vector<5x16x16x16xf32> to vector<5x1x16x16xf32>
    %42 = vector.shape_cast %41 : vector<5x1x16x16xf32> to vector<5x16x16xf32>
    %43 = arith.addf %40, %42 : vector<5x16x16xf32>
    %44 = vector.extract_strided_slice %17 {offsets = [0, 9, 0, 0], sizes = [5, 1, 16, 16], strides = [1, 1, 1, 1]} : vector<5x16x16x16xf32> to vector<5x1x16x16xf32>
    %45 = vector.shape_cast %44 : vector<5x1x16x16xf32> to vector<5x16x16xf32>
    %46 = arith.addf %43, %45 : vector<5x16x16xf32>
    %47 = vector.extract_strided_slice %17 {offsets = [0, 10, 0, 0], sizes = [5, 1, 16, 16], strides = [1, 1, 1, 1]} : vector<5x16x16x16xf32> to vector<5x1x16x16xf32>
    %48 = vector.shape_cast %47 : vector<5x1x16x16xf32> to vector<5x16x16xf32>
    %49 = arith.addf %46, %48 : vector<5x16x16xf32>
    %50 = vector.extract_strided_slice %17 {offsets = [0, 11, 0, 0], sizes = [5, 1, 16, 16], strides = [1, 1, 1, 1]} : vector<5x16x16x16xf32> to vector<5x1x16x16xf32>
    %51 = vector.shape_cast %50 : vector<5x1x16x16xf32> to vector<5x16x16xf32>
    %52 = arith.addf %49, %51 : vector<5x16x16xf32>
    %53 = vector.extract_strided_slice %17 {offsets = [0, 12, 0, 0], sizes = [5, 1, 16, 16], strides = [1, 1, 1, 1]} : vector<5x16x16x16xf32> to vector<5x1x16x16xf32>
    %54 = vector.shape_cast %53 : vector<5x1x16x16xf32> to vector<5x16x16xf32>
    %55 = arith.addf %52, %54 : vector<5x16x16xf32>
    %56 = vector.extract_strided_slice %17 {offsets = [0, 13, 0, 0], sizes = [5, 1, 16, 16], strides = [1, 1, 1, 1]} : vector<5x16x16x16xf32> to vector<5x1x16x16xf32>
    %57 = vector.shape_cast %56 : vector<5x1x16x16xf32> to vector<5x16x16xf32>
    %58 = arith.addf %55, %57 : vector<5x16x16xf32>
    %59 = vector.extract_strided_slice %17 {offsets = [0, 14, 0, 0], sizes = [5, 1, 16, 16], strides = [1, 1, 1, 1]} : vector<5x16x16x16xf32> to vector<5x1x16x16xf32>
    %60 = vector.shape_cast %59 : vector<5x1x16x16xf32> to vector<5x16x16xf32>
    %61 = arith.addf %58, %60 : vector<5x16x16xf32>
    %62 = vector.extract_strided_slice %17 {offsets = [0, 15, 0, 0], sizes = [5, 1, 16, 16], strides = [1, 1, 1, 1]} : vector<5x16x16x16xf32> to vector<5x1x16x16xf32>
    %63 = vector.shape_cast %62 : vector<5x1x16x16xf32> to vector<5x16x16xf32>
    %64 = arith.addf %61, %63 : vector<5x16x16xf32>
    %65 = arith.subf %64, %19 : vector<5x16x16xf32>
    %66 = arith.subf %64, %22 : vector<5x16x16xf32>
    %67 = arith.subf %64, %25 : vector<5x16x16xf32>
    %68 = arith.subf %64, %28 : vector<5x16x16xf32>
    %69 = arith.subf %64, %31 : vector<5x16x16xf32>
    %70 = vector.shape_cast %49 : vector<5x16x16xf32> to vector<5x1x16x16xf32>
    %71 = vector.shape_cast %52 : vector<5x16x16xf32> to vector<5x1x16x16xf32>
    %72 = vector.shape_cast %55 : vector<5x16x16xf32> to vector<5x1x16x16xf32>
    %73 = vector.shape_cast %58 : vector<5x16x16xf32> to vector<5x1x16x16xf32>
    %74 = vector.shape_cast %61 : vector<5x16x16xf32> to vector<5x1x16x16xf32>
    %75 = vector.shape_cast %64 : vector<5x16x16xf32> to vector<5x1x16x16xf32>
    %76 = vector.shape_cast %64 : vector<5x16x16xf32> to vector<5x1x16x16xf32>
    %77 = vector.shape_cast %64 : vector<5x16x16xf32> to vector<5x1x16x16xf32>
    %78 = vector.shape_cast %64 : vector<5x16x16xf32> to vector<5x1x16x16xf32>
    %79 = vector.shape_cast %64 : vector<5x16x16xf32> to vector<5x1x16x16xf32>
    %80 = vector.shape_cast %64 : vector<5x16x16xf32> to vector<5x1x16x16xf32>
    %81 = vector.shape_cast %65 : vector<5x16x16xf32> to vector<5x1x16x16xf32>
    %82 = vector.shape_cast %66 : vector<5x16x16xf32> to vector<5x1x16x16xf32>
    %83 = vector.shape_cast %67 : vector<5x16x16xf32> to vector<5x1x16x16xf32>
    %84 = vector.shape_cast %68 : vector<5x16x16xf32> to vector<5x1x16x16xf32>
    %85 = vector.shape_cast %69 : vector<5x16x16xf32> to vector<5x1x16x16xf32>
    %86 = tpu.concatenate %70, %71, %72, %73, %74, %75, %76, %77, %78, %79, %80, %81, %82, %83, %84, %85 in 1 : vector<5x1x16x16xf32>, vector<5x1x16x16xf32>, vector<5x1x16x16xf32>, vector<5x1x16x16xf32>, vector<5x1x16x16xf32>, vector<5x1x16x16xf32>, vector<5x1x16x16xf32>, vector<5x1x16x16xf32>, vector<5x1x16x16xf32>, vector<5x1x16x16xf32>, vector<5x1x16x16xf32>, vector<5x1x16x16xf32>, vector<5x1x16x16xf32>, vector<5x1x16x16xf32>, vector<5x1x16x16xf32>, vector<5x1x16x16xf32> -> vector<5x16x16x16xf32>
    %87 = vector.extract_strided_slice %86 {offsets = [0, 0, 0, 0], sizes = [1, 16, 16, 16], strides = [1, 1, 1, 1]} : vector<5x16x16x16xf32> to vector<1x16x16x16xf32>
    %88 = vector.extract_strided_slice %86 {offsets = [1, 0, 0, 0], sizes = [1, 16, 16, 16], strides = [1, 1, 1, 1]} : vector<5x16x16x16xf32> to vector<1x16x16x16xf32>
    %89 = vector.extract_strided_slice %86 {offsets = [2, 0, 0, 0], sizes = [1, 16, 16, 16], strides = [1, 1, 1, 1]} : vector<5x16x16x16xf32> to vector<1x16x16x16xf32>
    %90 = vector.extract_strided_slice %86 {offsets = [3, 0, 0, 0], sizes = [1, 16, 16, 16], strides = [1, 1, 1, 1]} : vector<5x16x16x16xf32> to vector<1x16x16x16xf32>
    %91 = vector.extract_strided_slice %86 {offsets = [4, 0, 0, 0], sizes = [1, 16, 16, 16], strides = [1, 1, 1, 1]} : vector<5x16x16x16xf32> to vector<1x16x16x16xf32>
    %cst_12 = arith.constant 9.261000e+03 : f32
    %92 = vector.broadcast %cst_12 : f32 to vector<1x16x16x16xf32>
    %93 = arith.divf %87, %92 : vector<1x16x16x16xf32>
    %cst_13 = arith.constant 9.261000e+03 : f32
    %94 = vector.broadcast %cst_13 : f32 to vector<1x16x16x16xf32>
    %95 = arith.divf %88, %94 : vector<1x16x16x16xf32>
    %96 = arith.mulf %95, %87 : vector<1x16x16x16xf32>
    %97 = arith.subf %91, %96 : vector<1x16x16x16xf32>
    %98 = arith.mulf %93, %88 : vector<1x16x16x16xf32>
    %99 = arith.subf %97, %98 : vector<1x16x16x16xf32>
    %100 = arith.mulf %93, %95 : vector<1x16x16x16xf32>
    %cst_14 = arith.constant 9.261000e+03 : f32
    %101 = vector.broadcast %cst_14 : f32 to vector<1x16x16x16xf32>
    %102 = arith.mulf %100, %101 : vector<1x16x16x16xf32>
    %103 = arith.addf %99, %102 : vector<1x16x16x16xf32>
    %cst_15 = arith.constant 2.000000e+00 : f32
    %104 = vector.broadcast %cst_15 : f32 to vector<1x16x16x16xf32>
    %105 = arith.mulf %104, %93 : vector<1x16x16x16xf32>
    %106 = arith.mulf %105, %87 : vector<1x16x16x16xf32>
    %107 = arith.subf %89, %106 : vector<1x16x16x16xf32>
    %108 = arith.mulf %93, %93 : vector<1x16x16x16xf32>
    %cst_16 = arith.constant 9.261000e+03 : f32
    %109 = vector.broadcast %cst_16 : f32 to vector<1x16x16x16xf32>
    %110 = arith.mulf %108, %109 : vector<1x16x16x16xf32>
    %111 = arith.addf %107, %110 : vector<1x16x16x16xf32>
    %cst_17 = arith.constant 2.000000e+00 : f32
    %112 = vector.broadcast %cst_17 : f32 to vector<1x16x16x16xf32>
    %113 = arith.mulf %112, %95 : vector<1x16x16x16xf32>
    %114 = arith.mulf %113, %88 : vector<1x16x16x16xf32>
    %115 = arith.subf %90, %114 : vector<1x16x16x16xf32>
    %116 = arith.mulf %95, %95 : vector<1x16x16x16xf32>
    %cst_18 = arith.constant 9.261000e+03 : f32
    %117 = vector.broadcast %cst_18 : f32 to vector<1x16x16x16xf32>
    %118 = arith.mulf %116, %117 : vector<1x16x16x16xf32>
    %119 = arith.addf %115, %118 : vector<1x16x16x16xf32>
    %120 = arith.mulf %103, %103 : vector<1x16x16x16xf32>
    %121 = arith.mulf %111, %119 : vector<1x16x16x16xf32>
    %cst_19 = arith.constant 9.99999974E-6 : f32
    %122 = vector.broadcast %cst_19 : f32 to vector<1x16x16x16xf32>
    %123 = arith.addf %121, %122 : vector<1x16x16x16xf32>
    %124 = arith.divf %120, %123 : vector<1x16x16x16xf32>
    %125 = vector.shape_cast %124 : vector<1x16x16x16xf32> to vector<1x1x16x16x16xf32>
    %cst_20 = arith.constant dense<0.000000e+00> : vector<1xf32>
    %126 = vector.multi_reduction <add>, %125, %cst_20 [1, 2, 3, 4] : vector<1x1x16x16x16xf32> to vector<1xf32>
    %127 = vector.shape_cast %126 : vector<1xf32> to vector<1x1x1x1x1xf32>
    %128 = vector.extract %127[0, 0, 0, 0, 0] : f32 from vector<1x1x1x1x1xf32>
    %129 = vector.broadcast %128 : f32 to vector<1x1x1xf32>
    %c0_21 = arith.constant 0 : index
    %c0_22 = arith.constant 0 : index
    %c0_23 = arith.constant 0 : index
    %130 = vector.load %arg5[%c0_21, %c0_22, %c0_23] : memref<1x1x1xf32, #tpu.memory_space<vmem>>, vector<1x1x1xf32>
    tpu.vector_store %arg5[%c0_21, %c0_22, %c0_23], %129 {strides = array<i32>} : memref<1x1x1xf32, #tpu.memory_space<vmem>>, vector<1x1x1xf32>,
    return
  }
  func.func @transform_0(%arg0: i32) -> (i32, i32, i32, i32) {
    %c0_i32 = arith.constant 0 : i32
    %c0_i32_0 = arith.constant 0 : i32
    %c0_i32_1 = arith.constant 0 : i32
    %c0_i32_2 = arith.constant 0 : i32
    return %arg0, %c0_i32, %c0_i32_0, %c0_i32_1 : i32, i32, i32, i32
  }
  func.func @transform_1(%arg0: i32) -> (i32, i32, i32, i32) {
    %c0_i32 = arith.constant 0 : i32
    %c0_i32_0 = arith.constant 0 : i32
    %c0_i32_1 = arith.constant 0 : i32
    %c0_i32_2 = arith.constant 0 : i32
    return %arg0, %c0_i32, %c0_i32_0, %c0_i32_1 : i32, i32, i32, i32
  }
  func.func @transform_2(%arg0: i32) -> (i32, i32) {
    %c0_i32 = arith.constant 0 : i32
    %c0_i32_0 = arith.constant 0 : i32
    %c0_i32_1 = arith.constant 0 : i32
    return %c0_i32, %c0_i32_0 : i32, i32
  }
  func.func @transform_3(%arg0: i32) -> (i32, i32) {
    %c0_i32 = arith.constant 0 : i32
    %c0_i32_0 = arith.constant 0 : i32
    %c0_i32_1 = arith.constant 0 : i32
    return %c0_i32, %c0_i32_0 : i32, i32
  }
  func.func @transform_4(%arg0: i32) -> (i32, i32, i32) {
    %c0_i32 = arith.constant 0 : i32
    %c0_i32_0 = arith.constant 0 : i32
    %c0_i32_1 = arith.constant 0 : i32
    return %arg0, %c0_i32, %c0_i32_0 : i32, i32, i32
  }
}

</mosaic_0001>

<bundles_post_ra>
// kernel: tpu_custom_call.1
= control target key start
LH: loop header
LB: loop body
LE: loop exit
PB: predicated region body
PF: predicated region fallthrough
CT: control target
= control target key end

     0   :  { %9 = vsyncpa [#allocation3], 0  ;;  %s13781_s0 = inlined_call_operand.hbm [shape: f32[2,16,16,16], index: 0, kind: input, shape index: {}]   ;;  %s13782_s1 = inlined_call_operand.hbm [shape: f32[2,16,16,16], index: 1, kind: input, shape index: {}]   ;;  %s13783_s2 = inlined_call_operand.hbm [shape: f32[16,16], index: 2, kind: input, shape index: {}]   ;;  %s13784_s3 = inlined_call_operand.hbm [shape: f32[16,16], index: 3, kind: input, shape index: {}]   ;;  %s13785_s4 = inlined_call_operand.vmem [shape: f32[2,1,1], index: 4, kind: output, shape index: {}]  }
   0x1   :  { %11 = vsyncpa [#allocation3 + $0x1], 0 }
   0x2   :  { %12 = vsyncpa [#allocation5], 0 }
   0x3   :  { %14 = vsyncpa [#allocation5 + $0x1], 0 }
   0x4   :  { %15 = vsyncpa [#allocation8], 0  ;;  %s11058_s15 = smov 0   ;;  %s11060_s16 = smov 0  }
   0x5   :  { %s11062_s17 = smov 0   ;;  %s11064_s18 = smov 0  }
   0x6 LB: > { %s11077_s19 = sadd.s32 4294967295, %s11025_s18   ;;  %p41_p0 = scmp.ne.s32.totalorder %s11017_s16, %s11013_s15  ;;  %s11025_s18 = sphi %s11064_s18, %s14239_s18   ;;  %s11021_s17 = sphi %s11062_s17, %s14238_s17   ;;  %s11017_s16 = sphi %s11060_s16, %s14237_s16   ;;  %s11013_s15 = sphi %s11058_s15, %s14236_s15  }
   0x7   : > { %p13786_p1 = scmp.eq.s32.totalorder %s11077_s19, 0  ;;  %p8739_p2 = scmp.ge.s32.totalorder %s11025_s18, 1 }
   0x8   : > { %p146_p3 = scmp.lt.s32.totalorder %s11025_s18, 3  ;;  %s11027_s22 = smov [#allocation6]  }
   0x9   : > { %p11085_p4 = por %p13786_p1, %p41_p0  ;;  %s158_s23 = sshll.u32 %s11027_s22, 4  ;;  %s159_s23 = int_to_ptr.vmem [resolvable:$true] %s158_s23 }
   0xa   : > { %p11089_p5 = pnand %p8739_p2, %p146_p3  ;;  %s11028_s25 = smov [#allocation7]  }
   0xb   : > { %s13902_s20 = scalar_select %p11085_p4, 1, 0 }
   0xc   : > { %s13903_s21 = scalar_select %p11089_p5, 1, 0 }
   0xd   : > { %p10762_p6 = pneg %p11089_p5  ;;  %s171_s26 = sshll.u32 %s11028_s25, 4  ;;  %s11101_s26 = int_to_ptr.vmem [resolvable:$true] %s171_s26 }
   0xe   : > { %s10863_s29 = scalar_lea.hbm %s13783_s2, 256 }
   0xf   : > { %p11097_p7 = pnand %p10762_p6, %p13786_p1  ;;  %p10864_p8 = scmp.ne.s32.totalorder %s13783_s2, %s10863_s29 }
  0x10   : > { %p10870_p12 = scmp.lt.u32.totalorder %s10863_s29, %s13783_s2 }
  0x11   : > { %p10865_p9 = pneg %p11097_p7 }
  0x13   : > { %p10866_p10 = pnand %p10865_p9, %p10864_p8 }
  0x15   : > { %p10867_p11 = pneg %p10866_p10 }
  0x17   : > { %p10872_p13 = pnand %p10870_p12, %p10867_p11 }
  0x19   : > { %10875 = shalt.err (!%p10872_p13)
}
  0x1a   : > { %s10876_s8 = scalar_lea.vmem %s159_s23, 256  ;;  %p10884_p6 = scmp.lt.s32.totalorder %s159_s23, %s159_s23 }
  0x1b   : > { %p10877_p0 = scmp.ne.s32.totalorder %s159_s23, %s10876_s8  ;;  %p10885_p1 = scmp.lt.s32.totalorder %s10876_s8, %s10876_s8 }
  0x1d   : > { %p10879_p2 = pnand %p10877_p0, %p10865_p9  ;;  %p10886_p4 = por %p10885_p1, %p10884_p6 }
  0x1f   : > { %p10880_p3 = pneg %p10879_p2 }
  0x21   : > { %p10887_p5 = pnand %p10886_p4, %p10880_p3 }
  0x23   : > { %10890 = shalt.err (!%p10887_p5)
}
  0x24   : > { %s11029_s9 = smov 128   ;;  %s11030_s10 = smov 8  }
  0x25   : > { %10765 = dma.hbm_to_vmem [thread:$0]  (!%p11097_p7), %s13783_s2, 256, %s159_s23, [#allocation5], %s11029_s9, %s11029_s9, %s11030_s10  }
  0x26   : > { %s10891_s15 = scalar_lea.hbm %s13784_s3, 256 }
  0x27   : > { %p10892_p1 = scmp.ne.s32.totalorder %s13784_s3, %s10891_s15  ;;  %p10898_p8 = scmp.lt.u32.totalorder %s10891_s15, %s13784_s3 }
  0x29   : > { %p10894_p4 = pnand %p10892_p1, %p10865_p9 }
  0x2b   : > { %p10895_p5 = pneg %p10894_p4 }
  0x2d   : > { %p10900_p10 = pnand %p10898_p8, %p10895_p5 }
  0x2f   : > { %10903 = shalt.err (!%p10900_p10)
}
  0x30   : > { %s10904_s23 = scalar_lea.vmem %s11101_s26, 256  ;;  %p10912_p0 = scmp.lt.s32.totalorder %s11101_s26, %s11101_s26 }
  0x31   : > { %p10905_p11 = scmp.ne.s32.totalorder %s11101_s26, %s10904_s23  ;;  %p10913_p2 = scmp.lt.s32.totalorder %s10904_s23, %s10904_s23 }
  0x33   : > { %p10907_p12 = pnand %p10905_p11, %p10865_p9  ;;  %p10914_p3 = por %p10913_p2, %p10912_p0 }
  0x35   : > { %p10908_p13 = pneg %p10907_p12 }
  0x37   : > { %p10915_p6 = pnand %p10914_p3, %p10908_p13 }
  0x39   : > { %10918 = shalt.err (!%p10915_p6)
}
  0x3a   : > { %10768 = dma.hbm_to_vmem [thread:$0]  (!%p11097_p7), %s13784_s3, 256, %s11101_s26, [#allocation8], %s11029_s9, %s11029_s9, %s11030_s10  }
  0x3b   : > { %s11157_s5 = sadd.s32 1, %s11025_s18   ;;  %s28_s24 = sadd.s32 1, %s11021_s17 }
  0x3c   : > { %s25_s6 = ssub.s32 %s11025_s18, %s11157_s5  ;;  %p35_p9 = scmp.ne.s32.totalorder %s11021_s17, %s11017_s16 }
  0x3d   : > { %p26_p1 = scmp.eq.s32.totalorder %s25_s6, 0  ;;  %p36_p4 = scmp.eq.s32.totalorder %s11025_s18, 0 }
  0x3e   : > { %p10778_p5 = scmp.lt.s32.totalorder %s11025_s18, 2  ;;  %s185_s7 = sand.u32 1, %s11021_s17  }
  0x3f   : > { %s11168_s8 = scalar_select %p26_p1, %s11021_s17, %s28_s24  }
  0x40   : > { %p37_p8 = por %p36_p4, %p35_p9  ;;  %s11170_s11 = sshll.u32 %s185_s7, 8 }
  0x41   : > { %s9076_s12 = sshll.u32 %s11025_s18, 12  ;;  %s189_s15 = scalar_lea.vmem [#allocation2], %s11170_s11 }
  0x42   : > { %s11176_s26 = scalar_lea.hbm %s13781_s0, %s9076_s12  ;;  %s196_s22 = sshll.u32 %s189_s15, 4  ;;  %s11183_s22 = int_to_ptr.vmem [resolvable:$true] %s196_s22 }
  0x43   : > { %p11179_p7 = pnand %p10778_p5, %p37_p8  ;;  %s11188_s23 = scalar_lea.hbm %s13782_s1, %s9076_s12 }
  0x44   : > { %s11190_s29 = scalar_lea.sflag [#allocation3], %s185_s7  ;;  %s10919_s30 = scalar_lea.hbm %s11176_s26, 4096 }
  0x45   : > { %p10920_p10 = scmp.ne.s32.totalorder %s11176_s26, %s10919_s30  ;;  %p10921_p11 = pneg %p11179_p7 }
  0x46   : > { %s10924_s13 = scalar_lea.hbm %s13781_s0, 8192  ;;  %p10925_p0 = scmp.lt.u32.totalorder %s11176_s26, %s13781_s0 }
  0x47   : > { %p10922_p12 = pnand %p10921_p11, %p10920_p10  ;;  %p10926_p2 = scmp.lt.u32.totalorder %s10924_s13, %s10919_s30 }
  0x48   : > { %p10928_p6 = scmp.lt.u32.totalorder %s10919_s30, %s11176_s26 }
  0x49   : > { %p10923_p13 = pneg %p10922_p12  ;;  %p10927_p3 = por %p10926_p2, %p10925_p0 }
  0x4b   : > { %p10929_p9 = por %p10928_p6, %p10927_p3 }
  0x4d   : > { %p10930_p1 = pnand %p10929_p9, %p10923_p13 }
  0x4f   : > { %10933 = shalt.err (!%p10930_p1)
}
  0x50   : > { %s10934_s7 = scalar_lea.vmem %s11183_s22, 4096  ;;  %s11031_s12 = smov [#allocation2]  }
  0x51   : > { %p10935_p4 = scmp.ne.s32.totalorder %s11183_s22, %s10934_s7  ;;  %s10939_s27 = sshll.u32 %s11031_s12, 4  ;;  %s10940_s27 = int_to_ptr.vmem [resolvable:$false] %s10939_s27 }
  0x52   : > { %s10941_s28 = scalar_lea.vmem %s10940_s27, 8192  ;;  %p10942_p10 = scmp.lt.s32.totalorder %s11183_s22, %s10940_s27 }
  0x53   : > { %p10937_p5 = pnand %p10935_p4, %p10921_p11  ;;  %p10943_p12 = scmp.lt.s32.totalorder %s10941_s28, %s10934_s7 }
  0x55   : > { %p10938_p8 = pneg %p10937_p5  ;;  %p10944_p0 = por %p10943_p12, %p10942_p10 }
  0x57   : > { %p10945_p2 = pnand %p10944_p0, %p10938_p8 }
  0x59   : > { %10948 = shalt.err (!%p10945_p2)
}
  0x5a   : > { %10772 = dma.hbm_to_vmem [thread:$0]  (!%p11179_p7), %s11176_s26, 4096, %s11183_s22, %s11190_s29, %s11029_s9, %s11029_s9, %s11030_s10  }
  0x5b   : > { %s210_s30 = scalar_lea.vmem [#allocation4], %s11170_s11  ;;  %s206_s6 = sand.u32 1, %s11025_s18  }
  0x5c   : > { %s217_s24 = sshll.u32 %s210_s30, 4  ;;  %s11225_s13 = scalar_lea.sflag [#allocation5], %s206_s6  ;;  %s11223_s24 = int_to_ptr.vmem [resolvable:$true] %s217_s24 }
  0x5d   : > { %s10949_s14 = scalar_lea.hbm %s11188_s23, 4096  ;;  %s10954_s12 = scalar_lea.hbm %s13782_s1, 8192 }
  0x5e   : > { %p10950_p13 = scmp.ne.s32.totalorder %s11188_s23, %s10949_s14  ;;  %p10955_p9 = scmp.lt.u32.totalorder %s11188_s23, %s13782_s1 }
  0x5f   : > { %p10956_p1 = scmp.lt.u32.totalorder %s10954_s12, %s10949_s14  ;;  %p10958_p5 = scmp.lt.u32.totalorder %s10949_s14, %s11188_s23 }
  0x60   : > { %p10952_p3 = pnand %p10950_p13, %p10921_p11 }
  0x61   : > { %p10957_p4 = por %p10956_p1, %p10955_p9 }
  0x62   : > { %p10953_p6 = pneg %p10952_p3 }
  0x63   : > { %p10959_p8 = por %p10958_p5, %p10957_p4 }
  0x65   : > { %p10960_p10 = pnand %p10959_p8, %p10953_p6 }
  0x67   : > { %10963 = shalt.err (!%p10960_p10)
}
  0x68   : > { %s10964_s18 = scalar_lea.vmem %s11223_s24, 4096  ;;  %s11032_s11 = smov [#allocation4]  }
  0x69   : > { %p10965_p12 = scmp.ne.s32.totalorder %s11223_s24, %s10964_s18  ;;  %s10969_s26 = sshll.u32 %s11032_s11, 4  ;;  %s10970_s26 = int_to_ptr.vmem [resolvable:$false] %s10969_s26 }
  0x6a   : > { %s10971_s22 = scalar_lea.vmem %s10970_s26, 8192  ;;  %p10972_p13 = scmp.lt.s32.totalorder %s11223_s24, %s10970_s26 }
  0x6b   : > { %p10967_p0 = pnand %p10965_p12, %p10921_p11  ;;  %p10973_p3 = scmp.lt.s32.totalorder %s10971_s22, %s10964_s18 }
  0x6d   : > { %p10968_p2 = pneg %p10967_p0  ;;  %p10974_p9 = por %p10973_p3, %p10972_p13 }
  0x6f   : > { %p10975_p1 = pnand %p10974_p9, %p10968_p2 }
  0x71   : > { %10978 = shalt.err (!%p10975_p1)
}
  0x72   : > { %10775 = dma.hbm_to_vmem [thread:$0]  (!%p11179_p7), %s11188_s23, 4096, %s11223_s24, %s11225_s13, %s11029_s9, %s11029_s9, %s11030_s10  }
  0x73   : > { %p13906_p11 = scmp.ne.s32.totalorder %s13903_s21, 0 }
  0x75   : > { %229 = sbr.rel (%p13906_p11) target bundleno = 1268 (0x4f4), region = 36 }
  0x7c   : > { %s231_s29 = sand.u32 1, %s11017_s16   ;;  %p13907_p6 = scmp.ne.s32.totalorder %s13902_s20, 0 }
  0x7d   : > { %s8750_s30 = sshll.u32 %s231_s29, 8  ;;  %s232_s6 = scalar_lea.sflag [#allocation3], %s231_s29 }
  0x7e   : > { %s11257_s14 = scalar_lea.vmem [#allocation2], %s8750_s30 }
  0x7f   : > { %10996 = dma.done.wait (%p13907_p6), %s232_s6, 4096  }
  0x80   : > { %10998 = vsyncadd (%p13907_p6), %s232_s6, 4294963200  ;;  %s240_s25 = sand.u32 1, %s11077_s19   ;;  %s11264_s9 = scalar_lea.vmem [#allocation4], %s8750_s30 }
  0x81   : > { %s241_s15 = scalar_lea.sflag [#allocation5], %s240_s25 }
  0x82   : > { %11000 = dma.done.wait (%p13907_p6), %s241_s15, 4096  }
  0x83   : > { %11002 = vsyncadd (%p13907_p6), %s241_s15, 4294963200  ;;  %p13908_p7 = scmp.eq.s32.totalorder %s11077_s19, 0 }
  0x85   : > { %11004 = dma.done.wait (%p13908_p7), [#allocation5], 256   ;;  %p13909_p4 = pmov %p13908_p7 }
  0x87   : > { %11006 = vsyncadd (%p13909_p4), [#allocation5], 4294967040  ;;  %p13910_p5 = pmov %p13909_p4 }
  0x88   : > { %p13911_p8 = pmov %p13909_p4 }
  0x89   : > { %11008 = dma.done.wait (%p13910_p5), [#allocation8], 256  }
  0x8a   : > { %11010 = vsyncadd (%p13911_p8), [#allocation8], 4294967040  ;;  %vm445_vm0 = vcmask 130048   ;;  %v443_v0 = vld [vmem:[#allocation7] sm:$0xff]  ;;  %v444_v1 = vld [vmem:[#allocation7 + $0x8] sm:$0xff]  ;;  %p280_p10 = scmp.lt.s32.totalorder %s11077_s19, 1 }
  0x8b   : > { %v11279_v2 = vld [vmem:[%s11257_s14] sm:$0xff]  ;;  %v10364_v3 = vpack.c.bf16 %v444_v1, %v443_v0  ;;  %v11284_v4 = vld [vmem:[%s11257_s14 + $0x8] sm:$0xff]  ;;  %v11287_v5 = vld [vmem:[%s11257_s14 + $0x10] sm:$0xff]  ;;  %vm8635_vm1 = vcmask 0  }
  0x8c   : > { %9564 = vmatprep.mubr.msk.f32.mxu0 %vm445_vm0, %v11279_v2  ;;  %v11294_v6 = vld [vmem:[%s11257_s14 + $0x18] sm:$0xff]  ;;  %v11297_v7 = vld [vmem:[%s11257_s14 + $0x20] sm:$0xff]  ;;  %v11307_v9 = vld [vmem:[%s11257_s14 + $0x28] sm:$0xff]  ;;  %s14241_s19 = smov (!%p280_p10, %s11077_s19), 1 }
  0x8d   : > { %10365 = vmatprep.subr.bf16.mxu0 %v10364_v3  ;;  %v11302_v8 = vld [vmem:[%s11264_s9] sm:$0xff]  ;;  %v11314_v11 = vld [vmem:[%s11264_s9 + $0x8] sm:$0xff]  ;;  %v11317_v12 = vld [vmem:[%s11264_s9 + $0x10] sm:$0xff]  ;;  %s282_s10 = scalar_lea.vmem %s13785_s4, %s14241_s19 }
  0x8e   : > { %10367 = vmatpush3.bf16.msra.mxu0 %v10364_v3  ;;  %v11311_v10 = vmul.f32 %v11302_v8, %v11279_v2  ;;  %v11320_v13 = vld [vmem:[%s11257_s14 + $0x30] sm:$0xff]  ;;  %v11324_v14 = vmul.f32 %v11314_v11, %v11284_v4  ;;  %v11328_v15 = vmul.f32 %v11317_v12, %v11287_v5  ;;  %v11331_v16 = vld [vmem:[%s11264_s9 + $0x18] sm:$0xff]  ;;  %v11334_v17 = vld [vmem:[%s11264_s9 + $0x20] sm:$0xff] }
  0x8f   : > { %v11338_v18 = vmul.f32 %v11331_v16, %v11294_v6  ;;  %v11342_v19 = vmul.f32 %v11334_v17, %v11297_v7  ;;  %v11349_v20 = vld [vmem:[%s11257_s14 + $0x38] sm:$0xff]  ;;  %v11352_v21 = vld [vmem:[%s11257_s14 + $0x40] sm:$0xff]  ;;  %v11359_v22 = vld [vmem:[%s11257_s14 + $0x48] sm:$0xff] }
  0x90   : > { %13912 = vst [vmem:[#allocation13_spill] sm:$0xff] %v11311_v10  ;;  %13913 = vst [vmem:[#allocation14_spill] sm:$0xff] %v11324_v14  ;;  %v11362_v23 = vld [vmem:[%s11257_s14 + $0x50] sm:$0xff]  ;;  %v11369_v24 = vld [vmem:[%s11257_s14 + $0x58] sm:$0xff] }
  0x91   : > { %9565 = vmatmul.mubr.msk.f32.vlgmr.msra.gmra.mrb[0].mxu0 %vm445_vm0, %v11284_v4  ;;  %13914 = vst [vmem:[#allocation15_spill] sm:$0xff] %v11328_v15  ;;  %13915 = vst [vmem:[#allocation16_spill] sm:$0xff] %v11338_v18  ;;  %v11372_v25 = vld [vmem:[%s11257_s14 + $0x60] sm:$0xff]  ;;  %v11379_v26 = vld [vmem:[%s11257_s14 + $0x68] sm:$0xff] }
  0x92   : > { %9567 = vmatprep.mubr.msk.f32.mxu0 %vm445_vm0, %v11287_v5  ;;  %13916 = vst [vmem:[#allocation17_spill] sm:$0xff] %v11342_v19  ;;  %v11382_v27 = vld [vmem:[%s11257_s14 + $0x70] sm:$0xff]  ;;  %v11389_v28 = vld [vmem:[%s11257_s14 + $0x78] sm:$0xff]  ;;  %v11392_v29 = vld [vmem:[%s11257_s14 + $0x80] sm:$0xff] }
  0x93   : > { %v11399_v30 = vld [vmem:[%s11257_s14 + $0x88] sm:$0xff]  ;;  %v11402_v31 = vld [vmem:[%s11257_s14 + $0x90] sm:$0xff]  ;;  %v11409_v32 = vld [vmem:[%s11257_s14 + $0x98] sm:$0xff] }
  0x94   : > { %v11412_v33 = vld [vmem:[%s11257_s14 + $0xa0] sm:$0xff]  ;;  %v11419_v34 = vld [vmem:[%s11257_s14 + $0xa8] sm:$0xff]  ;;  %v11422_v35 = vld [vmem:[%s11257_s14 + $0xb0] sm:$0xff] }
  0x95   : > { %9568 = vmatmul.mubr.msk.f32.gmra.mrb[2].mxu0 %vm445_vm0, %v11294_v6  ;;  %v11429_v36 = vld [vmem:[%s11257_s14 + $0xb8] sm:$0xff]  ;;  %v11432_v37 = vld [vmem:[%s11257_s14 + $0xc0] sm:$0xff]  ;;  %v11439_v38 = vld [vmem:[%s11257_s14 + $0xc8] sm:$0xff] }
  0x96   : > { %9570 = vmatprep.mubr.msk.f32.mxu0 %vm445_vm0, %v11297_v7  ;;  %v11442_v39 = vld [vmem:[%s11257_s14 + $0xd0] sm:$0xff]  ;;  %v11449_v40 = vld [vmem:[%s11257_s14 + $0xd8] sm:$0xff]  ;;  %v11452_v41 = vld [vmem:[%s11257_s14 + $0xe0] sm:$0xff] }
  0x97   : > { %13917 = vst [vmem:[#allocation18_spill] sm:$0xff] %v11452_v41  ;;  %v11459_v42 = vld [vmem:[%s11257_s14 + $0xe8] sm:$0xff]  ;;  %v11462_v43 = vld [vmem:[%s11257_s14 + $0xf0] sm:$0xff]  ;;  %v11469_v44 = vld [vmem:[%s11257_s14 + $0xf8] sm:$0xff] }
  0x98   : > { %13918 = vst [vmem:[#allocation19_spill] sm:$0xff] %v11459_v42  ;;  %13919 = vst [vmem:[#allocation20_spill] sm:$0xff] %v11462_v43  ;;  %v11484_v45 = vld [vmem:[%s11264_s9 + $0x28] sm:$0xff]  ;;  %v11487_v46 = vld [vmem:[%s11264_s9 + $0x30] sm:$0xff] }
  0x99   : > { %9571 = vmatmul.mubr.msk.f32.gmra.mrb[4].mxu0 %vm445_vm0, %v11307_v9  ;;  %13920 = vst [vmem:[#allocation21_spill] sm:$0xff] %v11469_v44  ;;  %v11494_v47 = vld [vmem:[%s11264_s9 + $0x38] sm:$0xff]  ;;  %v11497_v48 = vld [vmem:[%s11264_s9 + $0x40] sm:$0xff]  ;;  %v11504_v49 = vld [vmem:[%s11264_s9 + $0x48] sm:$0xff] }
  0x9a   : > { %9573 = vmatprep.mubr.msk.f32.mxu0 %vm445_vm0, %v11320_v13  ;;  %v11507_v50 = vld [vmem:[%s11264_s9 + $0x50] sm:$0xff]  ;;  %v11514_v51 = vld [vmem:[%s11264_s9 + $0x58] sm:$0xff]  ;;  %v11517_v52 = vld [vmem:[%s11264_s9 + $0x60] sm:$0xff] }
  0x9b   : > { %v11524_v53 = vld [vmem:[%s11264_s9 + $0x68] sm:$0xff]  ;;  %v11527_v54 = vld [vmem:[%s11264_s9 + $0x70] sm:$0xff]  ;;  %v11534_v55 = vld [vmem:[%s11264_s9 + $0x78] sm:$0xff] }
  0x9c   : > { %v11536_v56 = vld [vmem:[#allocation6] sm:$0xff]  ;;  %v11548_v58 = vld [vmem:[%s11264_s9 + $0x88] sm:$0xff]  ;;  %v11551_v59 = vld [vmem:[%s11264_s9 + $0x90] sm:$0xff] }
  0x9d   : > { %9574 = vmatmul.mubr.msk.f32.gmra.mrb[6].mxu0 %vm445_vm0, %v11349_v20  ;;  %v11539_v57 = vld [vmem:[%s11264_s9 + $0x80] sm:$0xff]  ;;  %9808 = vmatprep.mubr.msk.f32.mxu1 %vm445_vm0, %v11536_v56  ;;  %v11558_v60 = vld [vmem:[%s11264_s9 + $0x98] sm:$0xff]  ;;  %v11568_v62 = vld [vmem:[%s11264_s9 + $0xa8] sm:$0xff] }
  0x9e   : > { %9576 = vmatprep.mubr.msk.f32.mxu0 %vm445_vm0, %v11352_v21  ;;  %v11561_v61 = vld [vmem:[%s11264_s9 + $0xa0] sm:$0xff]  ;;  %v11571_v63 = vld [vmem:[%s11264_s9 + $0xb0] sm:$0xff]  ;;  %v11578_v0 = vld [vmem:[%s11264_s9 + $0xb8] sm:$0xff] }
  0x9f   : > { %v11581_v1 = vld [vmem:[%s11264_s9 + $0xc0] sm:$0xff]  ;;  %v11588_v3 = vld [vmem:[%s11264_s9 + $0xc8] sm:$0xff]  ;;  %v11591_v19 = vld [vmem:[%s11264_s9 + $0xd0] sm:$0xff] }
  0xa0   : > { %13921 = vst [vmem:[#allocation22_spill] sm:$0xff] %v11588_v3  ;;  %13922 = vst [vmem:[#allocation23_spill] sm:$0xff] %v11591_v19  ;;  %v11598_v18 = vld [vmem:[%s11264_s9 + $0xd8] sm:$0xff]  ;;  %v11601_v15 = vld [vmem:[%s11264_s9 + $0xe0] sm:$0xff] }
  0xa1   : > { %9577 = vmatmul.mubr.msk.f32.gmra.mrb[8].mxu0 %vm445_vm0, %v11359_v22  ;;  %13923 = vst [vmem:[#allocation24_spill] sm:$0xff] %v11598_v18  ;;  %13924 = vst [vmem:[#allocation25_spill] sm:$0xff] %v11601_v15  ;;  %v11608_v14 = vld [vmem:[%s11264_s9 + $0xe8] sm:$0xff]  ;;  %v11611_v10 = vld [vmem:[%s11264_s9 + $0xf0] sm:$0xff] }
  0xa2   : > { %9579 = vmatprep.mubr.msk.f32.mxu0 %vm445_vm0, %v11362_v23  ;;  %13925 = vst [vmem:[#allocation26_spill] sm:$0xff] %v11608_v14  ;;  %13926 = vst [vmem:[#allocation27_spill] sm:$0xff] %v11611_v10 }
  0xa5   : > { %9580 = vmatmul.mubr.msk.f32.gmra.mrb[10].mxu0 %vm445_vm0, %v11369_v24 }
  0xa6   : > { %9582 = vmatprep.mubr.msk.f32.mxu0 %vm445_vm0, %v11372_v25 }
  0xa9   : > { %9583 = vmatmul.mubr.msk.f32.gmra.mrb[12].mxu0 %vm445_vm0, %v11379_v26 }
  0xaa   : > { %9585 = vmatprep.mubr.msk.f32.mxu0 %vm445_vm0, %v11382_v27 }
  0xad   : > { %9586 = vmatmul.mubr.msk.f32.gmra.mrb[14].mxu0 %vm445_vm0, %v11389_v28 }
  0xae   : > { %9588 = vmatprep.mubr.msk.f32.mxu0 %vm445_vm0, %v11392_v29 }
  0xb1   : > { %9589 = vmatmul.mubr.msk.f32.gmra.mrb[16].mxu0 %vm445_vm0, %v11399_v30 }
  0xb2   : > { %9591 = vmatprep.mubr.msk.f32.mxu0 %vm445_vm0, %v11402_v31 }
  0xb5   : > { %9592 = vmatmul.mubr.msk.f32.gmra.mrb[18].mxu0 %vm445_vm0, %v11409_v32 }
  0xb6   : > { %9594 = vmatprep.mubr.msk.f32.mxu0 %vm445_vm0, %v11412_v33 }
  0xb9   : > { %9595 = vmatmul.mubr.msk.f32.gmra.mrb[20].mxu0 %vm445_vm0, %v11419_v34 }
  0xba   : > { %9597 = vmatprep.mubr.msk.f32.mxu0 %vm445_vm0, %v11422_v35 }
  0xbd   : > { %9598 = vmatmul.mubr.msk.f32.gmra.mrb[22].mxu0 %vm445_vm0, %v11429_v36 }
  0xbe   : > { %9600 = vmatprep.mubr.msk.f32.mxu0 %vm445_vm0, %v11432_v37 }
  0xc1   : > { %9601 = vmatmul.mubr.msk.f32.gmra.mrb[24].mxu0 %vm445_vm0, %v11439_v38 }
  0xc2   : > { %9603 = vmatprep.mubr.msk.f32.mxu0 %vm445_vm0, %v11442_v39 }
  0xc5   : > { %9604 = vmatmul.mubr.msk.f32.gmra.mrb[26].mxu0 %vm445_vm0, %v11449_v40 }
  0xc6   : > { %9606 = vmatprep.mubr.msk.f32.mxu0 %vm445_vm0, %v11452_v41 }
  0xc9   : > { %9607 = vmatmul.mubr.msk.f32.gmra.mrb[28].mxu0 %vm445_vm0, %v11459_v42 }
  0xca   : > { %9609 = vmatprep.mubr.msk.f32.mxu0 %vm445_vm0, %v11462_v43 }
  0xcd   : > { %9610 = vmatmul.mubr.msk.f32.gmra.mrb[30].mxu0 %vm445_vm0, %v11469_v44 }
  0xce   : > { %9612 = vmatprep.mubr.msk.f32.mxu0 %vm445_vm0, %v11302_v8 }
  0xd1   : > { %9613 = vmatmul.mubr.msk.f32.gmra.mrb[32].mxu0 %vm445_vm0, %v11314_v11 }
  0xd2   : > { %9615 = vmatprep.mubr.msk.f32.mxu0 %vm445_vm0, %v11317_v12 }
  0xd5   : > { %9616 = vmatmul.mubr.msk.f32.gmra.mrb[34].mxu0 %vm445_vm0, %v11331_v16 }
  0xd6   : > { %9618 = vmatprep.mubr.msk.f32.mxu0 %vm445_vm0, %v11334_v17 }
  0xd9   : > { %9619 = vmatmul.mubr.msk.f32.gmra.mrb[36].mxu0 %vm445_vm0, %v11484_v45 }
  0xda   : > { %9621 = vmatprep.mubr.msk.f32.mxu0 %vm445_vm0, %v11487_v46 }
  0xdd   : > { %9622 = vmatmul.mubr.msk.f32.gmra.mrb[38].mxu0 %vm445_vm0, %v11494_v47 }
  0xde   : > { %9624 = vmatprep.mubr.msk.f32.mxu0 %vm445_vm0, %v11497_v48 }
  0xe1   : > { %9625 = vmatmul.mubr.msk.f32.gmra.mrb[40].mxu0 %vm445_vm0, %v11504_v49 }
  0xe2   : > { %9627 = vmatprep.mubr.msk.f32.mxu0 %vm445_vm0, %v11507_v50 }
  0xe5   : > { %9628 = vmatmul.mubr.msk.f32.gmra.mrb[42].mxu0 %vm445_vm0, %v11514_v51 }
  0xe6   : > { %9630 = vmatprep.mubr.msk.f32.mxu0 %vm445_vm0, %v11517_v52 }
  0xe9   : > { %9631 = vmatmul.mubr.msk.f32.gmra.mrb[44].mxu0 %vm445_vm0, %v11524_v53 }
  0xea   : > { %9633 = vmatprep.mubr.msk.f32.mxu0 %vm445_vm0, %v11527_v54 }
  0xed   : > { %9634 = vmatmul.mubr.msk.f32.gmra.mrb[46].mxu0 %vm445_vm0, %v11534_v55 }
  0xee   : > { %9636 = vmatprep.mubr.msk.f32.mxu0 %vm445_vm0, %v11539_v57 }
  0xf1   : > { %9637 = vmatmul.mubr.msk.f32.gmra.mrb[48].mxu0 %vm445_vm0, %v11548_v58 }
  0xf2   : > { %9639 = vmatprep.mubr.msk.f32.mxu0 %vm445_vm0, %v11551_v59 }
  0xf5   : > { %9640 = vmatmul.mubr.msk.f32.gmra.mrb[50].mxu0 %vm445_vm0, %v11558_v60 }
  0xf6   : > { %9642 = vmatprep.mubr.msk.f32.mxu0 %vm445_vm0, %v11561_v61 }
  0xf9   : > { %9643 = vmatmul.mubr.msk.f32.gmra.mrb[52].mxu0 %vm445_vm0, %v11568_v62 }
  0xfa   : > { %9645 = vmatprep.mubr.msk.f32.mxu0 %vm445_vm0, %v11571_v63 }
  0xfd   : > { %9646 = vmatmul.mubr.msk.f32.gmra.mrb[54].mxu0 %vm445_vm0, %v11578_v0 }
  0xfe   : > { %9648 = vmatprep.mubr.msk.f32.mxu0 %vm445_vm0, %v11581_v1 }
 0x101   : > { %9649 = vmatmul.mubr.msk.f32.gmra.mrb[56].mxu0 %vm445_vm0, %v11588_v3  ;;  %v11620_v3 = vld [vmem:[%s11264_s9 + $0xf8] sm:$0xff] }
 0x102   : > { %9651 = vmatprep.mubr.msk.f32.mxu0 %vm445_vm0, %v11591_v19  ;;  %v347_v19 = vmul.f32 %v11279_v2, %v11279_v2  ;;  %13927 = vst [vmem:[#allocation28_spill] sm:$0xff] %v11620_v3  ;;  %v351_v2 = vmul.f32 %v11297_v7, %v11297_v7  ;;  %v355_v7 = vmul.f32 %v11352_v21, %v11352_v21 }
 0x105   : > { %9652 = vmatmul.mubr.msk.f32.gmra.mrb[58].mxu0 %vm445_vm0, %v11598_v18  ;;  %v348_v18 = vmul.f32 %v11284_v4, %v11284_v4  ;;  %v352_v4 = vmul.f32 %v11307_v9, %v11307_v9 }
 0x106   : > { %9654 = vmatprep.mubr.msk.f32.mxu0 %vm445_vm0, %v11601_v15  ;;  %v349_v15 = vmul.f32 %v11287_v5, %v11287_v5  ;;  %v353_v5 = vmul.f32 %v11320_v13, %v11320_v13 }
 0x109   : > { %9655 = vmatmul.mubr.msk.f32.gmra.mrb[60].mxu0 %vm445_vm0, %v11608_v14  ;;  %v350_v14 = vmul.f32 %v11294_v6, %v11294_v6  ;;  %v354_v6 = vmul.f32 %v11349_v20, %v11349_v20 }
 0x10a   : > { %9657 = vmatprep.mubr.msk.f32.mxu0 %vm445_vm0, %v11611_v10 }
 0x10d   : > { %9658 = vmatmul.mubr.msk.f32.gmra.mrb[62].mxu0 %vm445_vm0, %v11620_v3 }
 0x10e   : > { %9660 = vmatprep.mubr.msk.f32.mxu0 %vm445_vm0, %v347_v19  ;;  %v359_v19 = vmul.f32 %v11372_v25, %v11372_v25 }
 0x111   : > { %9661 = vmatmul.mubr.msk.f32.gmra.mrb[64].mxu0 %vm445_vm0, %v348_v18  ;;  %v358_v18 = vmul.f32 %v11369_v24, %v11369_v24 }
 0x112   : > { %9663 = vmatprep.mubr.msk.f32.mxu0 %vm445_vm0, %v349_v15  ;;  %v356_v15 = vmul.f32 %v11359_v22, %v11359_v22 }
 0x115   : > { %9664 = vmatmul.mubr.msk.f32.gmra.mrb[66].mxu0 %vm445_vm0, %v350_v14  ;;  %v357_v14 = vmul.f32 %v11362_v23, %v11362_v23 }
 0x116   : > { %9666 = vmatprep.mubr.msk.f32.mxu0 %vm445_vm0, %v351_v2  ;;  %v360_v2 = vmul.f32 %v11379_v26, %v11379_v26 }
 0x119   : > { %9667 = vmatmul.mubr.msk.f32.gmra.mrb[68].mxu0 %vm445_vm0, %v352_v4  ;;  %v361_v4 = vmul.f32 %v11382_v27, %v11382_v27 }
 0x11a   : > { %9669 = vmatprep.mubr.msk.f32.mxu0 %vm445_vm0, %v353_v5  ;;  %v362_v5 = vmul.f32 %v11389_v28, %v11389_v28 }
 0x11d   : > { %9670 = vmatmul.mubr.msk.f32.gmra.mrb[70].mxu0 %vm445_vm0, %v354_v6  ;;  %v363_v6 = vmul.f32 %v11392_v29, %v11392_v29 }
 0x11e   : > { %9672 = vmatprep.mubr.msk.f32.mxu0 %vm445_vm0, %v355_v7  ;;  %v364_v7 = vmul.f32 %v11399_v30, %v11399_v30 }
 0x121   : > { %9673 = vmatmul.mubr.msk.f32.gmra.mrb[72].mxu0 %vm445_vm0, %v356_v15  ;;  %v365_v15 = vmul.f32 %v11402_v31, %v11402_v31 }
 0x122   : > { %9675 = vmatprep.mubr.msk.f32.mxu0 %vm445_vm0, %v357_v14  ;;  %v366_v14 = vmul.f32 %v11409_v32, %v11409_v32 }
 0x125   : > { %9676 = vmatmul.mubr.msk.f32.gmra.mrb[74].mxu0 %vm445_vm0, %v358_v18  ;;  %v367_v18 = vmul.f32 %v11412_v33, %v11412_v33 }
 0x126   : > { %9678 = vmatprep.mubr.msk.f32.mxu0 %vm445_vm0, %v359_v19  ;;  %v368_v19 = vmul.f32 %v11419_v34, %v11419_v34 }
 0x129   : > { %9679 = vmatmul.mubr.msk.f32.gmra.mrb[76].mxu0 %vm445_vm0, %v360_v2  ;;  %v369_v2 = vmul.f32 %v11422_v35, %v11422_v35 }
 0x12a   : > { %9681 = vmatprep.mubr.msk.f32.mxu0 %vm445_vm0, %v361_v4  ;;  %v370_v4 = vmul.f32 %v11429_v36, %v11429_v36 }
 0x12d   : > { %9682 = vmatmul.mubr.msk.f32.gmra.mrb[78].mxu0 %vm445_vm0, %v362_v5  ;;  %v371_v5 = vmul.f32 %v11432_v37, %v11432_v37 }
 0x12e   : > { %9684 = vmatprep.mubr.msk.f32.mxu0 %vm445_vm0, %v363_v6  ;;  %v372_v6 = vmul.f32 %v11439_v38, %v11439_v38 }
 0x131   : > { %9685 = vmatmul.mubr.msk.f32.gmra.mrb[80].mxu0 %vm445_vm0, %v364_v7  ;;  %v373_v7 = vmul.f32 %v11442_v39, %v11442_v39 }
 0x132   : > { %9687 = vmatprep.mubr.msk.f32.mxu0 %vm445_vm0, %v365_v15  ;;  %v374_v15 = vmul.f32 %v11449_v40, %v11449_v40 }
 0x135   : > { %9688 = vmatmul.mubr.msk.f32.gmra.mrb[82].mxu0 %vm445_vm0, %v366_v14  ;;  %v375_v14 = vmul.f32 %v11452_v41, %v11452_v41  ;;  %v409_v41 = vmul.f32 %v11611_v10, %v11611_v10  ;;  %v13937_v10 = vld [vmem:[#allocation17_spill] sm:$0xff] }
 0x136   : > { %9690 = vmatprep.mubr.msk.f32.mxu0 %vm445_vm0, %v367_v18  ;;  %v376_v18 = vmul.f32 %v11459_v42, %v11459_v42 }
 0x139   : > { %9691 = vmatmul.mubr.msk.f32.gmra.mrb[84].mxu0 %vm445_vm0, %v368_v19  ;;  %v377_v19 = vmul.f32 %v11462_v43, %v11462_v43  ;;  %v13932_v43 = vld [vmem:[#allocation26_spill] sm:$0xff] }
 0x13a   : > { %9693 = vmatprep.mubr.msk.f32.mxu0 %vm445_vm0, %v369_v2  ;;  %v378_v2 = vmul.f32 %v11469_v44, %v11469_v44 }
 0x13d   : > { %9694 = vmatmul.mubr.msk.f32.gmra.mrb[86].mxu0 %vm445_vm0, %v370_v4  ;;  %v379_v4 = vmul.f32 %v11302_v8, %v11302_v8  ;;  %v383_v8 = vmul.f32 %v11334_v17, %v11334_v17  ;;  %v387_v17 = vmul.f32 %v11497_v48, %v11497_v48 }
 0x13e   : > { %9696 = vmatprep.mubr.msk.f32.mxu0 %vm445_vm0, %v371_v5  ;;  %v380_v5 = vmul.f32 %v11314_v11, %v11314_v11  ;;  %v384_v11 = vmul.f32 %v11484_v45, %v11484_v45 }
 0x141   : > { %9697 = vmatmul.mubr.msk.f32.gmra.mrb[88].mxu0 %vm445_vm0, %v372_v6  ;;  %v381_v6 = vmul.f32 %v11317_v12, %v11317_v12  ;;  %v385_v12 = vmul.f32 %v11487_v46, %v11487_v46 }
 0x142   : > { %9699 = vmatprep.mubr.msk.f32.mxu0 %vm445_vm0, %v373_v7  ;;  %v382_v7 = vmul.f32 %v11331_v16, %v11331_v16  ;;  %v386_v16 = vmul.f32 %v11494_v47, %v11494_v47 }
 0x145   : > { %9700 = vmatmul.mubr.msk.f32.gmra.mrb[90].mxu0 %vm445_vm0, %v374_v15  ;;  %v388_v15 = vmul.f32 %v11504_v49, %v11504_v49 }
 0x146   : > { %9702 = vmatprep.mubr.msk.f32.mxu0 %vm445_vm0, %v375_v14  ;;  %v389_v14 = vmul.f32 %v11507_v50, %v11507_v50 }
 0x149   : > { %9703 = vmatmul.mubr.msk.f32.gmra.mrb[92].mxu0 %vm445_vm0, %v376_v18  ;;  %v390_v18 = vmul.f32 %v11514_v51, %v11514_v51 }
 0x14a   : > { %9705 = vmatprep.mubr.msk.f32.mxu0 %vm445_vm0, %v377_v19  ;;  %v391_v19 = vmul.f32 %v11517_v52, %v11517_v52 }
 0x14d   : > { %9706 = vmatmul.mubr.msk.f32.gmra.mrb[94].mxu0 %vm445_vm0, %v378_v2 }
 0x14e   : > { %9708 = vmatprep.mubr.msk.f32.mxu0 %vm445_vm0, %v379_v4  ;;  %v392_v4 = vmul.f32 %v11524_v53, %v11524_v53 }
 0x151   : > { %9709 = vmatmul.mubr.msk.f32.gmra.mrb[96].mxu0 %vm445_vm0, %v380_v5 }
 0x152   : > { %9711 = vmatprep.mubr.msk.f32.mxu0 %vm445_vm0, %v381_v6  ;;  %v393_v6 = vmul.f32 %v11527_v54, %v11527_v54 }
 0x155   : > { %9712 = vmatmul.mubr.msk.f32.gmra.mrb[98].mxu0 %vm445_vm0, %v382_v7 }
 0x156   : > { %9714 = vmatprep.mubr.msk.f32.mxu0 %vm445_vm0, %v383_v8 }
 0x159   : > { %9715 = vmatmul.mubr.msk.f32.gmra.mrb[100].mxu0 %vm445_vm0, %v384_v11 }
 0x15a   : > { %9717 = vmatprep.mubr.msk.f32.mxu0 %vm445_vm0, %v385_v12  ;;  %v11761_v12 = vld [vmem:[#allocation6 + $0x8] sm:$0xff] }
 0x15d   : > { %9718 = vmatmul.mubr.msk.f32.gmra.mrb[102].mxu0 %vm445_vm0, %v386_v16  ;;  %v394_v16 = vmul.f32 %v11534_v55, %v11534_v55 }
 0x15e   : > { %9720 = vmatprep.mubr.msk.f32.mxu0 %vm445_vm0, %v387_v17 }
 0x161   : > { %9721 = vmatmul.mubr.msk.f32.gmra.mrb[104].mxu0 %vm445_vm0, %v388_v15  ;;  %v395_v15 = vmul.f32 %v11539_v57, %v11539_v57 }
 0x162   : > { %9723 = vmatprep.mubr.msk.f32.mxu0 %vm445_vm0, %v389_v14 }
 0x164   : > { %v9566_v2 = vpop.f32.mrb[0].mxu0 }
 0x165   : > { %v992_v5 = vpop.f32.mrb[1].mxu0  ;;  %9724 = vmatmul.mubr.msk.f32.gmra.mrb[106].mxu0 %vm445_vm0, %v390_v18 }
 0x166   : > { %v10368_v7 = vpack.c.bf16 %v9566_v2, %v992_v5  ;;  %9726 = vmatprep.mubr.msk.f32.mxu0 %vm445_vm0, %v391_v19  ;;  %v396_v19 = vmul.f32 %v11548_v58, %v11548_v58 }
 0x168   : > { %v9569_v8 = vpop.f32.mrb[2].mxu0  ;;  %10369 = vmatprep.subr.bf16.mxu1 %v10368_v7 }
 0x169   : > { %v1002_v11 = vpop.f32.mrb[3].mxu0  ;;  %10371 = vmatpush3.bf16.msra.mxu1 %v10368_v7  ;;  %9727 = vmatmul.mubr.msk.f32.gmra.mrb[108].mxu0 %vm445_vm0, %v392_v4  ;;  %v397_v4 = vmul.f32 %v11551_v59, %v11551_v59  ;;  %v398_v7 = vmul.f32 %v11558_v60, %v11558_v60 }
 0x16a   : > { %v10372_v17 = vpack.c.bf16 %v9569_v8, %v1002_v11  ;;  %9729 = vmatprep.mubr.msk.f32.mxu0 %vm445_vm0, %v393_v6  ;;  %v399_v11 = vmul.f32 %v11561_v61, %v11561_v61 }
 0x16c   : > { %v9572_v14 = vpop.f32.mrb[4].mxu0  ;;  %9809 = vmatmul.mubr.msk.f32.vlgmr.msra.gmra.mrb[0].mxu1 %vm445_vm0, %v11761_v12  ;;  %10373 = vmatprep.subr.bf16.mxu1 %v10372_v17 }
 0x16d   : > { %v1012_v18 = vpop.f32.mrb[5].mxu0  ;;  %10375 = vmatpush3.bf16.msra.mxu1 %v10372_v17  ;;  %9815 = vmatprep.mubr.msk.f32.mxu1 %vm445_vm0, %v11536_v56 }
 0x16e   : > { %v10376_v2 = vpack.c.bf16 %v9572_v14, %v1012_v18  ;;  %9730 = vmatmul.mubr.msk.f32.gmra.mrb[110].mxu0 %vm445_vm0, %v394_v16  ;;  %v401_v18 = vmul.f32 %v11571_v63, %v11571_v63 }
 0x16f   : > { %9732 = vmatprep.mubr.msk.f32.mxu0 %vm445_vm0, %v395_v15  ;;  %v400_v15 = vmul.f32 %v11568_v62, %v11568_v62 }
 0x170   : > { %v9575_v5 = vpop.f32.mrb[6].mxu0  ;;  %9816 = vmatmul.mubr.msk.f32.vlgmr.msra.gmra.mrb[2].mxu1 %vm445_vm0, %v11761_v12  ;;  %10377 = vmatprep.subr.bf16.mxu1 %v10376_v2 }
 0x171   : > { %v1022_v6 = vpop.f32.mrb[7].mxu0  ;;  %10379 = vmatpush3.bf16.msra.mxu1 %v10376_v2  ;;  %9822 = vmatprep.mubr.msk.f32.mxu1 %vm445_vm0, %v11536_v56 }
 0x172   : > { %v10380_v8 = vpack.c.bf16 %v9575_v5, %v1022_v6  ;;  %9733 = vmatmul.mubr.msk.f32.gmra.mrb[112].mxu0 %vm445_vm0, %v396_v19  ;;  %v403_v6 = vmul.f32 %v11581_v1, %v11581_v1 }
 0x173   : > { %9735 = vmatprep.mubr.msk.f32.mxu0 %vm445_vm0, %v397_v4  ;;  %v402_v4 = vmul.f32 %v11578_v0, %v11578_v0 }
 0x174   : > { %v9578_v16 = vpop.f32.mrb[8].mxu0  ;;  %9823 = vmatmul.mubr.msk.f32.vlgmr.msra.gmra.mrb[4].mxu1 %vm445_vm0, %v11761_v12  ;;  %10381 = vmatprep.subr.bf16.mxu1 %v10380_v8 }
 0x175   : > { %v1032_v17 = vpop.f32.mrb[9].mxu0  ;;  %10383 = vmatpush3.bf16.msra.mxu1 %v10380_v8  ;;  %9829 = vmatprep.mubr.msk.f32.mxu1 %vm445_vm0, %v11536_v56 }
 0x176   : > { %v10384_v14 = vpack.c.bf16 %v9578_v16, %v1032_v17  ;;  %9736 = vmatmul.mubr.msk.f32.gmra.mrb[114].mxu0 %vm445_vm0, %v398_v7 }
 0x177   : > { %9738 = vmatprep.mubr.msk.f32.mxu0 %vm445_vm0, %v399_v11  ;;  %v13928_v11 = vld [vmem:[#allocation22_spill] sm:$0xff] }
 0x178   : > { %v9581_v19 = vpop.f32.mrb[10].mxu0  ;;  %9830 = vmatmul.mubr.msk.f32.vlgmr.msra.gmra.mrb[6].mxu1 %vm445_vm0, %v11761_v12  ;;  %10385 = vmatprep.subr.bf16.mxu1 %v10384_v14  ;;  %v404_v16 = vmul.f32 %v13928_v11, %v13928_v11 }
 0x179   : > { %v1042_v2 = vpop.f32.mrb[11].mxu0  ;;  %10387 = vmatpush3.bf16.msra.mxu1 %v10384_v14  ;;  %9836 = vmatprep.mubr.msk.f32.mxu1 %vm445_vm0, %v11536_v56 }
 0x17a   : > { %v10388_v5 = vpack.c.bf16 %v9581_v19, %v1042_v2  ;;  %9739 = vmatmul.mubr.msk.f32.gmra.mrb[116].mxu0 %vm445_vm0, %v400_v15  ;;  %v13929_v15 = vld [vmem:[#allocation23_spill] sm:$0xff]  ;;  %v13930_v2 = vld [vmem:[#allocation24_spill] sm:$0xff] }
 0x17b   : > { %9741 = vmatprep.mubr.msk.f32.mxu0 %vm445_vm0, %v401_v18  ;;  %v405_v14 = vmul.f32 %v13929_v15, %v13929_v15 }
 0x17c   : > { %v9584_v7 = vpop.f32.mrb[12].mxu0  ;;  %9837 = vmatmul.mubr.msk.f32.vlgmr.msra.gmra.mrb[8].mxu1 %vm445_vm0, %v11761_v12  ;;  %10389 = vmatprep.subr.bf16.mxu1 %v10388_v5 }
 0x17d   : > { %v1052_v8 = vpop.f32.mrb[13].mxu0  ;;  %10391 = vmatpush3.bf16.msra.mxu1 %v10388_v5  ;;  %9843 = vmatprep.mubr.msk.f32.mxu1 %vm445_vm0, %v11536_v56  ;;  %v406_v5 = vmul.f32 %v13930_v2, %v13930_v2 }
 0x17e   : > { %v10392_v17 = vpack.c.bf16 %v9584_v7, %v1052_v8  ;;  %9742 = vmatmul.mubr.msk.f32.gmra.mrb[118].mxu0 %vm445_vm0, %v402_v4  ;;  %v13931_v4 = vld [vmem:[#allocation25_spill] sm:$0xff] }
 0x17f   : > { %9744 = vmatprep.mubr.msk.f32.mxu0 %vm445_vm0, %v403_v6  ;;  %v407_v8 = vmul.f32 %v13931_v4, %v13931_v4 }
 0x180   : > { %9844 = vmatmul.mubr.msk.f32.vlgmr.msra.gmra.mrb[10].mxu1 %vm445_vm0, %v11761_v12  ;;  %10393 = vmatprep.subr.bf16.mxu1 %v10392_v17  ;;  %v9587_v18 = vpop.f32.mrb[14].mxu0 }
 0x181   : > { %10395 = vmatpush3.bf16.msra.mxu1 %v10392_v17  ;;  %v1062_v19 = vpop.f32.mrb[15].mxu0  ;;  %9850 = vmatprep.mubr.msk.f32.mxu1 %vm445_vm0, %v11536_v56  ;;  %v408_v17 = vmul.f32 %v13932_v43, %v13932_v43 }
 0x182   : > { %v10396_v7 = vpack.c.bf16 %v9587_v18, %v1062_v19  ;;  %9745 = vmatmul.mubr.msk.f32.gmra.mrb[120].mxu0 %vm445_vm0, %v404_v16  ;;  %v410_v18 = vmul.f32 %v11620_v3, %v11620_v3  ;;  %v13936_v3 = vld [vmem:[#allocation16_spill] sm:$0xff] }
 0x183   : > { %9747 = vmatprep.mubr.msk.f32.mxu0 %vm445_vm0, %v405_v14 }
 0x184   : > { %10397 = vmatprep.subr.bf16.mxu1 %v10396_v7  ;;  %v9590_v6 = vpop.f32.mrb[16].mxu0 }
 0x185   : > { %v1072_v44 = vpop.f32.mrb[17].mxu0 }
 0x186   : > { %v10400_v42 = vpack.c.bf16 %v9590_v6, %v1072_v44  ;;  %9748 = vmatmul.mubr.msk.f32.gmra.mrb[122].mxu0 %vm445_vm0, %v406_v5  ;;  %v13933_v6 = vld [vmem:[#allocation13_spill] sm:$0xff] }
 0x187   : > { %9750 = vmatprep.mubr.msk.f32.mxu0 %vm445_vm0, %v407_v8 }
 0x188   : > { %9851 = vmatmul.mubr.msk.f32.vlgmr.msra.gmra.mrb[10].mxu1 %vm445_vm0, %v11761_v12  ;;  %v9593_v16 = vpop.f32.mrb[18].mxu0 }
 0x189   : > { %10399 = vmatpush3.bf16.msra.mxu1 %v10396_v7  ;;  %9857 = vmatprep.mubr.msk.f32.mxu1 %vm445_vm0, %v11536_v56  ;;  %v1082_v14 = vpop.f32.mrb[19].mxu0 }
 0x18a   : > { %10401 = vmatprep.subr.bf16.mxu1 %v10400_v42  ;;  %v10404_v44 = vpack.c.bf16 %v9593_v16, %v1082_v14  ;;  %9751 = vmatmul.mubr.msk.f32.gmra.mrb[124].mxu0 %vm445_vm0, %v408_v17  ;;  %v13935_v14 = vld [vmem:[#allocation15_spill] sm:$0xff] }
 0x18b   : > { %9753 = vmatprep.mubr.msk.f32.mxu0 %vm445_vm0, %v409_v41  ;;  %v13934_v41 = vld [vmem:[#allocation14_spill] sm:$0xff] }
 0x18c   : > { %v9596_v19 = vpop.f32.mrb[20].mxu0 }
 0x18d   : > { %v1092_v5 = vpop.f32.mrb[21].mxu0 }
 0x18e   : > { %v10408_v8 = vpack.c.bf16 %v9596_v19, %v1092_v5  ;;  %9754 = vmatmul.mubr.msk.f32.gmra.mrb[126].mxu0 %vm445_vm0, %v410_v18  ;;  %v416_v5 = vmul.f32 %v11484_v45, %v11307_v9  ;;  %v418_v9 = vmul.f32 %v11494_v47, %v11349_v20  ;;  %v421_v20 = vmul.f32 %v11507_v50, %v11362_v23 }
 0x18f   : > { %9756 = vmatprep.mubr.msk.f32.mxu0 %vm445_vm0, %v13933_v6  ;;  %v423_v23 = vmul.f32 %v11517_v52, %v11372_v25 }
 0x190   : > { %9858 = vmatmul.mubr.msk.f32.vlgmr.msra.gmra.mrb[10].mxu1 %vm445_vm0, %v11761_v12  ;;  %v9599_v7 = vpop.f32.mrb[22].mxu0 }
 0x191   : > { %10403 = vmatpush3.bf16.msra.mxu1 %v10400_v42  ;;  %9864 = vmatprep.mubr.msk.f32.mxu1 %vm445_vm0, %v11536_v56  ;;  %v1102_v16 = vpop.f32.mrb[23].mxu0  ;;  %v417_v42 = vmul.f32 %v11487_v46, %v11320_v13  ;;  %v419_v13 = vmul.f32 %v11497_v48, %v11352_v21 }
 0x192   : > { %10405 = vmatprep.subr.bf16.mxu1 %v10404_v44  ;;  %v10412_v17 = vpack.c.bf16 %v9599_v7, %v1102_v16  ;;  %9757 = vmatmul.mubr.msk.f32.gmra.mrb[128].mxu0 %vm445_vm0, %v13934_v41 }
 0x193   : > { %9759 = vmatprep.mubr.msk.f32.mxu0 %vm445_vm0, %v13935_v14 }
 0x194   : > { %v9602_v18 = vpop.f32.mrb[24].mxu0 }
 0x195   : > { %v1112_v19 = vpop.f32.mrb[25].mxu0 }
 0x196   : > { %v10416_v6 = vpack.c.bf16 %v9602_v18, %v1112_v19  ;;  %9760 = vmatmul.mubr.msk.f32.gmra.mrb[130].mxu0 %vm445_vm0, %v13936_v3  ;;  %v420_v3 = vmul.f32 %v11504_v49, %v11359_v22  ;;  %v422_v22 = vmul.f32 %v11514_v51, %v11369_v24  ;;  %v425_v24 = vmul.f32 %v11527_v54, %v11382_v27 }
 0x197   : > { %9762 = vmatprep.mubr.msk.f32.mxu0 %vm445_vm0, %v13937_v10  ;;  %v427_v27 = vmul.f32 %v11539_v57, %v11392_v29  ;;  %v429_v29 = vmul.f32 %v11551_v59, %v11402_v31  ;;  %v431_v31 = vmul.f32 %v11561_v61, %v11412_v33  ;;  %v433_v33 = vmul.f32 %v11571_v63, %v11422_v35 }
 0x198   : > { %9865 = vmatmul.mubr.msk.f32.vlgmr.msra.gmra.mrb[10].mxu1 %vm445_vm0, %v11761_v12  ;;  %v9605_v7 = vpop.f32.mrb[26].mxu0  ;;  %v435_v35 = vmul.f32 %v11581_v1, %v11432_v37  ;;  %v437_v37 = vmul.f32 %v13929_v15, %v11442_v39 }
 0x199   : > { %10407 = vmatpush3.bf16.msra.mxu1 %v10404_v44  ;;  %9871 = vmatprep.mubr.msk.f32.mxu1 %vm445_vm0, %v11536_v56  ;;  %v1122_v16 = vpop.f32.mrb[27].mxu0 }
 0x19a   : > { %10409 = vmatprep.subr.bf16.mxu1 %v10408_v8  ;;  %v10420_v45 = vpack.c.bf16 %v9605_v7, %v1122_v16  ;;  %9763 = vmatmul.mubr.msk.f32.gmra.mrb[132].mxu0 %vm445_vm0, %v416_v5  ;;  %v13939_v7 = vld [vmem:[#allocation19_spill] sm:$0xff]  ;;  %v13940_v16 = vld [vmem:[#allocation20_spill] sm:$0xff] }
 0x19b   : > { %9765 = vmatprep.mubr.msk.f32.mxu0 %vm445_vm0, %v417_v42 }
 0x19c   : > { %v9608_v10 = vpop.f32.mrb[28].mxu0 }
 0x19d   : > { %v1132_v46 = vpop.f32.mrb[29].mxu0 }
 0x19e   : > { %v10424_v44 = vpack.c.bf16 %v9608_v10, %v1132_v46  ;;  %9766 = vmatmul.mubr.msk.f32.gmra.mrb[134].mxu0 %vm445_vm0, %v418_v9  ;;  %v13942_v10 = vld [vmem:[#allocation21_spill] sm:$0xff] }
 0x19f   : > { %9768 = vmatprep.mubr.msk.f32.mxu0 %vm445_vm0, %v419_v13 }
 0x1a0   : > { %9872 = vmatmul.mubr.msk.f32.vlgmr.msra.gmra.mrb[10].mxu1 %vm445_vm0, %v11761_v12  ;;  %v9611_v47 = vpop.f32.mrb[30].mxu0 }
 0x1a1   : > { %10411 = vmatpush3.bf16.msra.mxu1 %v10408_v8  ;;  %9878 = vmatprep.mubr.msk.f32.mxu1 %vm445_vm0, %v11536_v56  ;;  %v1142_v21 = vpop.f32.mrb[31].mxu0  ;;  %v424_v8 = vmul.f32 %v11524_v53, %v11379_v26  ;;  %v426_v26 = vmul.f32 %v11534_v55, %v11389_v28  ;;  %v428_v28 = vmul.f32 %v11548_v58, %v11399_v30 }
 0x1a2   : > { %10413 = vmatprep.subr.bf16.mxu1 %v10412_v17  ;;  %v10428_v48 = vpack.c.bf16 %v9611_v47, %v1142_v21  ;;  %9769 = vmatmul.mubr.msk.f32.gmra.mrb[136].mxu0 %vm445_vm0, %v420_v3  ;;  %v430_v30 = vmul.f32 %v11558_v60, %v11409_v32  ;;  %v432_v32 = vmul.f32 %v11568_v62, %v11419_v34 }
 0x1a3   : > { %9771 = vmatprep.mubr.msk.f32.mxu0 %vm445_vm0, %v421_v20  ;;  %v434_v34 = vmul.f32 %v11578_v0, %v11429_v36  ;;  %v436_v36 = vmul.f32 %v13928_v11, %v11439_v38  ;;  %v438_v38 = vmul.f32 %v13930_v2, %v11449_v40  ;;  %v440_v40 = vmul.f32 %v13932_v43, %v13939_v7  ;;  %v13943_v43 = vld [vmem:[#allocation28_spill] sm:$0xff] }
 0x1a4   : > { %v9614_v49 = vpop.f32.mrb[32].mxu0  ;;  %v442_v46 = vmul.f32 %v13943_v43, %v13942_v10 }
 0x1a5   : > { %v1152_v50 = vpop.f32.mrb[33].mxu0 }
 0x1a6   : > { %v10432_v41 = vpack.c.bf16 %v9614_v49, %v1152_v50  ;;  %9772 = vmatmul.mubr.msk.f32.gmra.mrb[138].mxu0 %vm445_vm0, %v422_v22 }
 0x1a7   : > { %9774 = vmatprep.mubr.msk.f32.mxu0 %vm445_vm0, %v423_v23 }
 0x1a8   : > { %9879 = vmatmul.mubr.msk.f32.vlgmr.msra.gmra.mrb[10].mxu1 %vm445_vm0, %v11761_v12  ;;  %v9617_v51 = vpop.f32.mrb[34].mxu0 }
 0x1a9   : > { %10415 = vmatpush3.bf16.msra.mxu1 %v10412_v17  ;;  %9885 = vmatprep.mubr.msk.f32.mxu1 %vm445_vm0, %v11536_v56  ;;  %v1162_v25 = vpop.f32.mrb[35].mxu0 }
 0x1aa   : > { %10417 = vmatprep.subr.bf16.mxu1 %v10416_v6  ;;  %v10436_v52 = vpack.c.bf16 %v9617_v51, %v1162_v25  ;;  %9775 = vmatmul.mubr.msk.f32.gmra.mrb[140].mxu0 %vm445_vm0, %v424_v8 }
 0x1ab   : > { %9777 = vmatprep.mubr.msk.f32.mxu0 %vm445_vm0, %v425_v24 }
 0x1ac   : > { %9886 = vmatmul.mubr.msk.f32.vlgmr.msra.gmra.mrb[12].mxu1 %vm445_vm0, %v11761_v12  ;;  %v9620_v53 = vpop.f32.mrb[36].mxu0 }
 0x1ad   : > { %10419 = vmatpush3.bf16.msra.mxu1 %v10416_v6  ;;  %9892 = vmatprep.mubr.msk.f32.mxu1 %vm445_vm0, %v11536_v56  ;;  %v1172_v54 = vpop.f32.mrb[37].mxu0  ;;  %v13938_v6 = vld [vmem:[#allocation18_spill] sm:$0xff] }
 0x1ae   : > { %10421 = vmatprep.subr.bf16.mxu1 %v10420_v45  ;;  %v10440_v55 = vpack.c.bf16 %v9620_v53, %v1172_v54  ;;  %9778 = vmatmul.mubr.msk.f32.gmra.mrb[142].mxu0 %vm445_vm0, %v426_v26  ;;  %v439_v39 = vmul.f32 %v13931_v4, %v13938_v6  ;;  %v13941_v4 = vld [vmem:[#allocation27_spill] sm:$0xff] }
 0x1af   : > { %9780 = vmatprep.mubr.msk.f32.mxu0 %vm445_vm0, %v427_v27  ;;  %v441_v9 = vmul.f32 %v13941_v4, %v13940_v16 }
 0x1b0   : > { %9893 = vmatmul.mubr.msk.f32.vlgmr.msra.gmra.mrb[14].mxu1 %vm445_vm0, %v11761_v12  ;;  %v9623_v57 = vpop.f32.mrb[38].mxu0 }
 0x1b1   : > { %10423 = vmatpush3.bf16.msra.mxu1 %v10420_v45  ;;  %9899 = vmatprep.mubr.msk.f32.mxu1 %vm445_vm0, %v11536_v56  ;;  %v1182_v17 = vpop.f32.mrb[39].mxu0 }
 0x1b2   : > { %10425 = vmatprep.subr.bf16.mxu1 %v10424_v44  ;;  %v10444_v58 = vpack.c.bf16 %v9623_v57, %v1182_v17  ;;  %9781 = vmatmul.mubr.msk.f32.gmra.mrb[144].mxu0 %vm445_vm0, %v428_v28 }
 0x1b3   : > { %9783 = vmatprep.mubr.msk.f32.mxu0 %vm445_vm0, %v429_v29 }
 0x1b4   : > { %9900 = vmatmul.mubr.msk.f32.vlgmr.msra.gmra.mrb[16].mxu1 %vm445_vm0, %v11761_v12  ;;  %v9626_v59 = vpop.f32.mrb[40].mxu0 }
 0x1b5   : > { %10427 = vmatpush3.bf16.msra.mxu1 %v10424_v44  ;;  %9906 = vmatprep.mubr.msk.f32.mxu1 %vm445_vm0, %v11536_v56  ;;  %v1192_v14 = vpop.f32.mrb[41].mxu0 }
 0x1b6   : > { %10429 = vmatprep.subr.bf16.mxu1 %v10428_v48  ;;  %v10448_v60 = vpack.c.bf16 %v9626_v59, %v1192_v14  ;;  %9784 = vmatmul.mubr.msk.f32.gmra.mrb[146].mxu0 %vm445_vm0, %v430_v30 }
 0x1b7   : > { %9786 = vmatprep.mubr.msk.f32.mxu0 %vm445_vm0, %v431_v31 }
 0x1b8   : > { %9907 = vmatmul.mubr.msk.f32.vlgmr.msra.gmra.mrb[18].mxu1 %vm445_vm0, %v11761_v12  ;;  %v9629_v61 = vpop.f32.mrb[42].mxu0 }
 0x1b9   : > { %10431 = vmatpush3.bf16.msra.mxu1 %v10428_v48  ;;  %9913 = vmatprep.mubr.msk.f32.mxu1 %vm445_vm0, %v11536_v56  ;;  %v1202_v18 = vpop.f32.mrb[43].mxu0 }
 0x1ba   : > { %10433 = vmatprep.subr.bf16.mxu1 %v10432_v41  ;;  %v10452_v62 = vpack.c.bf16 %v9629_v61, %v1202_v18  ;;  %9787 = vmatmul.mubr.msk.f32.gmra.mrb[148].mxu0 %vm445_vm0, %v432_v32 }
 0x1bb   : > { %9789 = vmatprep.mubr.msk.f32.mxu0 %vm445_vm0, %v433_v33 }
 0x1bc   : > { %9914 = vmatmul.mubr.msk.f32.vlgmr.msra.gmra.mrb[20].mxu1 %vm445_vm0, %v11761_v12  ;;  %v9632_v63 = vpop.f32.mrb[44].mxu0 }
 0x1bd   : > { %10435 = vmatpush3.bf16.msra.mxu1 %v10432_v41  ;;  %9920 = vmatprep.mubr.msk.f32.mxu1 %vm445_vm0, %v11536_v56  ;;  %v1212_v19 = vpop.f32.mrb[45].mxu0 }
 0x1be   : > { %10437 = vmatprep.subr.bf16.mxu1 %v10436_v52  ;;  %v10456_v0 = vpack.c.bf16 %v9632_v63, %v1212_v19  ;;  %9790 = vmatmul.mubr.msk.f32.gmra.mrb[150].mxu0 %vm445_vm0, %v434_v34 }
 0x1bf   : > { %9792 = vmatprep.mubr.msk.f32.mxu0 %vm445_vm0, %v435_v35 }
 0x1c0   : > { %9921 = vmatmul.mubr.msk.f32.vlgmr.msra.gmra.mrb[22].mxu1 %vm445_vm0, %v11761_v12  ;;  %v9635_v1 = vpop.f32.mrb[46].mxu0 }
 0x1c1   : > { %10439 = vmatpush3.bf16.msra.mxu1 %v10436_v52  ;;  %9927 = vmatprep.mubr.msk.f32.mxu1 %vm445_vm0, %v11536_v56  ;;  %v1222_v5 = vpop.f32.mrb[47].mxu0 }
 0x1c2   : > { %10441 = vmatprep.subr.bf16.mxu1 %v10440_v55  ;;  %v10460_v11 = vpack.c.bf16 %v9635_v1, %v1222_v5  ;;  %9793 = vmatmul.mubr.msk.f32.gmra.mrb[152].mxu0 %vm445_vm0, %v436_v36 }
 0x1c3   : > { %9795 = vmatprep.mubr.msk.f32.mxu0 %vm445_vm0, %v437_v37 }
 0x1c4   : > { %9928 = vmatmul.mubr.msk.f32.vlgmr.msra.gmra.mrb[24].mxu1 %vm445_vm0, %v11761_v12  ;;  %v9638_v15 = vpop.f32.mrb[48].mxu0 }
 0x1c5   : > { %10443 = vmatpush3.bf16.msra.mxu1 %v10440_v55  ;;  %9934 = vmatprep.mubr.msk.f32.mxu1 %vm445_vm0, %v11536_v56  ;;  %v1232_v42 = vpop.f32.mrb[49].mxu0 }
 0x1c6   : > { %10445 = vmatprep.subr.bf16.mxu1 %v10444_v58  ;;  %v10464_v2 = vpack.c.bf16 %v9638_v15, %v1232_v42  ;;  %9796 = vmatmul.mubr.msk.f32.gmra.mrb[154].mxu0 %vm445_vm0, %v438_v38 }
 0x1c7   : > { %9798 = vmatprep.mubr.msk.f32.mxu0 %vm445_vm0, %v439_v39 }
 0x1c8   : > { %9935 = vmatmul.mubr.msk.f32.vlgmr.msra.gmra.mrb[26].mxu1 %vm445_vm0, %v11761_v12  ;;  %v9641_v45 = vpop.f32.mrb[50].mxu0 }
 0x1c9   : > { %10447 = vmatpush3.bf16.msra.mxu1 %v10444_v58  ;;  %9941 = vmatprep.mubr.msk.f32.mxu1 %vm445_vm0, %v11536_v56  ;;  %v1242_v13 = vpop.f32.mrb[51].mxu0 }
 0x1ca   : > { %10449 = vmatprep.subr.bf16.mxu1 %v10448_v60  ;;  %v10468_v3 = vpack.c.bf16 %v9641_v45, %v1242_v13  ;;  %9799 = vmatmul.mubr.msk.f32.gmra.mrb[156].mxu0 %vm445_vm0, %v440_v40 }
 0x1cb   : > { %9801 = vmatprep.mubr.msk.f32.mxu0 %vm445_vm0, %v441_v9 }
 0x1cc   : > { %9942 = vmatmul.mubr.msk.f32.vlgmr.msra.gmra.mrb[28].mxu1 %vm445_vm0, %v11761_v12  ;;  %v9644_v44 = vpop.f32.mrb[52].mxu0 }
 0x1cd   : > { %10451 = vmatpush3.bf16.msra.mxu1 %v10448_v60  ;;  %9948 = vmatprep.mubr.msk.f32.mxu1 %vm445_vm0, %v11536_v56  ;;  %v1252_v20 = vpop.f32.mrb[53].mxu0 }
 0x1ce   : > { %10453 = vmatprep.subr.bf16.mxu1 %v10452_v62  ;;  %v10472_v47 = vpack.c.bf16 %v9644_v44, %v1252_v20  ;;  %9802 = vmatmul.mubr.msk.f32.gmra.mrb[158].mxu0 %vm445_vm0, %v442_v46 }
 0x1d0   : > { %9949 = vmatmul.mubr.msk.f32.vlgmr.msra.gmra.mrb[30].mxu1 %vm445_vm0, %v11761_v12  ;;  %v9647_v21 = vpop.f32.mrb[54].mxu0 }
 0x1d1   : > { %10455 = vmatpush3.bf16.msra.mxu1 %v10452_v62  ;;  %9955 = vmatprep.mubr.msk.f32.mxu1 %vm445_vm0, %v11536_v56  ;;  %v1262_v22 = vpop.f32.mrb[55].mxu0 }
 0x1d2   : > { %10457 = vmatprep.subr.bf16.mxu1 %v10456_v0  ;;  %v10476_v48 = vpack.c.bf16 %v9647_v21, %v1262_v22 }
 0x1d4   : > { %9956 = vmatmul.mubr.msk.f32.vlgmr.msra.gmra.mrb[32].mxu1 %vm445_vm0, %v11761_v12  ;;  %v9650_v23 = vpop.f32.mrb[56].mxu0 }
 0x1d5   : > { %10459 = vmatpush3.bf16.msra.mxu1 %v10456_v0  ;;  %9962 = vmatprep.mubr.msk.f32.mxu1 %vm445_vm0, %v11536_v56  ;;  %v1272_v49 = vpop.f32.mrb[57].mxu0 }
 0x1d6   : > { %10461 = vmatprep.subr.bf16.mxu1 %v10460_v11  ;;  %v10480_v50 = vpack.c.bf16 %v9650_v23, %v1272_v49 }
 0x1d8   : > { %v9653_v8 = vpop.f32.mrb[58].mxu0 }
 0x1d9   : > { %v1282_v41 = vpop.f32.mrb[59].mxu0 }
 0x1da   : > { %v10484_v24 = vpack.c.bf16 %v9653_v8, %v1282_v41 }
 0x1dc   : > { %9963 = vmatmul.mubr.msk.f32.vlgmr.msra.gmra.mrb[32].mxu1 %vm445_vm0, %v11761_v12  ;;  %v9656_v51 = vpop.f32.mrb[60].mxu0 }
 0x1dd   : > { %10463 = vmatpush3.bf16.msra.mxu1 %v10460_v11  ;;  %9969 = vmatprep.mubr.msk.f32.mxu1 %vm445_vm0, %v11536_v56  ;;  %v1292_v25 = vpop.f32.mrb[61].mxu0 }
 0x1de   : > { %10465 = vmatprep.subr.bf16.mxu1 %v10464_v2  ;;  %v10488_v26 = vpack.c.bf16 %v9656_v51, %v1292_v25 }
 0x1e0   : > { %v9659_v52 = vpop.f32.mrb[62].mxu0 }
 0x1e1   : > { %v1302_v27 = vpop.f32.mrb[63].mxu0 }
 0x1e2   : > { %v10492_v53 = vpack.c.bf16 %v9659_v52, %v1302_v27 }
 0x1e4   : > { %9970 = vmatmul.mubr.msk.f32.vlgmr.msra.gmra.mrb[32].mxu1 %vm445_vm0, %v11761_v12  ;;  %v9662_v54 = vpop.f32.mrb[64].mxu0 }
 0x1e5   : > { %10467 = vmatpush3.bf16.msra.mxu1 %v10464_v2  ;;  %9976 = vmatprep.mubr.msk.f32.mxu1 %vm445_vm0, %v11536_v56  ;;  %v1312_v28 = vpop.f32.mrb[65].mxu0 }
 0x1e6   : > { %10469 = vmatprep.subr.bf16.mxu1 %v10468_v3  ;;  %v10496_v55 = vpack.c.bf16 %v9662_v54, %v1312_v28 }
 0x1e8   : > { %v9665_v29 = vpop.f32.mrb[66].mxu0 }
 0x1e9   : > { %v1322_v57 = vpop.f32.mrb[67].mxu0 }
 0x1ea   : > { %v12003_v17 = vpack.c.bf16 %v9665_v29, %v1322_v57 }
 0x1ec   : > { %9977 = vmatmul.mubr.msk.f32.vlgmr.msra.gmra.mrb[32].mxu1 %vm445_vm0, %v11761_v12  ;;  %v9668_v30 = vpop.f32.mrb[68].mxu0 }
 0x1ed   : > { %10471 = vmatpush3.bf16.msra.mxu1 %v10468_v3  ;;  %9983 = vmatprep.mubr.msk.f32.mxu1 %vm445_vm0, %v11536_v56  ;;  %v1332_v58 = vpop.f32.mrb[69].mxu0 }
 0x1ee   : > { %10473 = vmatprep.subr.bf16.mxu1 %v10472_v47  ;;  %v12009_v31 = vpack.c.bf16 %v9668_v30, %v1332_v58 }
 0x1f0   : > { %v9671_v59 = vpop.f32.mrb[70].mxu0 }
 0x1f1   : > { %v1342_v14 = vpop.f32.mrb[71].mxu0 }
 0x1f2   : > { %v12011_v32 = vpack.c.bf16 %v9671_v59, %v1342_v14 }
 0x1f4   : > { %9984 = vmatmul.mubr.msk.f32.vlgmr.msra.gmra.mrb[32].mxu1 %vm445_vm0, %v11761_v12  ;;  %v9674_v60 = vpop.f32.mrb[72].mxu0 }
 0x1f5   : > { %10475 = vmatpush3.bf16.msra.mxu1 %v10472_v47  ;;  %9990 = vmatprep.mubr.msk.f32.mxu1 %vm445_vm0, %v11536_v56  ;;  %v1352_v33 = vpop.f32.mrb[73].mxu0 }
 0x1f6   : > { %10477 = vmatprep.subr.bf16.mxu1 %v10476_v48  ;;  %v12017_v61 = vpack.c.bf16 %v9674_v60, %v1352_v33 }
 0x1f8   : > { %v9677_v18 = vpop.f32.mrb[74].mxu0 }
 0x1f9   : > { %v1362_v34 = vpop.f32.mrb[75].mxu0 }
 0x1fa   : > { %v12019_v62 = vpack.c.bf16 %v9677_v18, %v1362_v34 }
 0x1fc   : > { %9991 = vmatmul.mubr.msk.f32.vlgmr.msra.gmra.mrb[32].mxu1 %vm445_vm0, %v11761_v12  ;;  %v9680_v35 = vpop.f32.mrb[76].mxu0 }
 0x1fd   : > { %10479 = vmatpush3.bf16.msra.mxu1 %v10476_v48  ;;  %9997 = vmatprep.mubr.msk.f32.mxu1 %vm445_vm0, %v11536_v56  ;;  %v1372_v63 = vpop.f32.mrb[77].mxu0  ;;  %v12093_v48 = vld [vmem:[#allocation6] sm:$0xff] }
 0x1fe   : > { %10481 = vmatprep.subr.bf16.mxu1 %v10480_v50  ;;  %v12025_v19 = vpack.c.bf16 %v9680_v35, %v1372_v63 }
 0x200   : > { %9998 = vmatmul.mubr.msk.f32.vlgmr.msra.gmra.mrb[34].mxu1 %vm445_vm0, %v11761_v12  ;;  %v9683_v36 = vpop.f32.mrb[78].mxu0 }
 0x201   : > { %10483 = vmatpush3.bf16.msra.mxu1 %v10480_v50  ;;  %10004 = vmatprep.mubr.msk.f32.mxu1 %vm445_vm0, %v11536_v56  ;;  %v1382_v0 = vpop.f32.mrb[79].mxu0 }
 0x202   : > { %10485 = vmatprep.subr.bf16.mxu1 %v10484_v24  ;;  %v12031_v37 = vpack.c.bf16 %v9683_v36, %v1382_v0 }
 0x204   : > { %10005 = vmatmul.mubr.msk.f32.vlgmr.msra.gmra.mrb[36].mxu1 %vm445_vm0, %v11761_v12  ;;  %v9686_v1 = vpop.f32.mrb[80].mxu0 }
 0x205   : > { %10487 = vmatpush3.bf16.msra.mxu1 %v10484_v24  ;;  %10011 = vmatprep.mubr.msk.f32.mxu1 %vm445_vm0, %v11536_v56  ;;  %v1392_v5 = vpop.f32.mrb[81].mxu0 }
 0x206   : > { %10489 = vmatprep.subr.bf16.mxu1 %v10488_v26  ;;  %v12037_v38 = vpack.c.bf16 %v9686_v1, %v1392_v5 }
 0x208   : > { %10012 = vmatmul.mubr.msk.f32.vlgmr.msra.gmra.mrb[38].mxu1 %vm445_vm0, %v11761_v12  ;;  %v9689_v11 = vpop.f32.mrb[82].mxu0 }
 0x209   : > { %10491 = vmatpush3.bf16.msra.mxu1 %v10488_v26  ;;  %10018 = vmatprep.mubr.msk.f32.mxu1 %vm445_vm0, %v11536_v56  ;;  %v1402_v6 = vpop.f32.mrb[83].mxu0 }
 0x20a   : > { %10493 = vmatprep.subr.bf16.mxu1 %v10492_v53  ;;  %v12043_v39 = vpack.c.bf16 %v9689_v11, %v1402_v6 }
 0x20c   : > { %10019 = vmatmul.mubr.msk.f32.vlgmr.msra.gmra.mrb[40].mxu1 %vm445_vm0, %v11761_v12  ;;  %v9692_v15 = vpop.f32.mrb[84].mxu0 }
 0x20d   : > { %10495 = vmatpush3.bf16.msra.mxu1 %v10492_v53  ;;  %10025 = vmatprep.mubr.msk.f32.mxu1 %vm445_vm0, %v11536_v56  ;;  %v1412_v42 = vpop.f32.mrb[85].mxu0 }
 0x20e   : > { %10497 = vmatprep.subr.bf16.mxu1 %v10496_v55  ;;  %v12049_v7 = vpack.c.bf16 %v9692_v15, %v1412_v42 }
 0x210   : > { %10026 = vmatmul.mubr.msk.f32.vlgmr.msra.gmra.mrb[42].mxu1 %vm445_vm0, %v11761_v12  ;;  %v9695_v40 = vpop.f32.mrb[86].mxu0 }
 0x211   : > { %10499 = vmatpush3.bf16.msra.mxu1 %v10496_v55  ;;  %10032 = vmatprep.mubr.msk.f32.mxu1 %vm445_vm0, %v11536_v56  ;;  %v1422_v2 = vpop.f32.mrb[87].mxu0 }
 0x212   : > { %10501 = vmatprep.subr.bf16.mxu1 %v12003_v17  ;;  %v12056_v16 = vpack.c.bf16 %v9695_v40, %v1422_v2 }
 0x214   : > { %10033 = vmatmul.mubr.msk.f32.vlgmr.msra.gmra.mrb[44].mxu1 %vm445_vm0, %v11761_v12  ;;  %v9698_v4 = vpop.f32.mrb[88].mxu0 }
 0x215   : > { %10503 = vmatpush3.bf16.msra.mxu1 %v12003_v17  ;;  %10039 = vmatprep.mubr.msk.f32.mxu1 %vm445_vm0, %v11536_v56  ;;  %v1432_v9 = vpop.f32.mrb[89].mxu0 }
 0x216   : > { %10505 = vmatprep.subr.bf16.mxu1 %v12009_v31  ;;  %v12064_v45 = vpack.c.bf16 %v9698_v4, %v1432_v9 }
 0x218   : > { %10040 = vmatmul.mubr.msk.f32.vlgmr.msra.gmra.mrb[46].mxu1 %vm445_vm0, %v11761_v12  ;;  %v9701_v13 = vpop.f32.mrb[90].mxu0 }
 0x219   : > { %10507 = vmatpush3.bf16.msra.mxu1 %v12009_v31  ;;  %10046 = vmatprep.mubr.msk.f32.mxu1 %vm445_vm0, %v11536_v56  ;;  %v1442_v10 = vpop.f32.mrb[91].mxu0 }
 0x21a   : > { %10509 = vmatprep.subr.bf16.mxu1 %v12011_v32  ;;  %v12072_v43 = vpack.c.bf16 %v9701_v13, %v1442_v10 }
 0x21c   : > { %10047 = vmatmul.mubr.msk.f32.vlgmr.msra.gmra.mrb[48].mxu1 %vm445_vm0, %v11761_v12  ;;  %v9704_v46 = vpop.f32.mrb[92].mxu0 }
 0x21d   : > { %10511 = vmatpush3.bf16.msra.mxu1 %v12011_v32  ;;  %10053 = vmatprep.mubr.msk.f32.mxu1 %vm445_vm0, %v11536_v56  ;;  %v1452_v3 = vpop.f32.mrb[93].mxu0 }
 0x21e   : > { %10513 = vmatprep.subr.bf16.mxu1 %v12017_v61  ;;  %v12080_v44 = vpack.c.bf16 %v9704_v46, %v1452_v3 }
 0x220   : > { %10054 = vmatmul.mubr.msk.f32.vlgmr.msra.gmra.mrb[50].mxu1 %vm445_vm0, %v11761_v12  ;;  %v9707_v20 = vpop.f32.mrb[94].mxu0 }
 0x221   : > { %10515 = vmatpush3.bf16.msra.mxu1 %v12017_v61  ;;  %10060 = vmatprep.mubr.msk.f32.mxu1 %vm445_vm0, %v11536_v56  ;;  %v1462_v47 = vpop.f32.mrb[95].mxu0 }
 0x222   : > { %10517 = vmatprep.subr.bf16.mxu1 %v12019_v62  ;;  %v12088_v21 = vpack.c.bf16 %v9707_v20, %v1462_v47 }
 0x224   : > { %10061 = vmatmul.mubr.msk.f32.vlgmr.msra.gmra.mrb[52].mxu1 %vm445_vm0, %v11761_v12  ;;  %v9710_v22 = vpop.f32.mrb[96].mxu0 }
 0x225   : > { %10519 = vmatpush3.bf16.msra.mxu1 %v12019_v62  ;;  %10067 = vmatprep.mubr.msk.f32.mxu1 %vm445_vm0, %v12093_v48  ;;  %v1472_v23 = vpop.f32.mrb[97].mxu0 }
 0x226   : > { %10521 = vmatprep.subr.bf16.mxu1 %v12025_v19  ;;  %v12098_v56 = vpack.c.bf16 %v9710_v22, %v1472_v23 }
 0x228   : > { %10068 = vmatmul.mubr.msk.f32.vlgmr.msra.gmra.mrb[54].mxu1 %vm445_vm0, %v11761_v12  ;;  %v9713_v49 = vpop.f32.mrb[98].mxu0 }
 0x229   : > { %10523 = vmatpush3.bf16.msra.mxu1 %v12025_v19  ;;  %10074 = vmatprep.mubr.msk.f32.mxu1 %vm445_vm0, %v12093_v48  ;;  %v1482_v50 = vpop.f32.mrb[99].mxu0 }
 0x22a   : > { %10525 = vmatprep.subr.bf16.mxu1 %v12031_v37  ;;  %v12106_v8 = vpack.c.bf16 %v9713_v49, %v1482_v50 }
 0x22c   : > { %v9716_v41 = vpop.f32.mrb[100].mxu0 }
 0x22d   : > { %v1492_v24 = vpop.f32.mrb[101].mxu0 }
 0x22e   : > { %v12108_v51 = vpack.c.bf16 %v9716_v41, %v1492_v24 }
 0x230   : > { %10075 = vmatmul.mubr.msk.f32.vlgmr.msra.gmra.mrb[54].mxu1 %vm445_vm0, %v11761_v12  ;;  %v9719_v25 = vpop.f32.mrb[102].mxu0 }
 0x231   : > { %10527 = vmatpush3.bf16.msra.mxu1 %v12031_v37  ;;  %10081 = vmatprep.mubr.msk.f32.mxu1 %vm445_vm0, %v12093_v48  ;;  %v1502_v26 = vpop.f32.mrb[103].mxu0 }
 0x232   : > { %10529 = vmatprep.subr.bf16.mxu1 %v12037_v38  ;;  %v12116_v52 = vpack.c.bf16 %v9719_v25, %v1502_v26 }
 0x234   : > { %v9722_v27 = vpop.f32.mrb[104].mxu0 }
 0x235   : > { %v1512_v53 = vpop.f32.mrb[105].mxu0 }
 0x236   : > { %v12118_v54 = vpack.c.bf16 %v9722_v27, %v1512_v53 }
 0x238   : > { %10082 = vmatmul.mubr.msk.f32.vlgmr.msra.gmra.mrb[54].mxu1 %vm445_vm0, %v11761_v12  ;;  %v9725_v28 = vpop.f32.mrb[106].mxu0 }
 0x239   : > { %10531 = vmatpush3.bf16.msra.mxu1 %v12037_v38  ;;  %10088 = vmatprep.mubr.msk.f32.mxu1 %vm445_vm0, %v12093_v48  ;;  %v1522_v55 = vpop.f32.mrb[107].mxu0 }
 0x23a   : > { %10533 = vmatprep.subr.bf16.mxu1 %v12043_v39  ;;  %v12126_v29 = vpack.c.bf16 %v9725_v28, %v1522_v55 }
 0x23c   : > { %v9728_v57 = vpop.f32.mrb[108].mxu0 }
 0x23d   : > { %v1532_v17 = vpop.f32.mrb[109].mxu0 }
 0x23e   : > { %v12128_v30 = vpack.c.bf16 %v9728_v57, %v1532_v17  ;;  %v12250_v17 = vld [vmem:[#allocation6 + $0x8] sm:$0xff] }
 0x23f   : > { %v12130_v58 = vpop.f32.mrb[0].mxu1 }
 0x240   : > { %v12132_v31 = vpop.f32.mrb[1].mxu1  ;;  %10089 = vmatmul.mubr.msk.f32.vlgmr.msra.gmra.mrb[54].mxu1 %vm445_vm0, %v11761_v12 }
 0x241   : > { %10535 = vmatpush3.bf16.msra.mxu1 %v12043_v39  ;;  %10095 = vmatprep.mubr.msk.f32.mxu1 %vm445_vm0, %v12093_v48  ;;  %v9731_v59 = vpop.f32.mrb[110].mxu0 }
 0x242   : > { %10537 = vmatprep.subr.bf16.mxu1 %v12049_v7  ;;  %v1542_v14 = vpop.f32.mrb[111].mxu0 }
 0x243   : > { %v9817_v32 = vpop.f32.mrb[2].mxu1  ;;  %v12140_v60 = vpack.c.bf16 %v9731_v59, %v1542_v14 }
 0x244   : > { %v12143_v33 = vadd.f32 %v9817_v32, %v12130_v58  ;;  %v1940_v61 = vpop.f32.mrb[3].mxu1 }
 0x245   : > { %v12146_v18 = vadd.f32 %v1940_v61, %v12132_v31  ;;  %v9734_v34 = vpop.f32.mrb[112].mxu0 }
 0x246   : > { %v1552_v62 = vpop.f32.mrb[113].mxu0 }
 0x247   : > { %v9824_v35 = vpop.f32.mrb[4].mxu1  ;;  %v12148_v63 = vpack.c.bf16 %v9734_v34, %v1552_v62 }
 0x248   : > { %v12151_v19 = vadd.f32 %v9824_v35, %v12143_v33  ;;  %v2015_v36 = vpop.f32.mrb[5].mxu1  ;;  %10096 = vmatmul.mubr.msk.f32.vlgmr.msra.gmra.mrb[54].mxu1 %vm445_vm0, %v11761_v12 }
 0x249   : > { %v12156_v0 = vadd.f32 %v12146_v18, %v2015_v36  ;;  %10539 = vmatpush3.bf16.msra.mxu1 %v12049_v7  ;;  %10102 = vmatprep.mubr.msk.f32.mxu1 %vm445_vm0, %v12093_v48  ;;  %v9737_v37 = vpop.f32.mrb[114].mxu0 }
 0x24a   : > { %10541 = vmatprep.subr.bf16.mxu1 %v12056_v16  ;;  %v1562_v1 = vpop.f32.mrb[115].mxu0 }
 0x24b   : > { %v9831_v5 = vpop.f32.mrb[6].mxu1  ;;  %v12162_v38 = vpack.c.bf16 %v9737_v37, %v1562_v1 }
 0x24c   : > { %v12165_v11 = vadd.f32 %v9831_v5, %v12151_v19  ;;  %v2090_v6 = vpop.f32.mrb[7].mxu1 }
 0x24d   : > { %v12168_v39 = vadd.f32 %v12156_v0, %v2090_v6  ;;  %v9740_v15 = vpop.f32.mrb[116].mxu0 }
 0x24e   : > { %v1572_v42 = vpop.f32.mrb[117].mxu0 }
 0x24f   : > { %v9838_v7 = vpop.f32.mrb[8].mxu1  ;;  %v12170_v40 = vpack.c.bf16 %v9740_v15, %v1572_v42 }
 0x250   : > { %v12173_v2 = vadd.f32 %v9838_v7, %v12165_v11  ;;  %v2165_v4 = vpop.f32.mrb[9].mxu1  ;;  %10103 = vmatmul.mubr.msk.f32.vlgmr.msra.gmra.mrb[54].mxu1 %vm445_vm0, %v11761_v12 }
 0x251   : > { %v12178_v9 = vadd.f32 %v12168_v39, %v2165_v4  ;;  %10543 = vmatpush3.bf16.msra.mxu1 %v12056_v16  ;;  %10109 = vmatprep.mubr.msk.f32.mxu1 %vm445_vm0, %v12093_v48  ;;  %v9743_v13 = vpop.f32.mrb[118].mxu0 }
 0x252   : > { %10545 = vmatprep.subr.bf16.mxu1 %v12064_v45  ;;  %v1582_v10 = vpop.f32.mrb[119].mxu0 }
 0x253   : > { %v12184_v46 = vpack.c.bf16 %v9743_v13, %v1582_v10 }
 0x254   : > { %10110 = vmatmul.mubr.msk.f32.vlgmr.msra.gmra.mrb[56].mxu1 %vm445_vm0, %v11761_v12 }
 0x255   : > { %10547 = vmatpush3.bf16.msra.mxu1 %v12064_v45  ;;  %10116 = vmatprep.mubr.msk.f32.mxu1 %vm445_vm0, %v12093_v48  ;;  %v9746_v3 = vpop.f32.mrb[120].mxu0 }
 0x256   : > { %10549 = vmatprep.subr.bf16.mxu1 %v12072_v43  ;;  %v1592_v16 = vpop.f32.mrb[121].mxu0 }
 0x257   : > { %v12192_v20 = vpack.c.bf16 %v9746_v3, %v1592_v16 }
 0x258   : > { %10117 = vmatmul.mubr.msk.f32.vlgmr.msra.gmra.mrb[58].mxu1 %vm445_vm0, %v11761_v12 }
 0x259   : > { %10551 = vmatpush3.bf16.msra.mxu1 %v12072_v43  ;;  %10123 = vmatprep.mubr.msk.f32.mxu1 %vm445_vm0, %v12093_v48  ;;  %v9749_v47 = vpop.f32.mrb[122].mxu0 }
 0x25a   : > { %10553 = vmatprep.subr.bf16.mxu1 %v12080_v44  ;;  %v1602_v45 = vpop.f32.mrb[123].mxu0 }
 0x25b   : > { %v12200_v22 = vpack.c.bf16 %v9749_v47, %v1602_v45 }
 0x25c   : > { %10124 = vmatmul.mubr.msk.f32.vlgmr.msra.gmra.mrb[60].mxu1 %vm445_vm0, %v11761_v12 }
 0x25d   : > { %10555 = vmatpush3.bf16.msra.mxu1 %v12080_v44  ;;  %10130 = vmatprep.mubr.msk.f32.mxu1 %vm445_vm0, %v12093_v48  ;;  %v9752_v23 = vpop.f32.mrb[124].mxu0 }
 0x25e   : > { %10557 = vmatprep.subr.bf16.mxu1 %v12088_v21  ;;  %v1612_v43 = vpop.f32.mrb[125].mxu0 }
 0x25f   : > { %v12208_v49 = vpack.c.bf16 %v9752_v23, %v1612_v43 }
 0x260   : > { %10131 = vmatmul.mubr.msk.f32.vlgmr.msra.gmra.mrb[62].mxu1 %vm445_vm0, %v11761_v12 }
 0x261   : > { %10559 = vmatpush3.bf16.msra.mxu1 %v12088_v21  ;;  %10137 = vmatprep.mubr.msk.f32.mxu1 %vm445_vm0, %v12093_v48  ;;  %v9755_v50 = vpop.f32.mrb[126].mxu0 }
 0x262   : > { %10561 = vmatprep.subr.bf16.mxu1 %v12098_v56  ;;  %v1622_v44 = vpop.f32.mrb[127].mxu0 }
 0x263   : > { %v12216_v41 = vpack.c.bf16 %v9755_v50, %v1622_v44 }
 0x264   : > { %10138 = vmatmul.mubr.msk.f32.vlgmr.msra.gmra.mrb[64].mxu1 %vm445_vm0, %v11761_v12 }
 0x265   : > { %10563 = vmatpush3.bf16.msra.mxu1 %v12098_v56  ;;  %10144 = vmatprep.mubr.msk.f32.mxu1 %vm445_vm0, %v12093_v48  ;;  %v9758_v24 = vpop.f32.mrb[128].mxu0 }
 0x266   : > { %10565 = vmatprep.subr.bf16.mxu1 %v12106_v8  ;;  %v1632_v21 = vpop.f32.mrb[129].mxu0 }
 0x267   : > { %v12224_v25 = vpack.c.bf16 %v9758_v24, %v1632_v21 }
 0x268   : > { %10145 = vmatmul.mubr.msk.f32.vlgmr.msra.gmra.mrb[66].mxu1 %vm445_vm0, %v11761_v12 }
 0x269   : > { %10567 = vmatpush3.bf16.msra.mxu1 %v12106_v8  ;;  %10151 = vmatprep.mubr.msk.f32.mxu1 %vm445_vm0, %v12093_v48  ;;  %v9761_v26 = vpop.f32.mrb[130].mxu0 }
 0x26a   : > { %10569 = vmatprep.subr.bf16.mxu1 %v12108_v51  ;;  %v1642_v56 = vpop.f32.mrb[131].mxu0 }
 0x26b   : > { %v12232_v27 = vpack.c.bf16 %v9761_v26, %v1642_v56 }
 0x26c   : > { %10152 = vmatmul.mubr.msk.f32.vlgmr.msra.gmra.mrb[68].mxu1 %vm445_vm0, %v11761_v12 }
 0x26d   : > { %10571 = vmatpush3.bf16.msra.mxu1 %v12108_v51  ;;  %10158 = vmatprep.mubr.msk.f32.mxu1 %vm445_vm0, %v12093_v48  ;;  %v9764_v53 = vpop.f32.mrb[132].mxu0 }
 0x26e   : > { %10573 = vmatprep.subr.bf16.mxu1 %v12116_v52  ;;  %v1652_v8 = vpop.f32.mrb[133].mxu0 }
 0x26f   : > { %v12240_v28 = vpack.c.bf16 %v9764_v53, %v1652_v8 }
 0x270   : > { %10159 = vmatmul.mubr.msk.f32.vlgmr.msra.gmra.mrb[70].mxu1 %vm445_vm0, %v11761_v12 }
 0x271   : > { %10575 = vmatpush3.bf16.msra.mxu1 %v12116_v52  ;;  %10165 = vmatprep.mubr.msk.f32.mxu1 %vm445_vm0, %v12093_v48  ;;  %v9767_v55 = vpop.f32.mrb[134].mxu0 }
 0x272   : > { %10577 = vmatprep.subr.bf16.mxu1 %v12118_v54  ;;  %v1662_v51 = vpop.f32.mrb[135].mxu0 }
 0x273   : > { %v12248_v57 = vpack.c.bf16 %v9767_v55, %v1662_v51 }
 0x274   : > { %10166 = vmatmul.mubr.msk.f32.vlgmr.msra.gmra.mrb[72].mxu1 %vm445_vm0, %v12250_v17 }
 0x275   : > { %10579 = vmatpush3.bf16.msra.mxu1 %v12118_v54  ;;  %10172 = vmatprep.mubr.msk.f32.mxu1 %vm445_vm0, %v12093_v48  ;;  %v9770_v12 = vpop.f32.mrb[136].mxu0 }
 0x276   : > { %10581 = vmatprep.subr.bf16.mxu1 %v12126_v29  ;;  %v1672_v52 = vpop.f32.mrb[137].mxu0 }
 0x277   : > { %v12258_v59 = vpack.c.bf16 %v9770_v12, %v1672_v52 }
 0x278   : > { %10173 = vmatmul.mubr.msk.f32.vlgmr.msra.gmra.mrb[74].mxu1 %vm445_vm0, %v12250_v17 }
 0x279   : > { %10583 = vmatpush3.bf16.msra.mxu1 %v12126_v29  ;;  %10179 = vmatprep.mubr.msk.f32.mxu1 %vm445_vm0, %v12093_v48  ;;  %v9773_v14 = vpop.f32.mrb[138].mxu0 }
 0x27a   : > { %10585 = vmatprep.subr.bf16.mxu1 %v12128_v30  ;;  %v1682_v54 = vpop.f32.mrb[139].mxu0 }
 0x27b   : > { %v9880_v32 = vpop.f32.mrb[10].mxu1  ;;  %v12266_v61 = vpack.c.bf16 %v9773_v14, %v1682_v54 }
 0x27c   : > { %v12269_v34 = vadd.f32 %v9880_v32, %v12173_v2  ;;  %v2615_v62 = vpop.f32.mrb[11].mxu1  ;;  %10180 = vmatmul.mubr.msk.f32.vlgmr.msra.gmra.mrb[76].mxu1 %vm445_vm0, %v12250_v17 }
 0x27d   : > { %v12274_v35 = vadd.f32 %v12178_v9, %v2615_v62  ;;  %10587 = vmatpush3.bf16.msra.mxu1 %v12128_v30  ;;  %10186 = vmatprep.mubr.msk.f32.mxu1 %vm445_vm0, %v12093_v48  ;;  %v9776_v29 = vpop.f32.mrb[140].mxu0 }
 0x27e   : > { %13944 = vst [vmem:[#allocation22_spill] sm:$0xff] %v12269_v34  ;;  %10589 = vmatprep.subr.bf16.mxu1 %v12140_v60  ;;  %v1692_v36 = vpop.f32.mrb[141].mxu0 }
 0x27f   : > { %13945 = vst [vmem:[#allocation23_spill] sm:$0xff] %v12274_v35  ;;  %v9887_v37 = vpop.f32.mrb[12].mxu1  ;;  %v12280_v1 = vpack.c.bf16 %v9776_v29, %v1692_v36 }
 0x280   : > { %v12283_v5 = vadd.f32 %v12269_v34, %v9887_v37  ;;  %v2690_v6 = vpop.f32.mrb[13].mxu1 }
 0x281   : > { %v12286_v15 = vadd.f32 %v12274_v35, %v2690_v6  ;;  %v9779_v42 = vpop.f32.mrb[142].mxu0 }
 0x282   : > { %13946 = vst [vmem:[#allocation24_spill] sm:$0xff] %v12283_v5  ;;  %v1702_v7 = vpop.f32.mrb[143].mxu0 }
 0x283   : > { %13947 = vst [vmem:[#allocation25_spill] sm:$0xff] %v12286_v15  ;;  %v9894_v30 = vpop.f32.mrb[14].mxu1  ;;  %v12288_v4 = vpack.c.bf16 %v9779_v42, %v1702_v7 }
 0x284   : > { %v12291_v13 = vadd.f32 %v9894_v30, %v12283_v5  ;;  %v2765_v10 = vpop.f32.mrb[15].mxu1  ;;  %10187 = vmatmul.mubr.msk.f32.vlgmr.msra.gmra.mrb[76].mxu1 %vm445_vm0, %v12250_v17 }
 0x285   : > { %v12296_v3 = vadd.f32 %v12286_v15, %v2765_v10  ;;  %10591 = vmatpush3.bf16.msra.mxu1 %v12140_v60  ;;  %10193 = vmatprep.mubr.msk.f32.mxu1 %vm445_vm0, %v12093_v48  ;;  %v9782_v16 = vpop.f32.mrb[144].mxu0 }
 0x286   : > { %13948 = vst [vmem:[#allocation26_spill] sm:$0xff] %v12291_v13  ;;  %10593 = vmatprep.subr.bf16.mxu1 %v12148_v63  ;;  %v1712_v47 = vpop.f32.mrb[145].mxu0 }
 0x287   : > { %13949 = vst [vmem:[#allocation13_spill] sm:$0xff] %v12296_v3  ;;  %v9901_v45 = vpop.f32.mrb[16].mxu1  ;;  %v12302_v23 = vpack.c.bf16 %v9782_v16, %v1712_v47 }
 0x288   : > { %v12305_v43 = vadd.f32 %v9901_v45, %v12291_v13  ;;  %v2840_v50 = vpop.f32.mrb[17].mxu1 }
 0x289   : > { %v12308_v44 = vadd.f32 %v12296_v3, %v2840_v50  ;;  %v9785_v24 = vpop.f32.mrb[146].mxu0 }
 0x28a   : > { %13950 = vst [vmem:[#allocation14_spill] sm:$0xff] %v12305_v43  ;;  %v1722_v21 = vpop.f32.mrb[147].mxu0 }
 0x28b   : > { %v9908_v60 = vpop.f32.mrb[18].mxu1  ;;  %v12310_v26 = vpack.c.bf16 %v9785_v24, %v1722_v21 }
 0x28c   : > { %v12313_v56 = vadd.f32 %v9908_v60, %v12305_v43  ;;  %v2915_v53 = vpop.f32.mrb[19].mxu1  ;;  %10194 = vmatmul.mubr.msk.f32.vlgmr.msra.gmra.mrb[76].mxu1 %vm445_vm0, %v12250_v17 }
 0x28d   : > { %v12318_v8 = vadd.f32 %v12308_v44, %v2915_v53  ;;  %10595 = vmatpush3.bf16.msra.mxu1 %v12148_v63  ;;  %10200 = vmatprep.mubr.msk.f32.mxu1 %vm445_vm0, %v12093_v48  ;;  %v9788_v55 = vpop.f32.mrb[148].mxu0 }
 0x28e   : > { %10597 = vmatprep.subr.bf16.mxu1 %v12162_v38  ;;  %v1732_v51 = vpop.f32.mrb[149].mxu0 }
 0x28f   : > { %v9915_v12 = vpop.f32.mrb[20].mxu1  ;;  %v12324_v52 = vpack.c.bf16 %v9788_v55, %v1732_v51 }
 0x290   : > { %v12327_v14 = vadd.f32 %v9915_v12, %v12313_v56  ;;  %v2990_v54 = vpop.f32.mrb[21].mxu1 }
 0x291   : > { %v12330_v32 = vadd.f32 %v12318_v8, %v2990_v54  ;;  %v9791_v62 = vpop.f32.mrb[150].mxu0 }
 0x292   : > { %v1742_v29 = vpop.f32.mrb[151].mxu0  ;;  %v12334_v63 = vsub.f32 %v12327_v14, %v12130_v58  ;;  %v12338_v36 = vsub.f32 %v12327_v14, %v12143_v33  ;;  %v12346_v42 = vsub.f32 %v12327_v14, %v12151_v19  ;;  %v12382_v24 = vsub.f32 %v12327_v14, %v12165_v11 }
 0x293   : > { %v12340_v37 = vpop.f32.mrb[22].mxu1  ;;  %v12342_v6 = vpack.c.bf16 %v9791_v62, %v1742_v29  ;;  %v12354_v58 = vsub.f32 %v12330_v32, %v12132_v31  ;;  %v12358_v33 = vsub.f32 %v12330_v32, %v12146_v18  ;;  %v12365_v30 = vsub.f32 %v12330_v32, %v12156_v0 }
 0x294   : > { %v12348_v7 = vpop.f32.mrb[23].mxu1  ;;  %10201 = vmatmul.mubr.msk.f32.vlgmr.msra.gmra.mrb[76].mxu1 %vm445_vm0, %v12250_v17  ;;  %v12369_v10 = vsub.f32 %v12330_v32, %v12168_v39  ;;  %v12386_v39 = vsub.f32 %v12330_v32, %v12178_v9  ;;  %v12392_v53 = vsub.f32 %v12327_v14, %v12173_v2 }
 0x295   : > { %10599 = vmatpush3.bf16.msra.mxu1 %v12162_v38  ;;  %10207 = vmatprep.mubr.msk.f32.mxu1 %vm445_vm0, %v12093_v48  ;;  %v9794_v19 = vpop.f32.mrb[152].mxu0 }
 0x296   : > { %10601 = vmatprep.subr.bf16.mxu1 %v12170_v40  ;;  %v1752_v31 = vpop.f32.mrb[153].mxu0 }
 0x297   : > { %v9929_v16 = vpop.f32.mrb[24].mxu1  ;;  %v12372_v18 = vpack.c.bf16 %v9794_v19, %v1752_v31 }
 0x298   : > { %v12375_v38 = vadd.f32 %v9929_v16, %v12340_v37  ;;  %v3140_v47 = vpop.f32.mrb[25].mxu1 }
 0x299   : > { %v12378_v45 = vadd.f32 %v3140_v47, %v12348_v7  ;;  %v9797_v50 = vpop.f32.mrb[154].mxu0 }
 0x29a   : > { %v1762_v0 = vpop.f32.mrb[155].mxu0 }
 0x29b   : > { %v9936_v21 = vpop.f32.mrb[26].mxu1  ;;  %v12388_v60 = vpack.c.bf16 %v9797_v50, %v1762_v0 }
 0x29c   : > { %v12395_v55 = vadd.f32 %v9936_v21, %v12375_v38  ;;  %v3215_v51 = vpop.f32.mrb[27].mxu1  ;;  %10208 = vmatmul.mubr.msk.f32.vlgmr.msra.gmra.mrb[76].mxu1 %vm445_vm0, %v12250_v17 }
 0x29d   : > { %v12400_v11 = vadd.f32 %v12378_v45, %v3215_v51  ;;  %10603 = vmatpush3.bf16.msra.mxu1 %v12170_v40  ;;  %10214 = vmatprep.mubr.msk.f32.mxu1 %vm445_vm0, %v12093_v48  ;;  %v9800_v9 = vpop.f32.mrb[156].mxu0 }
 0x29e   : > { %10605 = vmatprep.subr.bf16.mxu1 %v12184_v46  ;;  %v1772_v2 = vpop.f32.mrb[157].mxu0 }
 0x29f   : > { %v9943_v12 = vpop.f32.mrb[28].mxu1  ;;  %v12406_v54 = vpack.c.bf16 %v9800_v9, %v1772_v2 }
 0x2a0   : > { %v12409_v62 = vadd.f32 %v9943_v12, %v12395_v55  ;;  %v3290_v29 = vpop.f32.mrb[29].mxu1 }
 0x2a1   : > { %13951 = vst [vmem:[#allocation15_spill] sm:$0xff] %v12406_v54  ;;  %v12412_v19 = vadd.f32 %v12400_v11, %v3290_v29  ;;  %v9803_v31 = vpop.f32.mrb[158].mxu0 }
 0x2a2   : > { %v1782_v16 = vpop.f32.mrb[159].mxu0 }
 0x2a3   : > { %v9950_v40 = vpop.f32.mrb[30].mxu1  ;;  %v12414_v47 = vpack.c.bf16 %v9803_v31, %v1782_v16 }
 0x2a4   : > { %v12417_v50 = vadd.f32 %v9950_v40, %v12409_v62  ;;  %v3365_v0 = vpop.f32.mrb[31].mxu1  ;;  %10215 = vmatmul.mubr.msk.f32.vlgmr.msra.gmra.mrb[76].mxu1 %vm445_vm0, %v12250_v17 }
 0x2a5   : > { %13952 = vst [vmem:[#allocation16_spill] sm:$0xff] %v12414_v47  ;;  %v12422_v21 = vadd.f32 %v12412_v19, %v3365_v0  ;;  %10607 = vmatpush3.bf16.msra.mxu1 %v12184_v46  ;;  %10221 = vmatprep.mubr.msk.f32.mxu1 %vm445_vm0, %v12093_v48 }
 0x2a6   : > { %10609 = vmatprep.subr.bf16.mxu1 %v12192_v20 }
 0x2a8   : > { %10222 = vmatmul.mubr.msk.f32.vlgmr.msra.gmra.mrb[78].mxu1 %vm445_vm0, %v12250_v17 }
 0x2a9   : > { %10611 = vmatpush3.bf16.msra.mxu1 %v12192_v20  ;;  %10228 = vmatprep.mubr.msk.f32.mxu1 %vm445_vm0, %v12093_v48  ;;  %v12489_v20 = vmul.f32 0.0001079797, %v12269_v34 }
 0x2aa   : > { %10613 = vmatprep.subr.bf16.mxu1 %v12200_v22 }
 0x2ab   : > { %13953 = vst [vmem:[#allocation17_spill] sm:$0xff] %v12489_v20 }
 0x2ac   : > { %10229 = vmatmul.mubr.msk.f32.vlgmr.msra.gmra.mrb[80].mxu1 %vm445_vm0, %v12250_v17 }
 0x2ad   : > { %10615 = vmatpush3.bf16.msra.mxu1 %v12200_v22  ;;  %10235 = vmatprep.mubr.msk.f32.mxu1 %vm445_vm0, %v12093_v48 }
 0x2ae   : > { %10617 = vmatprep.subr.bf16.mxu1 %v12208_v49 }
 0x2b0   : > { %10236 = vmatmul.mubr.msk.f32.vlgmr.msra.gmra.mrb[82].mxu1 %vm445_vm0, %v12250_v17 }
 0x2b1   : > { %10619 = vmatpush3.bf16.msra.mxu1 %v12208_v49  ;;  %10242 = vmatprep.mubr.msk.f32.mxu1 %vm445_vm0, %v12093_v48 }
 0x2b2   : > { %10621 = vmatprep.subr.bf16.mxu1 %v12216_v41 }
 0x2b4   : > { %10243 = vmatmul.mubr.msk.f32.vlgmr.msra.gmra.mrb[84].mxu1 %vm445_vm0, %v12250_v17 }
 0x2b5   : > { %10623 = vmatpush3.bf16.msra.mxu1 %v12216_v41  ;;  %10249 = vmatprep.mubr.msk.f32.mxu1 %vm445_vm0, %v12093_v48  ;;  %v12497_v41 = vmul.f32 0.0001079797, %v12274_v35 }
 0x2b6   : > { %10625 = vmatprep.subr.bf16.mxu1 %v12224_v25 }
 0x2b7   : > { %13955 = vst [vmem:[#allocation19_spill] sm:$0xff] %v12497_v41 }
 0x2b8   : > { %10250 = vmatmul.mubr.msk.f32.vlgmr.msra.gmra.mrb[86].mxu1 %vm445_vm0, %v12250_v17 }
 0x2b9   : > { %10627 = vmatpush3.bf16.msra.mxu1 %v12224_v25  ;;  %10256 = vmatprep.mubr.msk.f32.mxu1 %vm445_vm0, %v12093_v48 }
 0x2ba   : > { %10629 = vmatprep.subr.bf16.mxu1 %v12232_v27 }
 0x2bc   : > { %10257 = vmatmul.mubr.msk.f32.vlgmr.msra.gmra.mrb[88].mxu1 %vm445_vm0, %v12250_v17 }
 0x2bd   : > { %10631 = vmatpush3.bf16.msra.mxu1 %v12232_v27  ;;  %10263 = vmatprep.mubr.msk.f32.mxu1 %vm445_vm0, %v12093_v48 }
 0x2be   : > { %10633 = vmatprep.subr.bf16.mxu1 %v12240_v28 }
 0x2c0   : > { %10264 = vmatmul.mubr.msk.f32.vlgmr.msra.gmra.mrb[90].mxu1 %vm445_vm0, %v12250_v17 }
 0x2c1   : > { %10635 = vmatpush3.bf16.msra.mxu1 %v12240_v28  ;;  %10270 = vmatprep.mubr.msk.f32.mxu1 %vm445_vm0, %v12093_v48 }
 0x2c2   : > { %10637 = vmatprep.subr.bf16.mxu1 %v12248_v57 }
 0x2c4   : > { %10271 = vmatmul.mubr.msk.f32.vlgmr.msra.gmra.mrb[92].mxu1 %vm445_vm0, %v12250_v17 }
 0x2c5   : > { %10639 = vmatpush3.bf16.msra.mxu1 %v12248_v57  ;;  %10277 = vmatprep.mubr.msk.f32.mxu1 %vm445_vm0, %v12093_v48 }
 0x2c6   : > { %10641 = vmatprep.subr.bf16.mxu1 %v12258_v59 }
 0x2c8   : > { %10278 = vmatmul.mubr.msk.f32.vlgmr.msra.gmra.mrb[94].mxu1 %vm445_vm0, %v12250_v17 }
 0x2c9   : > { %10643 = vmatpush3.bf16.msra.mxu1 %v12258_v59  ;;  %10284 = vmatprep.mubr.msk.f32.mxu1 %vm445_vm0, %v12093_v48 }
 0x2ca   : > { %10645 = vmatprep.subr.bf16.mxu1 %v12266_v61 }
 0x2cc   : > { %10285 = vmatmul.mubr.msk.f32.vlgmr.msra.gmra.mrb[96].mxu1 %vm445_vm0, %v12250_v17 }
 0x2cd   : > { %10647 = vmatpush3.bf16.msra.mxu1 %v12266_v61  ;;  %10291 = vmatprep.mubr.msk.f32.mxu1 %vm445_vm0, %v12093_v48 }
 0x2ce   : > { %10649 = vmatprep.subr.bf16.mxu1 %v12280_v1 }
 0x2cf   : > { %v9992_v46 = vpop.f32.mrb[32].mxu1 }
 0x2d0   : > { %v12492_v22 = vadd.f32 %v9992_v46, %v12417_v50  ;;  %v3815_v49 = vpop.f32.mrb[33].mxu1  ;;  %10292 = vmatmul.mubr.msk.f32.vlgmr.msra.gmra.mrb[98].mxu1 %vm445_vm0, %v12250_v17 }
 0x2d1   : > { %v12500_v25 = vadd.f32 %v12422_v21, %v3815_v49  ;;  %10651 = vmatpush3.bf16.msra.mxu1 %v12280_v1  ;;  %10298 = vmatprep.mubr.msk.f32.mxu1 %vm445_vm0, %v12093_v48  ;;  %v12551_v49 = vmul.f32 0.0001079797, %v12283_v5 }
 0x2d2   : > { %13954 = vst [vmem:[#allocation18_spill] sm:$0xff] %v12492_v22  ;;  %v12506_v27 = vmul.f32 0.0001079797, %v12492_v22  ;;  %10653 = vmatprep.subr.bf16.mxu1 %v12288_v4  ;;  %v12511_v28 = vmul.f32 %v12492_v22, %v12489_v20 }
 0x2d3   : > { %13956 = vst [vmem:[#allocation20_spill] sm:$0xff] %v12500_v25  ;;  %v12514_v57 = vmul.f32 0.0001079797, %v12500_v25  ;;  %v9999_v59 = vpop.f32.mrb[34].mxu1  ;;  %v12518_v61 = vmul.f32 %v12500_v25, %v12497_v41  ;;  %13969 = vst [vmem:[#allocation38_spill] sm:$0xff] %v12551_v49 }
 0x2d4   : > { %13957 = vst [vmem:[#allocation27_spill] sm:$0xff] %v12506_v27  ;;  %13958 = vst [vmem:[#allocation21_spill] sm:$0xff] %v12511_v28  ;;  %v12521_v1 = vadd.f32 %v12492_v22, %v9999_v59  ;;  %v3890_v51 = vpop.f32.mrb[35].mxu1  ;;  %v12525_v9 = vmul.f32 %v12269_v34, %v12506_v27  ;;  %v12532_v12 = vmul.f32 %v12506_v27, %v12489_v20  ;;  %v12692_v27 = vmul.f32 0.0001079797, %v12313_v56 }
 0x2d5   : > { %13959 = vst [vmem:[#allocation28_spill] sm:$0xff] %v12514_v57  ;;  %13960 = vst [vmem:[#allocation29_spill] sm:$0xff] %v12518_v61  ;;  %v12528_v2 = vadd.f32 %v12500_v25, %v3890_v51  ;;  %v12539_v31 = vmul.f32 %v12274_v35, %v12514_v57  ;;  %v12543_v40 = vmul.f32 %v12514_v57, %v12497_v41  ;;  %v12605_v25 = vmul.f32 0.0001079797, %v12291_v13 }
 0x2d6   : > { %13961 = vst [vmem:[#allocation30_spill] sm:$0xff] %v12521_v1  ;;  %13962 = vst [vmem:[#allocation31_spill] sm:$0xff] %v12525_v9  ;;  %v12535_v29 = vmul.f32 0.0001079797, %v12521_v1  ;;  %v12569_v28 = vmul.f32 %v12551_v49, %v12521_v1  ;;  %v12579_v9 = vmul.f32 0.0001079797, %v12286_v15 }
 0x2d7   : > { %13963 = vst [vmem:[#allocation32_spill] sm:$0xff] %v12528_v2  ;;  %13964 = vst [vmem:[#allocation33_spill] sm:$0xff] %v12532_v12  ;;  %v10006_v16 = vpop.f32.mrb[36].mxu1  ;;  %v12554_v59 = vmul.f32 0.0001079797, %v12528_v2 }
 0x2d8   : > { %13965 = vst [vmem:[#allocation34_spill] sm:$0xff] %v12535_v29  ;;  %13966 = vst [vmem:[#allocation35_spill] sm:$0xff] %v12539_v31  ;;  %v12546_v0 = vadd.f32 %v10006_v16, %v12521_v1  ;;  %v3965_v46 = vpop.f32.mrb[37].mxu1  ;;  %10299 = vmatmul.mubr.msk.f32.vlgmr.msra.gmra.mrb[98].mxu1 %vm445_vm0, %v12250_v17  ;;  %v12565_v16 = vmul.f32 %v12535_v29, %v12283_v5  ;;  %v12593_v12 = vmul.f32 %v12579_v9, %v12528_v2 }
 0x2d9   : > { %13967 = vst [vmem:[#allocation36_spill] sm:$0xff] %v12543_v40  ;;  %13970 = vst [vmem:[#allocation39_spill] sm:$0xff] %v12554_v59  ;;  %v12557_v51 = vadd.f32 %v12528_v2, %v3965_v46  ;;  %10655 = vmatpush3.bf16.msra.mxu1 %v12288_v4  ;;  %10305 = vmatprep.mubr.msk.f32.mxu1 %vm445_vm0, %v12093_v48  ;;  %v12576_v4 = vmul.f32 %v12535_v29, %v12551_v49  ;;  %v12686_v57 = vmul.f32 0.0001079797, %v12308_v44 }
 0x2da   : > { %13968 = vst [vmem:[#allocation37_spill] sm:$0xff] %v12546_v0  ;;  %10657 = vmatprep.subr.bf16.mxu1 %v12302_v23  ;;  %13972 = vst [vmem:[#allocation41_spill] sm:$0xff] %v12565_v16  ;;  %v12582_v40 = vmul.f32 0.0001079797, %v12546_v0 }
 0x2db   : > { %13971 = vst [vmem:[#allocation40_spill] sm:$0xff] %v12557_v51  ;;  %v10013_v61 = vpop.f32.mrb[38].mxu1  ;;  %13973 = vst [vmem:[#allocation42_spill] sm:$0xff] %v12569_v28  ;;  %v12589_v28 = vmul.f32 %v12554_v59, %v12286_v15  ;;  %v12705_v15 = vmul.f32 0.0001079797, %v12334_v63 }
 0x2dc   : > { %v12572_v31 = vadd.f32 %v10013_v61, %v12546_v0  ;;  %v4040_v46 = vpop.f32.mrb[39].mxu1  ;;  %13975 = vst [vmem:[#allocation44_spill] sm:$0xff] %v12576_v4  ;;  %13976 = vst [vmem:[#allocation45_spill] sm:$0xff] %v12579_v9 }
 0x2dd   : > { %13977 = vst [vmem:[#allocation46_spill] sm:$0xff] %v12582_v40  ;;  %v12585_v16 = vadd.f32 %v12557_v51, %v4040_v46  ;;  %13979 = vst [vmem:[#allocation48_spill] sm:$0xff] %v12589_v28  ;;  %v12602_v46 = vmul.f32 %v12554_v59, %v12579_v9  ;;  %v12608_v28 = vmul.f32 0.0001079797, %v12557_v51 }
 0x2de   : > { %13974 = vst [vmem:[#allocation43_spill] sm:$0xff] %v12572_v31  ;;  %13980 = vst [vmem:[#allocation49_spill] sm:$0xff] %v12593_v12 }
 0x2df   : > { %13978 = vst [vmem:[#allocation47_spill] sm:$0xff] %v12585_v16  ;;  %v10020_v61 = vpop.f32.mrb[40].mxu1  ;;  %13982 = vst [vmem:[#allocation51_spill] sm:$0xff] %v12602_v46  ;;  %v12623_v46 = vmul.f32 %v12605_v25, %v12546_v0  ;;  %v12677_v0 = vmul.f32 0.0001079797, %v12296_v3 }
 0x2e0   : > { %v12596_v4 = vadd.f32 %v10020_v61, %v12572_v31  ;;  %v4115_v1 = vpop.f32.mrb[41].mxu1  ;;  %10306 = vmatmul.mubr.msk.f32.vlgmr.msra.gmra.mrb[98].mxu1 %vm445_vm0, %v12250_v17  ;;  %13983 = vst [vmem:[#allocation52_spill] sm:$0xff] %v12605_v25  ;;  %13984 = vst [vmem:[#allocation53_spill] sm:$0xff] %v12608_v28  ;;  %v12618_v61 = vmul.f32 %v12582_v40, %v12291_v13  ;;  %v12695_v13 = vmul.f32 0.0001079797, %v12318_v8 }
 0x2e1   : > { %v12611_v2 = vadd.f32 %v12585_v16, %v4115_v1  ;;  %10659 = vmatpush3.bf16.msra.mxu1 %v12302_v23  ;;  %10312 = vmatprep.mubr.msk.f32.mxu1 %vm445_vm0, %v12093_v48  ;;  %13987 = vst [vmem:[#allocation56_spill] sm:$0xff] %v12623_v46  ;;  %v12630_v23 = vmul.f32 %v12582_v40, %v12605_v25  ;;  %14001 = vst [vmem:[#allocation70_spill] sm:$0xff] %v12677_v0  ;;  %v12683_v40 = vmul.f32 0.0001079797, %v12305_v43 }
 0x2e2   : > { %13981 = vst [vmem:[#allocation50_spill] sm:$0xff] %v12596_v4  ;;  %13986 = vst [vmem:[#allocation55_spill] sm:$0xff] %v12618_v61  ;;  %10661 = vmatprep.subr.bf16.mxu1 %v12310_v26  ;;  %v12637_v61 = vmul.f32 %v12608_v28, %v12296_v3  ;;  %v12698_v3 = vmul.f32 0.0001079797, %v12327_v14  ;;  %v12727_v25 = vmul.f32 0.0001079797, %v12330_v32 }
 0x2e3   : > { %13985 = vst [vmem:[#allocation54_spill] sm:$0xff] %v12611_v2  ;;  %v10027_v12 = vpop.f32.mrb[42].mxu1  ;;  %13989 = vst [vmem:[#allocation58_spill] sm:$0xff] %v12630_v23  ;;  %v12771_v20 = vmul.f32 %v12683_v40, %v12572_v31 }
 0x2e4   : > { %v12626_v22 = vadd.f32 %v10027_v12, %v12596_v4  ;;  %v4190_v1 = vpop.f32.mrb[43].mxu1  ;;  %13991 = vst [vmem:[#allocation60_spill] sm:$0xff] %v12637_v61 }
 0x2e5   : > { %v12633_v59 = vadd.f32 %v12611_v2, %v4190_v1  ;;  %14018 = vst [vmem:[#allocation87_spill] sm:$0xff] %v12771_v20 }
 0x2e6   : > { %13988 = vst [vmem:[#allocation57_spill] sm:$0xff] %v12626_v22  ;;  %v12641_v29 = vsub.f32 %v12626_v22, %v12340_v37  ;;  %v12645_v12 = vsub.f32 %v12626_v22, %v12375_v38  ;;  %v12651_v23 = vsub.f32 %v12626_v22, %v12395_v55  ;;  %v12674_v55 = vmul.f32 0.0001079797, %v12572_v31 }
 0x2e7   : > { %13990 = vst [vmem:[#allocation59_spill] sm:$0xff] %v12633_v59  ;;  %v12647_v46 = vpop.f32.mrb[44].mxu1  ;;  %v12659_v61 = vsub.f32 %v12633_v59, %v12348_v7  ;;  %v12663_v37 = vsub.f32 %v12633_v59, %v12378_v45  ;;  %v12670_v38 = vsub.f32 %v12633_v59, %v12400_v11  ;;  %v12767_v41 = vmul.f32 0.0001079797, %v12633_v59 }
 0x2e8   : > { %13992 = vst [vmem:[#allocation61_spill] sm:$0xff] %v12641_v29  ;;  %13993 = vst [vmem:[#allocation62_spill] sm:$0xff] %v12645_v12  ;;  %v12653_v1 = vpop.f32.mrb[45].mxu1  ;;  %10313 = vmatmul.mubr.msk.f32.vlgmr.msra.gmra.mrb[98].mxu1 %vm445_vm0, %v12250_v17  ;;  %v12716_v5 = vmul.f32 %v12674_v55, %v12305_v43  ;;  %v12748_v43 = vmul.f32 0.0001079797, %v12611_v2  ;;  %v12801_v31 = vmul.f32 %v12692_v27, %v12596_v4 }
 0x2e9   : > { %13994 = vst [vmem:[#allocation63_spill] sm:$0xff] %v12647_v46  ;;  %13995 = vst [vmem:[#allocation64_spill] sm:$0xff] %v12651_v23  ;;  %10663 = vmatpush3.bf16.msra.mxu1 %v12310_v26  ;;  %10319 = vmatprep.mubr.msk.f32.mxu1 %vm445_vm0, %v12093_v48  ;;  %v12764_v49 = vmul.f32 0.0001079797, %v12645_v12  ;;  %v12777_v54 = vmul.f32 0.0001079797, %v12659_v61 }
 0x2ea   : > { %13996 = vst [vmem:[#allocation65_spill] sm:$0xff] %v12653_v1  ;;  %13997 = vst [vmem:[#allocation66_spill] sm:$0xff] %v12659_v61  ;;  %10665 = vmatprep.subr.bf16.mxu1 %v12324_v52 }
 0x2eb   : > { %13998 = vst [vmem:[#allocation67_spill] sm:$0xff] %v12663_v37  ;;  %13999 = vst [vmem:[#allocation68_spill] sm:$0xff] %v12670_v38  ;;  %v10041_v7 = vpop.f32.mrb[46].mxu1 }
 0x2ec   : > { %14000 = vst [vmem:[#allocation69_spill] sm:$0xff] %v12674_v55  ;;  %v12680_v45 = vadd.f32 %v10041_v7, %v12647_v46  ;;  %v4340_v26 = vpop.f32.mrb[47].mxu1  ;;  %v12702_v7 = vmul.f32 %v12677_v0, %v12557_v51  ;;  %14006 = vst [vmem:[#allocation75_spill] sm:$0xff] %v12716_v5  ;;  %v12742_v5 = vmul.f32 0.0001079797, %v12358_v33 }
 0x2ed   : > { %v12689_v11 = vadd.f32 %v4340_v26, %v12653_v1  ;;  %v12708_v26 = vmul.f32 0.0001079797, %v12338_v36  ;;  %v12712_v1 = vmul.f32 %v12608_v28, %v12677_v0  ;;  %v12730_v28 = vmul.f32 0.0001079797, %v12585_v16  ;;  %14012 = vst [vmem:[#allocation81_spill] sm:$0xff] %v12748_v43  ;;  %14016 = vst [vmem:[#allocation85_spill] sm:$0xff] %v12764_v49 }
 0x2ee   : > { %14002 = vst [vmem:[#allocation71_spill] sm:$0xff] %v12680_v45  ;;  %14004 = vst [vmem:[#allocation73_spill] sm:$0xff] %v12702_v7  ;;  %v12724_v7 = vmul.f32 0.0001079797, %v12346_v42  ;;  %v12758_v0 = vmul.f32 0.0001079797, %v12641_v29 }
 0x2ef   : > { %14003 = vst [vmem:[#allocation72_spill] sm:$0xff] %v12689_v11  ;;  %v10048_v46 = vpop.f32.mrb[48].mxu1  ;;  %14005 = vst [vmem:[#allocation74_spill] sm:$0xff] %v12712_v1  ;;  %v12793_v20 = vmul.f32 %v12730_v28, %v12686_v57 }
 0x2f0   : > { %v12719_v35 = vadd.f32 %v10048_v46, %v12680_v45  ;;  %v4415_v51 = vpop.f32.mrb[49].mxu1  ;;  %10320 = vmatmul.mubr.msk.f32.vlgmr.msra.gmra.mrb[98].mxu1 %vm445_vm0, %v12250_v17  ;;  %14008 = vst [vmem:[#allocation77_spill] sm:$0xff] %v12724_v7  ;;  %14009 = vst [vmem:[#allocation78_spill] sm:$0xff] %v12730_v28  ;;  %v12739_v46 = vmul.f32 0.0001079797, %v12354_v58  ;;  %v12789_v7 = vmul.f32 %v12686_v57, %v12585_v16 }
 0x2f1   : > { %v12733_v1 = vadd.f32 %v12689_v11, %v4415_v51  ;;  %10667 = vmatpush3.bf16.msra.mxu1 %v12324_v52  ;;  %10326 = vmatprep.mubr.msk.f32.mxu1 %vm445_vm0, %v12093_v48  ;;  %v12745_v45 = vmul.f32 0.0001079797, %v12596_v4  ;;  %v12752_v51 = vmul.f32 0.0001079797, %v12365_v30  ;;  %v12755_v11 = vmul.f32 0.0001079797, %v12626_v22 }
 0x2f2   : > { %14007 = vst [vmem:[#allocation76_spill] sm:$0xff] %v12719_v35  ;;  %10669 = vmatprep.subr.bf16.mxu1 %v12342_v6  ;;  %14014 = vst [vmem:[#allocation83_spill] sm:$0xff] %v12758_v0  ;;  %v12824_v4 = vmul.f32 0.0001079797, %v12369_v10  ;;  %v12873_v16 = vmul.f32 %v12777_v54, %v12354_v58 }
 0x2f3   : > { %14010 = vst [vmem:[#allocation79_spill] sm:$0xff] %v12733_v1  ;;  %14011 = vst [vmem:[#allocation80_spill] sm:$0xff] %v12745_v45  ;;  %v10055_v52 = vpop.f32.mrb[50].mxu1 }
 0x2f4   : > { %14013 = vst [vmem:[#allocation82_spill] sm:$0xff] %v12755_v11  ;;  %v12761_v9 = vadd.f32 %v10055_v52, %v12719_v35  ;;  %v4490_v34 = vpop.f32.mrb[51].mxu1  ;;  %14017 = vst [vmem:[#allocation86_spill] sm:$0xff] %v12767_v41  ;;  %v12781_v52 = vmul.f32 %v12674_v55, %v12683_v40  ;;  %v12785_v35 = vmul.f32 %v12730_v28, %v12308_v44  ;;  %v12804_v55 = vmul.f32 0.0001079797, %v12663_v37 }
 0x2f5   : > { %v12774_v47 = vadd.f32 %v12733_v1, %v4490_v34  ;;  %14020 = vst [vmem:[#allocation89_spill] sm:$0xff] %v12777_v54  ;;  %14023 = vst [vmem:[#allocation92_spill] sm:$0xff] %v12789_v7  ;;  %v12797_v34 = vmul.f32 %v12745_v45, %v12313_v56  ;;  %v12812_v7 = vmul.f32 %v12748_v43, %v12318_v8 }
 0x2f6   : > { %14015 = vst [vmem:[#allocation84_spill] sm:$0xff] %v12761_v9  ;;  %14021 = vst [vmem:[#allocation90_spill] sm:$0xff] %v12781_v52 }
 0x2f7   : > { %14019 = vst [vmem:[#allocation88_spill] sm:$0xff] %v12774_v47  ;;  %14022 = vst [vmem:[#allocation91_spill] sm:$0xff] %v12785_v35  ;;  %v10062_v52 = vpop.f32.mrb[52].mxu1  ;;  %v12808_v35 = vmul.f32 %v12745_v45, %v12692_v27  ;;  %v14092_v45 = vld [vmem:[#allocation26_spill] sm:$0xff] }
 0x2f8   : > { %14024 = vst [vmem:[#allocation93_spill] sm:$0xff] %v12793_v20  ;;  %14025 = vst [vmem:[#allocation94_spill] sm:$0xff] %v12797_v34  ;;  %v12816_v20 = vmul.f32 %v12695_v13, %v12611_v2  ;;  %v12819_v34 = vadd.f32 %v10062_v52, %v12761_v9  ;;  %10327 = vmatmul.mubr.msk.f32.vlgmr.msra.gmra.mrb[98].mxu1 %vm445_vm0, %v12250_v17  ;;  %v12841_v52 = vmul.f32 0.0001079797, %v12651_v23 }
 0x2f9   : > { %14026 = vst [vmem:[#allocation95_spill] sm:$0xff] %v12801_v31  ;;  %14027 = vst [vmem:[#allocation96_spill] sm:$0xff] %v12804_v55  ;;  %v4565_v31 = vpop.f32.mrb[53].mxu1  ;;  %10671 = vmatpush3.bf16.msra.mxu1 %v12342_v6  ;;  %10333 = vmatprep.mubr.msk.f32.mxu1 %vm445_vm0, %v12093_v48  ;;  %v12845_v2 = vmul.f32 %v12758_v0, %v12334_v63  ;;  %v12857_v6 = vmul.f32 %v12698_v3, %v12626_v22 }
 0x2fa   : > { %14028 = vst [vmem:[#allocation97_spill] sm:$0xff] %v12808_v35  ;;  %14029 = vst [vmem:[#allocation98_spill] sm:$0xff] %v12812_v7  ;;  %v12828_v35 = vmul.f32 %v12748_v43, %v12695_v13  ;;  %v12832_v7 = vmul.f32 %v12755_v11, %v12327_v14  ;;  %10673 = vmatprep.subr.bf16.mxu1 %v12372_v18  ;;  %v12877_v43 = vmul.f32 %v12804_v55, %v12358_v33 }
 0x2fb   : > { %14030 = vst [vmem:[#allocation99_spill] sm:$0xff] %v12816_v20  ;;  %v12835_v20 = vadd.f32 %v12774_v47, %v4565_v31  ;;  %14034 = vst [vmem:[#allocation103_spill] sm:$0xff] %v12841_v52  ;;  %v12853_v31 = vmul.f32 0.0001079797, %v12670_v38 }
 0x2fc   : > { %14031 = vst [vmem:[#allocation100_spill] sm:$0xff] %v12828_v35  ;;  %14032 = vst [vmem:[#allocation101_spill] sm:$0xff] %v12832_v7  ;;  %v12849_v35 = vmul.f32 %v12764_v49, %v12338_v36  ;;  %v12861_v7 = vmul.f32 %v12705_v15, %v12641_v29  ;;  %10334 = vmatmul.mubr.msk.f32.vlgmr.msra.gmra.mrb[100].mxu1 %vm445_vm0, %v12250_v17  ;;  %v12958_v29 = vmul.f32 %v12752_v51, %v12670_v38  ;;  %v14087_v38 = vld [vmem:[#allocation52_spill] sm:$0xff] }
 0x2fd   : > { %14033 = vst [vmem:[#allocation102_spill] sm:$0xff] %v12835_v20  ;;  %14035 = vst [vmem:[#allocation104_spill] sm:$0xff] %v12845_v2  ;;  %v12865_v2 = vmul.f32 %v12755_v11, %v12698_v3  ;;  %10675 = vmatpush3.bf16.msra.mxu1 %v12372_v18  ;;  %10340 = vmatprep.mubr.msk.f32.mxu1 %vm445_vm0, %v12093_v48  ;;  %v12920_v18 = vmul.f32 0.0001079797, %v12392_v53 }
 0x2fe   : > { %14036 = vst [vmem:[#allocation105_spill] sm:$0xff] %v12849_v35  ;;  %14037 = vst [vmem:[#allocation106_spill] sm:$0xff] %v12853_v31  ;;  %v12869_v35 = vmul.f32 %v12767_v41, %v12330_v32  ;;  %10677 = vmatprep.subr.bf16.mxu1 %v12388_v60 }
 0x2ff   : > { %14038 = vst [vmem:[#allocation107_spill] sm:$0xff] %v12857_v6  ;;  %14039 = vst [vmem:[#allocation108_spill] sm:$0xff] %v12861_v7  ;;  %v12881_v6 = vmul.f32 %v12727_v25, %v12633_v59  ;;  %v12887_v7 = vmul.f32 %v12739_v46, %v12659_v61 }
 0x300   : > { %14040 = vst [vmem:[#allocation109_spill] sm:$0xff] %v12865_v2  ;;  %14041 = vst [vmem:[#allocation110_spill] sm:$0xff] %v12869_v35  ;;  %v12891_v35 = vmul.f32 %v12767_v41, %v12727_v25  ;;  %v12944_v41 = vmul.f32 %v12742_v5, %v12663_v37  ;;  %10341 = vmatmul.mubr.msk.f32.vlgmr.msra.gmra.mrb[102].mxu1 %vm445_vm0, %v12250_v17  ;;  %v8269_v37 = vmul.f32 %v14087_v38, %v14087_v38 }
 0x301   : > { %14042 = vst [vmem:[#allocation111_spill] sm:$0xff] %v12873_v16  ;;  %14043 = vst [vmem:[#allocation112_spill] sm:$0xff] %v12877_v43  ;;  %v12895_v16 = vsub.f32 %v12633_v59, %v12412_v19  ;;  %v12898_v43 = vmul.f32 0.0001079797, %v12382_v24  ;;  %v12913_v19 = vsub.f32 %v12626_v22, %v12417_v50  ;;  %10679 = vmatpush3.bf16.msra.mxu1 %v12388_v60  ;;  %10347 = vmatprep.mubr.msk.f32.mxu1 %vm445_vm0, %v12093_v48 }
 0x302   : > { %14044 = vst [vmem:[#allocation113_spill] sm:$0xff] %v12881_v6  ;;  %14045 = vst [vmem:[#allocation114_spill] sm:$0xff] %v12887_v7  ;;  %v12905_v6 = vsub.f32 %v12626_v22, %v12409_v62  ;;  %v12909_v7 = vsub.f32 %v12633_v59, %v12422_v21  ;;  %v12927_v62 = vmul.f32 %v12853_v31, %v12365_v30  ;;  %v14061_v22 = vld [vmem:[#allocation77_spill] sm:$0xff] }
 0x303   : > { %14046 = vst [vmem:[#allocation115_spill] sm:$0xff] %v12891_v35  ;;  %14047 = vst [vmem:[#allocation116_spill] sm:$0xff] %v12895_v16  ;;  %v12916_v35 = vmul.f32 0.0001079797, %v12386_v39  ;;  %v12923_v2 = vmul.f32 0.0001079797, %v12895_v16  ;;  %v12931_v21 = vmul.f32 %v12841_v52, %v12346_v42  ;;  %v12962_v11 = vmul.f32 %v14061_v22, %v12651_v23 }
 0x304   : > { %14048 = vst [vmem:[#allocation117_spill] sm:$0xff] %v12905_v6  ;;  %14049 = vst [vmem:[#allocation118_spill] sm:$0xff] %v12909_v7  ;;  %v12934_v50 = vmul.f32 0.0001079797, %v12905_v6  ;;  %v12937_v61 = vmul.f32 0.0001079797, %v12909_v7  ;;  %v12982_v60 = vmul.f32 %v12824_v4, %v12895_v16  ;;  %v13002_v16 = vmul.f32 %v12758_v0, %v12705_v15  ;;  %10348 = vmatmul.mubr.msk.f32.vlgmr.msra.gmra.mrb[104].mxu1 %vm445_vm0, %v12250_v17 }
 0x305   : > { %14050 = vst [vmem:[#allocation119_spill] sm:$0xff] %v12913_v19  ;;  %14051 = vst [vmem:[#allocation120_spill] sm:$0xff] %v12923_v2  ;;  %v12940_v59 = vmul.f32 0.0001079797, %v12913_v19  ;;  %10354 = vmatprep.mubr.msk.f32.mxu1 %vm445_vm0, %v12093_v48 }
 0x306   : > { %14052 = vst [vmem:[#allocation121_spill] sm:$0xff] %v12927_v62  ;;  %14053 = vst [vmem:[#allocation122_spill] sm:$0xff] %v12931_v21  ;;  %v12950_v62 = vmul.f32 %v12923_v2, %v12369_v10  ;;  %v12954_v21 = vmul.f32 %v12708_v26, %v12645_v12  ;;  %v8204_v12 = vmul.f32 2.0, %v12686_v57 }
 0x307   : > { %14054 = vst [vmem:[#allocation123_spill] sm:$0xff] %v12934_v50  ;;  %14055 = vst [vmem:[#allocation124_spill] sm:$0xff] %v12937_v61 }
 0x308   : > { %14056 = vst [vmem:[#allocation125_spill] sm:$0xff] %v12940_v59  ;;  %14057 = vst [vmem:[#allocation126_spill] sm:$0xff] %v12944_v41  ;;  %v12969_v41 = vmul.f32 %v12934_v50, %v12382_v24 }
 0x309   : > { %14058 = vst [vmem:[#allocation127_spill] sm:$0xff] %v12950_v62  ;;  %14059 = vst [vmem:[#allocation128_spill] sm:$0xff] %v12954_v21  ;;  %v12973_v21 = vmul.f32 %v12937_v61, %v12386_v39  ;;  %v14066_v62 = vld [vmem:[#allocation15_spill] sm:$0xff] }
 0x30a   : > { %14060 = vst [vmem:[#allocation129_spill] sm:$0xff] %v12958_v29  ;;  %14062 = vst [vmem:[#allocation77_spill] sm:$0xff] %v12962_v11  ;;  %v12977_v29 = vmul.f32 %v12940_v59, %v12392_v53  ;;  %10681 = vmatprep.subr.bf16.mxu1 %v14066_v62  ;;  %v12986_v11 = vmul.f32 %v12898_v43, %v12905_v6  ;;  %v14085_v6 = vld [vmem:[#allocation22_spill] sm:$0xff] }
 0x30b   : > { %14063 = vst [vmem:[#allocation130_spill] sm:$0xff] %v12969_v41  ;;  %14064 = vst [vmem:[#allocation131_spill] sm:$0xff] %v12973_v21  ;;  %v12990_v41 = vmul.f32 %v12916_v35, %v12909_v7  ;;  %v12994_v21 = vmul.f32 %v12920_v18, %v12913_v19  ;;  %10683 = vmatpush3.bf16.msra.mxu1 %v14066_v62  ;;  %v14082_v62 = vld [vmem:[#allocation17_spill] sm:$0xff]  ;;  %v14084_v19 = vld [vmem:[#allocation38_spill] sm:$0xff] }
 0x30c   : > { %14065 = vst [vmem:[#allocation132_spill] sm:$0xff] %v12977_v29  ;;  %14067 = vst [vmem:[#allocation15_spill] sm:$0xff] %v12982_v60  ;;  %v12998_v29 = vmul.f32 %v12777_v54, %v12739_v46  ;;  %v13006_v60 = vmul.f32 %v12804_v55, %v12742_v5  ;;  %v8201_v7 = vmul.f32 2.0, %v14084_v19  ;;  %v14090_v55 = vld [vmem:[#allocation24_spill] sm:$0xff] }
 0x30d   : > { %14068 = vst [vmem:[#allocation133_spill] sm:$0xff] %v12986_v11  ;;  %14069 = vst [vmem:[#allocation134_spill] sm:$0xff] %v12990_v41  ;;  %v13010_v11 = vmul.f32 %v12764_v49, %v12708_v26  ;;  %v13020_v41 = vmul.f32 %v12841_v52, %v14061_v22  ;;  %v8207_v52 = vmul.f32 2.0, %v12692_v27  ;;  %v14091_v49 = vld [vmem:[#allocation25_spill] sm:$0xff] }
 0x30e   : > { %14070 = vst [vmem:[#allocation135_spill] sm:$0xff] %v12994_v21  ;;  %14071 = vst [vmem:[#allocation136_spill] sm:$0xff] %v12998_v29  ;;  %v13016_v21 = vmul.f32 %v12853_v31, %v12752_v51  ;;  %10355 = vmatmul.mubr.msk.f32.vlgmr.msra.gmra.mrb[106].mxu1 %vm445_vm0, %v12250_v17  ;;  %v8223_v54 = vmul.f32 %v8201_v7, %v14090_v55  ;;  %v8291_v55 = vmul.f32 9261.0, %v8269_v37  ;;  %v14093_v7 = vld [vmem:[#allocation13_spill] sm:$0xff] }
 0x30f   : > { %14072 = vst [vmem:[#allocation137_spill] sm:$0xff] %v13002_v16  ;;  %14073 = vst [vmem:[#allocation138_spill] sm:$0xff] %v13006_v60  ;;  %v13024_v16 = vmul.f32 %v12923_v2, %v12824_v4  ;;  %v13028_v60 = vmul.f32 %v12934_v50, %v12898_v43  ;;  %10361 = vmatprep.mubr.msk.f32.mxu1 %vm445_vm0, %v12093_v48  ;;  %v8267_v48 = vmul.f32 %v14084_v19, %v14084_v19  ;;  %v14088_v2 = vld [vmem:[#allocation70_spill] sm:$0xff] }
 0x310   : > { %14074 = vst [vmem:[#allocation139_spill] sm:$0xff] %v13010_v11  ;;  %14075 = vst [vmem:[#allocation140_spill] sm:$0xff] %v13016_v21  ;;  %v13035_v21 = vmul.f32 %v12937_v61, %v12916_v35  ;;  %v14081_v11 = vld [vmem:[#allocation16_spill] sm:$0xff]  ;;  %v14086_v61 = vld [vmem:[#allocation45_spill] sm:$0xff]  ;;  %v8268_v31 = vmul.f32 %v14088_v2, %v14088_v2  ;;  %v13095_v37 = vmul.f32 %v8204_v12, %v12308_v44 }
 0x311   : > { %14076 = vst [vmem:[#allocation141_spill] sm:$0xff] %v13020_v41  ;;  %14077 = vst [vmem:[#allocation142_spill] sm:$0xff] %v13024_v16  ;;  %v13039_v41 = vmul.f32 %v12940_v59, %v12920_v18  ;;  %10685 = vmatprep.subr.bf16.mxu1 %v14081_v11  ;;  %v14083_v16 = vld [vmem:[#allocation19_spill] sm:$0xff]  ;;  %v8266_v50 = vmul.f32 %v14086_v61, %v14086_v61  ;;  %v8289_v23 = vmul.f32 9261.0, %v8267_v48 }
 0x312   : > { %14078 = vst [vmem:[#allocation143_spill] sm:$0xff] %v13028_v60  ;;  %14079 = vst [vmem:[#allocation144_spill] sm:$0xff] %v13035_v21  ;;  %10687 = vmatpush3.bf16.msra.mxu1 %v14081_v11  ;;  %v8199_v60 = vmul.f32 2.0, %v14082_v62  ;;  %v8265_v21 = vmul.f32 %v14082_v62, %v14082_v62  ;;  %v8264_v29 = vmul.f32 %v14083_v16, %v14083_v16  ;;  %v8203_v62 = vmul.f32 2.0, %v14087_v38 }
 0x313   : > { %14080 = vst [vmem:[#allocation145_spill] sm:$0xff] %v13039_v41  ;;  %v8198_v41 = vmul.f32 2.0, %v14083_v16  ;;  %v8202_v16 = vmul.f32 2.0, %v14088_v2  ;;  %v8270_v38 = vmul.f32 %v12686_v57, %v12686_v57  ;;  %v8288_v0 = vmul.f32 9261.0, %v8266_v50 }
 0x314   : > { %v8221_v11 = vmul.f32 %v14085_v6, %v8199_v60  ;;  %v8287_v59 = vmul.f32 9261.0, %v8265_v21  ;;  %v8205_v6 = vmul.f32 2.0, %v12683_v40  ;;  %v14089_v60 = vld [vmem:[#allocation23_spill] sm:$0xff]  ;;  %v8286_v21 = vmul.f32 9261.0, %v8264_v29 }
 0x315   : > { %10362 = vmatmul.mubr.msk.f32.vlgmr.msra.gmra.mrb[108].mxu1 %vm445_vm0, %v12250_v17  ;;  %v8200_v17 = vmul.f32 2.0, %v14086_v61  ;;  %v8220_v19 = vmul.f32 %v14089_v60, %v8198_v41  ;;  %v8271_v61 = vmul.f32 %v12683_v40, %v12683_v40  ;;  %v8225_v28 = vmul.f32 %v8203_v62, %v14092_v45  ;;  %v14094_v60 = vld [vmem:[#allocation14_spill] sm:$0xff] }
 0x316   : > { %v8273_v41 = vmul.f32 %v12692_v27, %v12692_v27  ;;  %v13082_v40 = vmul.f32 %v8202_v16, %v14093_v7  ;;  %v8290_v48 = vmul.f32 9261.0, %v8268_v31  ;;  %v13085_v47 = vmul.f32 %v8205_v6, %v14094_v60 }
 0x317   : > { %v8222_v2 = vmul.f32 %v8200_v17, %v14091_v49  ;;  %v13088_v9 = vmul.f32 9261.0, %v8271_v61  ;;  %v8206_v49 = vmul.f32 2.0, %v12695_v13  ;;  %v8272_v45 = vmul.f32 %v12695_v13, %v12695_v13 }
 0x318   : > { %v13097_v50 = vmul.f32 9261.0, %v8270_v38  ;;  %v13100_v31 = vmul.f32 %v8207_v52, %v12313_v56  ;;  %v13102_v62 = vmul.f32 9261.0, %v8273_v41  ;;  %v8209_v16 = vmul.f32 2.0, %v12698_v3 }
 0x319   : > { %v8211_v6 = vmul.f32 2.0, %v12705_v15  ;;  %v8213_v13 = vmul.f32 2.0, %v12708_v26  ;;  %v8275_v44 = vmul.f32 %v12698_v3, %v12698_v3  ;;  %v13115_v38 = vmul.f32 9261.0, %v8272_v45 }
 0x31a   : > { %v8277_v7 = vmul.f32 %v12705_v15, %v12705_v15  ;;  %v8279_v60 = vmul.f32 %v12708_v26, %v12708_v26  ;;  %v13124_v3 = vmul.f32 %v8209_v16, %v12327_v14 }
 0x31b   : > { %v13137_v45 = vmul.f32 9261.0, %v8275_v44 }
 0x323   : > { %v10104_v29 = vpop.f32.mrb[54].mxu1 }
 0x324   : > { %v10692_v57 = vadd.f32 %v10104_v29, %v12819_v34  ;;  %v5015_v1 = vpop.f32.mrb[55].mxu1 }
 0x325   : > { %v10693_v27 = vadd.f32 %v12835_v20, %v5015_v1  ;;  %v8215_v1 = vmul.f32 2.0, %v14061_v22 }
 0x326   : > { %v8243_v17 = vsub.f32 %v10692_v57, %v8221_v11  ;;  %v13113_v11 = vmul.f32 %v8206_v49, %v12318_v8  ;;  %v8281_v8 = vmul.f32 %v14061_v22, %v14061_v22  ;;  %v13132_v49 = vmul.f32 %v8213_v13, %v12338_v36 }
 0x327   : > { %v8242_v61 = vsub.f32 %v10693_v27, %v8220_v19  ;;  %v10111_v29 = vpop.f32.mrb[56].mxu1  ;;  %v13135_v15 = vmul.f32 %v8215_v1, %v12346_v42  ;;  %v8212_v36 = vmul.f32 2.0, %v12742_v5  ;;  %v13148_v42 = vmul.f32 9261.0, %v8279_v60 }
 0x328   : > { %v13110_v12 = vadd.f32 %v8287_v59, %v8243_v17  ;;  %v7904_v56 = vadd.f32 %v10692_v57, %v10111_v29  ;;  %v5090_v52 = vpop.f32.mrb[57].mxu1  ;;  %v13127_v59 = vmul.f32 %v8211_v6, %v12334_v63  ;;  %v8208_v63 = vmul.f32 2.0, %v12727_v25 }
 0x329   : > { %v13117_v41 = vadd.f32 %v8286_v21, %v8242_v61  ;;  %v7903_v19 = vadd.f32 %v10693_v27, %v5090_v52  ;;  %v8210_v27 = vmul.f32 2.0, %v12739_v46  ;;  %v8214_v6 = vmul.f32 2.0, %v12752_v51 }
 0x32a   : > { %v8245_v20 = vsub.f32 %v7904_v56, %v8223_v54  ;;  %v13153_v29 = vmul.f32 9261.0, %v8281_v8  ;;  %v8276_v13 = vmul.f32 %v12739_v46, %v12739_v46 }
 0x32b   : > { %v8244_v57 = vsub.f32 %v7903_v19, %v8222_v2  ;;  %v10118_v21 = vpop.f32.mrb[58].mxu1  ;;  %v13145_v2 = vmul.f32 9261.0, %v8277_v7  ;;  %v8232_v52 = vmul.f32 %v8210_v27, %v12354_v58  ;;  %v8234_v7 = vmul.f32 %v8212_v36, %v12358_v33 }
 0x32c   : > { %v13139_v54 = vadd.f32 %v8289_v23, %v8245_v20  ;;  %v7914_v14 = vadd.f32 %v10118_v21, %v7904_v56  ;;  %v5165_v26 = vpop.f32.mrb[59].mxu1  ;;  %v8216_v20 = vmul.f32 2.0, %v12824_v4  ;;  %v13162_v56 = vmul.f32 %v8208_v63, %v12330_v32 }
 0x32d   : > { %v13143_v17 = vadd.f32 %v8288_v0, %v8244_v57  ;;  %v7913_v22 = vadd.f32 %v7903_v19, %v5165_v26  ;;  %v8274_v0 = vmul.f32 %v12727_v25, %v12727_v25  ;;  %v8278_v25 = vmul.f32 %v12742_v5, %v12742_v5 }
 0x32e   : > { %v8247_v16 = vsub.f32 %v7914_v14, %v8225_v28  ;;  %v8236_v46 = vmul.f32 %v8214_v6, %v12365_v30  ;;  %v8280_v32 = vmul.f32 %v12752_v51, %v12752_v51  ;;  %v8217_v33 = vmul.f32 2.0, %v12898_v43 }
 0x32f   : > { %v8246_v23 = vsub.f32 %v7913_v22, %v13082_v40  ;;  %v10125_v61 = vpop.f32.mrb[60].mxu1  ;;  %v8296_v57 = vmul.f32 9261.0, %v8274_v0  ;;  %v8218_v30 = vmul.f32 2.0, %v12916_v35  ;;  %v8300_v63 = vmul.f32 9261.0, %v8278_v25 }
 0x330   : > { %v13159_v1 = vadd.f32 %v8291_v55, %v8247_v16  ;;  %v7924_v28 = vadd.f32 %v10125_v61, %v7914_v14  ;;  %v5240_v44 = vpop.f32.mrb[61].mxu1  ;;  %v8238_v55 = vmul.f32 %v8216_v20, %v12369_v10  ;;  %v8283_v10 = vmul.f32 %v12898_v43, %v12898_v43 }
 0x331   : > { %v13165_v19 = vadd.f32 %v8290_v48, %v8246_v23  ;;  %v7923_v40 = vadd.f32 %v7913_v22, %v5240_v44  ;;  %v8282_v48 = vmul.f32 %v12824_v4, %v12824_v4  ;;  %v8219_v14 = vmul.f32 2.0, %v12920_v18  ;;  %v14096_v44 = vld [vmem:[#allocation71_spill] sm:$0xff] }
 0x332   : > { %v8249_v60 = vsub.f32 %v7924_v28, %v13085_v47  ;;  %v8284_v4 = vmul.f32 %v12916_v35, %v12916_v35  ;;  %v8302_v27 = vmul.f32 9261.0, %v8280_v32  ;;  %v8239_v43 = vmul.f32 %v8217_v33, %v12382_v24 }
 0x333   : > { %v8248_v8 = vsub.f32 %v7923_v40, %v13095_v37  ;;  %v10132_v58 = vpop.f32.mrb[62].mxu1  ;;  %v8304_v16 = vmul.f32 9261.0, %v8282_v48  ;;  %v8240_v35 = vmul.f32 %v8218_v30, %v12386_v39  ;;  %v14101_v30 = vld [vmem:[#allocation79_spill] sm:$0xff] }
 0x334   : > { %v13180_v5 = vadd.f32 %v13088_v9, %v8249_v60  ;;  %v7934_v47 = vadd.f32 %v10132_v58, %v7924_v28  ;;  %v5315_v21 = vpop.f32.mrb[63].mxu1  ;;  %v8298_v9 = vmul.f32 9261.0, %v8276_v13  ;;  %v8306_v13 = vmul.f32 9261.0, %v8284_v4  ;;  %v14095_v28 = vld [vmem:[#allocation63_spill] sm:$0xff] }
 0x335   : > { %v13186_v51 = vadd.f32 %v13097_v50, %v8248_v8  ;;  %v7933_v37 = vadd.f32 %v7923_v40, %v5315_v21  ;;  %v8285_v50 = vmul.f32 %v12920_v18, %v12920_v18  ;;  %v14097_v18 = vld [vmem:[#allocation76_spill] sm:$0xff]  ;;  %v14099_v8 = vld [vmem:[#allocation65_spill] sm:$0xff]  ;;  %v14103_v4 = vld [vmem:[#allocation102_spill] sm:$0xff] }
 0x336   : > { %v8251_v26 = vsub.f32 %v7934_v47, %v13100_v31  ;;  %v8305_v31 = vmul.f32 9261.0, %v8283_v10 }
 0x337   : > { %v8250_v22 = vsub.f32 %v7933_v37, %v13113_v11  ;;  %v10139_v36 = vpop.f32.mrb[64].mxu1  ;;  %v8241_v11 = vmul.f32 %v8219_v14, %v12392_v53 }
 0x338   : > { %v13197_v6 = vadd.f32 %v13102_v62, %v8251_v26  ;;  %v7944_v20 = vadd.f32 %v10139_v36, %v7934_v47  ;;  %v5390_v23 = vpop.f32.mrb[65].mxu1  ;;  %v14098_v62 = vld [vmem:[#allocation84_spill] sm:$0xff] }
 0x339   : > { %v13201_v61 = vadd.f32 %v13115_v38, %v8250_v22  ;;  %v7943_v0 = vadd.f32 %v7933_v37, %v5390_v23  ;;  %v14100_v38 = vld [vmem:[#allocation72_spill] sm:$0xff] }
 0x33a   : > { %v7954_v24 = vsub.f32 %v7944_v20, %v14095_v28  ;;  %v7964_v40 = vsub.f32 %v7944_v20, %v14096_v44  ;;  %v7974_v25 = vsub.f32 %v7944_v20, %v14097_v18  ;;  %v7984_v60 = vsub.f32 %v7944_v20, %v14098_v62 }
 0x33b   : > { %v7994_v32 = vsub.f32 %v7944_v20, %v12819_v34  ;;  %v8253_v39 = vsub.f32 %v7944_v20, %v13124_v3  ;;  %v7953_v58 = vsub.f32 %v7943_v0, %v14099_v8  ;;  %v7963_v48 = vsub.f32 %v7943_v0, %v14100_v38  ;;  %v13212_v33 = vpop.f32.mrb[66].mxu1  ;;  %v14102_v3 = vld [vmem:[#allocation88_spill] sm:$0xff] }
 0x33c   : > { %v8255_v53 = vsub.f32 %v7954_v24, %v13127_v59  ;;  %v8257_v47 = vsub.f32 %v7964_v40, %v13132_v49  ;;  %v8259_v21 = vsub.f32 %v7974_v25, %v13135_v15  ;;  %v7973_v10 = vsub.f32 %v7943_v0, %v14101_v30  ;;  %v13218_v37 = vpop.f32.mrb[67].mxu1  ;;  %v14114_v30 = vld [vmem:[#allocation39_spill] sm:$0xff] }
 0x33d   : > { %v13221_v34 = vadd.f32 %v13137_v45, %v8253_v39  ;;  %v7983_v14 = vsub.f32 %v7943_v0, %v14102_v3  ;;  %v7993_v26 = vsub.f32 %v7943_v0, %v14103_v4  ;;  %v8252_v22 = vsub.f32 %v7943_v0, %v13162_v56  ;;  %v14115_v3 = vld [vmem:[#allocation18_spill] sm:$0xff] }
 0x33e   : > { %v13227_v36 = vadd.f32 %v13145_v2, %v8255_v53  ;;  %v13230_v59 = vadd.f32 %v13148_v42, %v8257_v47  ;;  %v13233_v49 = vadd.f32 %v13153_v29, %v8259_v21  ;;  %v8254_v15 = vsub.f32 %v7953_v58, %v8232_v52  ;;  %v14112_v58 = vld [vmem:[#allocation28_spill] sm:$0xff]  ;;  %v14113_v53 = vld [vmem:[#allocation34_spill] sm:$0xff] }
 0x33f   : > { %v8256_v20 = vsub.f32 %v7963_v48, %v8234_v7  ;;  %v8258_v23 = vsub.f32 %v7973_v10, %v8236_v46  ;;  %v8260_v45 = vsub.f32 %v7983_v14, %v8238_v55  ;;  %v13235_v28 = vadd.f32 %v8296_v57, %v8252_v22  ;;  %v10153_v24 = vpop.f32.mrb[68].mxu1  ;;  %v14116_v22 = vld [vmem:[#allocation20_spill] sm:$0xff] }
 0x340   : > { %14104 = vst [vmem:[#allocation16_spill] sm:$0xff] %v13233_v49  ;;  %v13237_v44 = vadd.f32 %v8298_v9, %v8254_v15  ;;  %v13240_v56 = vadd.f32 %v10153_v24, %v13212_v33  ;;  %v5540_v2 = vpop.f32.mrb[69].mxu1  ;;  %v8261_v0 = vsub.f32 %v7984_v60, %v8239_v43  ;;  %v8262_v40 = vsub.f32 %v7993_v26, %v8240_v35  ;;  %v14118_v24 = vld [vmem:[#allocation30_spill] sm:$0xff] }
 0x341   : > { %v13242_v42 = vadd.f32 %v8300_v63, %v8256_v20  ;;  %v13244_v18 = vadd.f32 %v8302_v27, %v8258_v23  ;;  %v13246_v29 = vadd.f32 %v8304_v16, %v8260_v45  ;;  %v13249_v52 = vadd.f32 %v5540_v2, %v13218_v37  ;;  %v14117_v23 = vld [vmem:[#allocation46_spill] sm:$0xff] }
 0x342   : > { %v8263_v7 = vsub.f32 %v7994_v32, %v8241_v11  ;;  %v8307_v46 = vmul.f32 9261.0, %v8285_v50  ;;  %v13251_v55 = vadd.f32 %v8305_v31, %v8261_v0  ;;  %v13253_v57 = vadd.f32 %v8306_v13, %v8262_v40  ;;  %v14111_v32 = vld [vmem:[#allocation27_spill] sm:$0xff] }
 0x343   : > { %14105 = vst [vmem:[#allocation17_spill] sm:$0xff] %v13242_v42  ;;  %14106 = vst [vmem:[#allocation19_spill] sm:$0xff] %v13244_v18  ;;  %v10160_v9 = vpop.f32.mrb[70].mxu1  ;;  %v8331_v39 = vmul.f32 2.0, %v14111_v32  ;;  %v8397_v8 = vmul.f32 %v14111_v32, %v14111_v32  ;;  %v8330_v38 = vmul.f32 2.0, %v14112_v58  ;;  %v8396_v48 = vmul.f32 %v14112_v58, %v14112_v58  ;;  %v14129_v18 = vld [vmem:[#allocation50_spill] sm:$0xff] }
 0x344   : > { %14107 = vst [vmem:[#allocation38_spill] sm:$0xff] %v13246_v29  ;;  %14108 = vst [vmem:[#allocation22_spill] sm:$0xff] %v13251_v55  ;;  %v13256_v25 = vadd.f32 %v10160_v9, %v13240_v56  ;;  %v5615_v43 = vpop.f32.mrb[71].mxu1  ;;  %v13258_v63 = vadd.f32 %v8307_v46, %v8263_v7  ;;  %v8333_v47 = vmul.f32 2.0, %v14113_v53  ;;  %v8399_v21 = vmul.f32 %v14113_v53, %v14113_v53  ;;  %v14119_v7 = vld [vmem:[#allocation53_spill] sm:$0xff]  ;;  %v14120_v9 = vld [vmem:[#allocation32_spill] sm:$0xff] }
 0x345   : > { %14109 = vst [vmem:[#allocation45_spill] sm:$0xff] %v13253_v57  ;;  %v13261_v27 = vadd.f32 %v13249_v52, %v5615_v43  ;;  %v8332_v10 = vmul.f32 2.0, %v14114_v30  ;;  %v8353_v14 = vmul.f32 %v14115_v3, %v8331_v39  ;;  %v8398_v4 = vmul.f32 %v14114_v30, %v14114_v30  ;;  %v14124_v30 = vld [vmem:[#allocation37_spill] sm:$0xff]  ;;  %v14127_v57 = vld [vmem:[#allocation43_spill] sm:$0xff] }
 0x346   : > { %14110 = vst [vmem:[#allocation52_spill] sm:$0xff] %v13258_v63  ;;  %v8419_v26 = vmul.f32 9261.0, %v8397_v8  ;;  %v8352_v15 = vmul.f32 %v14116_v22, %v8330_v38  ;;  %v8418_v20 = vmul.f32 9261.0, %v8396_v48  ;;  %v8335_v45 = vmul.f32 2.0, %v14117_v23 }
 0x347   : > { %v10167_v16 = vpop.f32.mrb[72].mxu1  ;;  %v8355_v2 = vmul.f32 %v8333_v47, %v14118_v24  ;;  %v8421_v0 = vmul.f32 9261.0, %v8399_v21  ;;  %v8401_v40 = vmul.f32 %v14117_v23, %v14117_v23  ;;  %v8334_v46 = vmul.f32 2.0, %v14119_v7  ;;  %v14122_v8 = vld [vmem:[#allocation78_spill] sm:$0xff]  ;;  %v14123_v48 = vld [vmem:[#allocation80_spill] sm:$0xff] }
 0x348   : > { %v13264_v35 = vadd.f32 %v10167_v16, %v13256_v25  ;;  %v5690_v11 = vpop.f32.mrb[73].mxu1  ;;  %v8354_v43 = vmul.f32 %v8332_v10, %v14120_v9  ;;  %v8400_v16 = vmul.f32 %v14119_v7, %v14119_v7  ;;  %v8420_v39 = vmul.f32 9261.0, %v8398_v4  ;;  %v14125_v22 = vld [vmem:[#allocation81_spill] sm:$0xff]  ;;  %v14126_v7 = vld [vmem:[#allocation40_spill] sm:$0xff] }
 0x349   : > { %v13267_v50 = vadd.f32 %v13261_v27, %v5690_v11  ;;  %v14121_v11 = vld [vmem:[#allocation69_spill] sm:$0xff]  ;;  %v8336_v58 = vmul.f32 2.0, %v14122_v8  ;;  %v8402_v38 = vmul.f32 %v14122_v8, %v14122_v8  ;;  %v8339_v53 = vmul.f32 2.0, %v14123_v48 }
 0x34a   : > { %v8357_v10 = vmul.f32 %v8335_v45, %v14124_v30  ;;  %v8405_v3 = vmul.f32 %v14123_v48, %v14123_v48  ;;  %v8338_v23 = vmul.f32 2.0, %v14125_v22  ;;  %v8423_v4 = vmul.f32 9261.0, %v8401_v40  ;;  %v14128_v30 = vld [vmem:[#allocation47_spill] sm:$0xff] }
 0x34b   : > { %v10174_v31 = vpop.f32.mrb[74].mxu1  ;;  %v8356_v9 = vmul.f32 %v8334_v46, %v14126_v7  ;;  %v8422_v63 = vmul.f32 9261.0, %v8400_v16  ;;  %v13315_v49 = vmul.f32 %v8336_v58, %v14128_v30  ;;  %v8424_v48 = vmul.f32 9261.0, %v8402_v38 }
 0x34c   : > { %v13270_v13 = vadd.f32 %v10174_v31, %v13264_v35  ;;  %v5765_v62 = vpop.f32.mrb[75].mxu1  ;;  %v8337_v31 = vmul.f32 2.0, %v14121_v11  ;;  %v13318_v42 = vmul.f32 %v8339_v53, %v14129_v18  ;;  %v13320_v7 = vmul.f32 9261.0, %v8405_v3  ;;  %v14132_v18 = vld [vmem:[#allocation83_spill] sm:$0xff] }
 0x34d   : > { %v13273_v60 = vadd.f32 %v13267_v50, %v5765_v62  ;;  %v8403_v62 = vmul.f32 %v14121_v11, %v14121_v11  ;;  %v8404_v11 = vmul.f32 %v14125_v22, %v14125_v22  ;;  %v14130_v22 = vld [vmem:[#allocation54_spill] sm:$0xff]  ;;  %v8343_v53 = vmul.f32 2.0, %v14132_v18 }
 0x34f   : > { %v8425_v55 = vmul.f32 9261.0, %v8403_v62 }
 0x377   : > { %v10216_v32 = vpop.f32.mrb[76].mxu1 }
 0x378   : > { %v10694_v47 = vadd.f32 %v10216_v32, %v13270_v13  ;;  %v6215_v21 = vpop.f32.mrb[77].mxu1  ;;  %v8359_v32 = vmul.f32 %v8337_v31, %v14127_v57  ;;  %v13325_v31 = vmul.f32 9261.0, %v8404_v11 }
 0x379   : > { %v10695_v24 = vadd.f32 %v13273_v60, %v6215_v21 }
 0x37a   : > { %v8375_v8 = vsub.f32 %v10694_v47, %v8353_v14  ;;  %v13323_v14 = vmul.f32 %v8338_v23, %v14130_v22  ;;  %v14135_v22 = vld [vmem:[#allocation57_spill] sm:$0xff] }
 0x37b   : > { %v8374_v29 = vsub.f32 %v10695_v24, %v8352_v15  ;;  %v10223_v45 = vpop.f32.mrb[78].mxu1  ;;  %v14131_v15 = vld [vmem:[#allocation82_spill] sm:$0xff] }
 0x37c   : > { %v8441_v40 = vadd.f32 %v8419_v26, %v8375_v8  ;;  %v7906_v21 = vadd.f32 %v10694_v47, %v10223_v45  ;;  %v6290_v46 = vpop.f32.mrb[79].mxu1  ;;  %v8341_v62 = vmul.f32 2.0, %v14131_v15  ;;  %v8407_v26 = vmul.f32 %v14131_v15, %v14131_v15  ;;  %v14134_v45 = vld [vmem:[#allocation103_spill] sm:$0xff] }
 0x37d   : > { %v8440_v16 = vadd.f32 %v8418_v20, %v8374_v29  ;;  %v7905_v57 = vadd.f32 %v10695_v24, %v6290_v46  ;;  %v14133_v29 = vld [vmem:[#allocation85_spill] sm:$0xff]  ;;  %v8409_v24 = vmul.f32 %v14132_v18, %v14132_v18 }
 0x37e   : > { %v13329_v58 = vmul.f32 %v8441_v40, %v13110_v12  ;;  %v8377_v38 = vsub.f32 %v7906_v21, %v8355_v2  ;;  %v8345_v20 = vmul.f32 2.0, %v14133_v29  ;;  %v8347_v2 = vmul.f32 2.0, %v14134_v45 }
 0x37f   : > { %v13335_v47 = vmul.f32 %v8440_v16, %v13117_v41  ;;  %v8376_v3 = vsub.f32 %v7905_v57, %v8354_v43  ;;  %v10230_v23 = vpop.f32.mrb[80].mxu1  ;;  %v8411_v30 = vmul.f32 %v14133_v29, %v14133_v29  ;;  %v13344_v41 = vmul.f32 %v8341_v62, %v14135_v22 }
 0x380   : > { %v8443_v11 = vadd.f32 %v8421_v0, %v8377_v38  ;;  %v7916_v8 = vadd.f32 %v10230_v23, %v7906_v21  ;;  %v6365_v12 = vpop.f32.mrb[81].mxu1  ;;  %v8413_v43 = vmul.f32 %v14134_v45, %v14134_v45  ;;  %v14137_v0 = vld [vmem:[#allocation61_spill] sm:$0xff]  ;;  %v13354_v38 = vmul.f32 9261.0, %v8407_v26 }
 0x381   : > { %v8442_v40 = vadd.f32 %v8420_v39, %v8376_v3  ;;  %v7915_v46 = vadd.f32 %v7905_v57, %v6365_v12  ;;  %v13352_v21 = vmul.f32 %v8343_v53, %v14137_v0  ;;  %v14139_v3 = vld [vmem:[#allocation62_spill] sm:$0xff]  ;;  %v13360_v23 = vmul.f32 9261.0, %v8409_v24 }
 0x382   : > { %v13349_v16 = vmul.f32 %v8443_v11, %v13139_v54  ;;  %v8379_v15 = vsub.f32 %v7916_v8, %v8357_v10  ;;  %v8367_v62 = vmul.f32 %v8345_v20, %v14139_v3  ;;  %v14140_v54 = vld [vmem:[#allocation64_spill] sm:$0xff]  ;;  %v14141_v10 = vld [vmem:[#allocation86_spill] sm:$0xff]  ;;  %v8433_v26 = vmul.f32 9261.0, %v8411_v30 }
 0x383   : > { %v13357_v18 = vmul.f32 %v8442_v40, %v13143_v17  ;;  %v8378_v39 = vsub.f32 %v7915_v46, %v8356_v9  ;;  %v10237_v57 = vpop.f32.mrb[82].mxu1  ;;  %v8369_v11 = vmul.f32 %v8347_v2, %v14140_v54  ;;  %v8340_v22 = vmul.f32 2.0, %v14141_v10  ;;  %v14142_v40 = vld [vmem:[#allocation89_spill] sm:$0xff]  ;;  %v14143_v20 = vld [vmem:[#allocation96_spill] sm:$0xff] }
 0x384   : > { %14136 = vst [vmem:[#allocation70_spill] sm:$0xff] %v13349_v16  ;;  %v8445_v29 = vadd.f32 %v8423_v4, %v8379_v15  ;;  %v7926_v12 = vadd.f32 %v10237_v57, %v7916_v8  ;;  %v6440_v45 = vpop.f32.mrb[83].mxu1  ;;  %v8435_v16 = vmul.f32 9261.0, %v8413_v43  ;;  %v8344_v24 = vmul.f32 2.0, %v14143_v20  ;;  %v14144_v15 = vld [vmem:[#allocation106_spill] sm:$0xff] }
 0x385   : > { %14138 = vst [vmem:[#allocation23_spill] sm:$0xff] %v13357_v18  ;;  %v8444_v53 = vadd.f32 %v8422_v63, %v8378_v39  ;;  %v7925_v0 = vadd.f32 %v7915_v46, %v6440_v45  ;;  %v8342_v18 = vmul.f32 2.0, %v14142_v40  ;;  %v8346_v57 = vmul.f32 2.0, %v14144_v15  ;;  %v14145_v43 = vld [vmem:[#allocation59_spill] sm:$0xff] }
 0x386   : > { %v13365_v17 = vmul.f32 %v8445_v29, %v13159_v1  ;;  %v8381_v9 = vsub.f32 %v7926_v12, %v8359_v32  ;;  %v8406_v63 = vmul.f32 %v14141_v10, %v14141_v10  ;;  %v13377_v32 = vmul.f32 %v8340_v22, %v14145_v43  ;;  %v14147_v10 = vld [vmem:[#allocation120_spill] sm:$0xff] }
 0x387   : > { %v13370_v4 = vmul.f32 %v8444_v53, %v13165_v19  ;;  %v8380_v8 = vsub.f32 %v7925_v0, %v13315_v49  ;;  %v10244_v2 = vpop.f32.mrb[84].mxu1  ;;  %v8408_v39 = vmul.f32 %v14142_v40, %v14142_v40  ;;  %v8410_v49 = vmul.f32 %v14143_v20, %v14143_v20  ;;  %v14149_v20 = vld [vmem:[#allocation68_spill] sm:$0xff] }
 0x388   : > { %v8447_v30 = vadd.f32 %v8425_v55, %v8381_v9  ;;  %v7936_v46 = vadd.f32 %v10244_v2, %v7926_v12  ;;  %v6515_v1 = vpop.f32.mrb[85].mxu1  ;;  %v8412_v29 = vmul.f32 %v14144_v15, %v14144_v15  ;;  %v14146_v12 = vld [vmem:[#allocation66_spill] sm:$0xff]  ;;  %v8348_v22 = vmul.f32 2.0, %v14147_v10  ;;  %v14148_v9 = vld [vmem:[#allocation67_spill] sm:$0xff] }
 0x389   : > { %v8446_v3 = vadd.f32 %v8424_v48, %v8380_v8  ;;  %v7935_v19 = vadd.f32 %v7925_v0, %v6515_v1  ;;  %v8364_v54 = vmul.f32 %v8342_v18, %v14146_v12  ;;  %v8366_v40 = vmul.f32 %v8344_v24, %v14148_v9  ;;  %v14152_v12 = vld [vmem:[#allocation124_spill] sm:$0xff] }
 0x38a   : > { %v13386_v45 = vmul.f32 %v8447_v30, %v13180_v5  ;;  %v8383_v55 = vsub.f32 %v7936_v46, %v13318_v42  ;;  %v8368_v8 = vmul.f32 %v8346_v57, %v14149_v20  ;;  %v8428_v42 = vmul.f32 9261.0, %v8406_v63  ;;  %v14150_v57 = vld [vmem:[#allocation116_spill] sm:$0xff] }
 0x38b   : > { %v13392_v53 = vmul.f32 %v8446_v3, %v13186_v51  ;;  %v8382_v48 = vsub.f32 %v7935_v19, %v13323_v14  ;;  %v10251_v0 = vpop.f32.mrb[86].mxu1  ;;  %v8430_v30 = vmul.f32 9261.0, %v8408_v39  ;;  %v8432_v51 = vmul.f32 9261.0, %v8410_v49  ;;  %v14151_v49 = vld [vmem:[#allocation123_spill] sm:$0xff] }
 0x38c   : > { %v8449_v2 = vadd.f32 %v13320_v7, %v8383_v55  ;;  %v13398_v5 = vadd.f32 %v10251_v0, %v7936_v46  ;;  %v6590_v15 = vpop.f32.mrb[87].mxu1  ;;  %v8434_v43 = vmul.f32 9261.0, %v8412_v29  ;;  %v8370_v46 = vmul.f32 %v8348_v22, %v14150_v57 }
 0x38d   : > { %v8448_v18 = vadd.f32 %v13325_v31, %v8382_v48  ;;  %v13401_v1 = vadd.f32 %v7935_v19, %v6590_v15  ;;  %v8350_v22 = vmul.f32 2.0, %v14152_v12  ;;  %v14153_v48 = vld [vmem:[#allocation125_spill] sm:$0xff] }
 0x38e   : > { %v13404_v14 = vmul.f32 %v8449_v2, %v13197_v6  ;;  %v7956_v24 = vsub.f32 %v13398_v5, %v13212_v33  ;;  %v7966_v7 = vsub.f32 %v13398_v5, %v13240_v56  ;;  %v7976_v31 = vsub.f32 %v13398_v5, %v13256_v25 }
 0x38f   : > { %v13412_v63 = vmul.f32 %v8448_v18, %v13201_v61  ;;  %v7986_v39 = vsub.f32 %v13398_v5, %v13264_v35  ;;  %v13418_v3 = vpop.f32.mrb[88].mxu1  ;;  %v8414_v6 = vmul.f32 %v14147_v10, %v14147_v10  ;;  %v7996_v33 = vsub.f32 %v13398_v5, %v13270_v13 }
 0x390   : > { %v8385_v56 = vsub.f32 %v13398_v5, %v13344_v41  ;;  %v8387_v61 = vsub.f32 %v7956_v24, %v13352_v21  ;;  %v13427_v19 = vpop.f32.mrb[89].mxu1  ;;  %v8349_v25 = vmul.f32 2.0, %v14151_v49  ;;  %v8389_v29 = vsub.f32 %v7966_v7, %v8367_v62  ;;  %v14154_v7 = vld [vmem:[#allocation117_spill] sm:$0xff] }
 0x391   : > { %v8391_v55 = vsub.f32 %v7976_v31, %v8369_v11  ;;  %v7955_v35 = vsub.f32 %v13401_v1, %v13218_v37  ;;  %v7965_v41 = vsub.f32 %v13401_v1, %v13249_v52  ;;  %v8351_v21 = vmul.f32 2.0, %v14153_v48 }
 0x392   : > { %v8451_v10 = vadd.f32 %v13354_v38, %v8385_v56  ;;  %v8453_v13 = vadd.f32 %v13360_v23, %v8387_v61  ;;  %v8455_v0 = vadd.f32 %v8433_v26, %v8389_v29  ;;  %v7975_v62 = vsub.f32 %v13401_v1, %v13261_v27  ;;  %v14158_v29 = vld [vmem:[#allocation119_spill] sm:$0xff] }
 0x393   : > { %v8457_v9 = vadd.f32 %v8435_v16, %v8391_v55  ;;  %v10265_v11 = vpop.f32.mrb[90].mxu1  ;;  %v8415_v37 = vmul.f32 %v14151_v49, %v14151_v49  ;;  %v7985_v52 = vsub.f32 %v13401_v1, %v13267_v50  ;;  %v7995_v23 = vsub.f32 %v13401_v1, %v13273_v60 }
 0x394   : > { %v13443_v20 = vmul.f32 %v8451_v10, %v13221_v34  ;;  %v13446_v38 = vmul.f32 %v8453_v13, %v13227_v36  ;;  %v6740_v16 = vpop.f32.mrb[91].mxu1  ;;  %v13453_v26 = vmul.f32 %v8455_v0, %v13230_v59  ;;  %v8384_v27 = vsub.f32 %v13401_v1, %v13377_v32  ;;  %v14159_v0 = vld [vmem:[#allocation16_spill] sm:$0xff] }
 0x395   : > { %v8386_v2 = vsub.f32 %v7955_v35, %v8364_v54  ;;  %v8388_v5 = vsub.f32 %v7965_v41, %v8366_v40  ;;  %v8390_v34 = vsub.f32 %v7975_v62, %v8368_v8  ;;  %v13458_v15 = vadd.f32 %v10265_v11, %v13418_v3  ;;  %v14155_v8 = vld [vmem:[#allocation118_spill] sm:$0xff] }
 0x396   : > { %v8416_v36 = vmul.f32 %v14152_v12, %v14152_v12  ;;  %v8417_v50 = vmul.f32 %v14153_v48, %v14153_v48  ;;  %v8450_v60 = vadd.f32 %v8428_v42, %v8384_v27  ;;  %v8371_v57 = vmul.f32 %v8349_v25, %v14154_v7 }
 0x397   : > { %v8452_v18 = vadd.f32 %v8430_v30, %v8386_v2  ;;  %v8454_v24 = vadd.f32 %v8432_v51, %v8388_v5  ;;  %v10272_v59 = vpop.f32.mrb[92].mxu1  ;;  %v8456_v31 = vadd.f32 %v8434_v43, %v8390_v34  ;;  %v13466_v32 = vadd.f32 %v6740_v16, %v13427_v19  ;;  %v14156_v30 = vld [vmem:[#allocation17_spill] sm:$0xff]  ;;  %v14157_v43 = vld [vmem:[#allocation19_spill] sm:$0xff] }
 0x398   : > { %v13469_v54 = vadd.f32 %v10272_v59, %v13458_v15  ;;  %v6815_v40 = vpop.f32.mrb[93].mxu1  ;;  %v8372_v1 = vmul.f32 %v8350_v22, %v14155_v8  ;;  %v13473_v56 = vmul.f32 %v8450_v60, %v13235_v28  ;;  %v8436_v61 = vmul.f32 9261.0, %v8414_v6  ;;  %v14162_v5 = vld [vmem:[#allocation45_spill] sm:$0xff]  ;;  %v14164_v59 = vld [vmem:[#allocation70_spill] sm:$0xff] }
 0x399   : > { %v13476_v42 = vmul.f32 %v8452_v18, %v13237_v44  ;;  %v13479_v51 = vmul.f32 %v8454_v24, %v14156_v30  ;;  %v13482_v49 = vmul.f32 %v8456_v31, %v14157_v43  ;;  %v13485_v25 = vadd.f32 %v13466_v32, %v6815_v40  ;;  %v14167_v43 = vld [vmem:[#allocation36_spill] sm:$0xff] }
 0x39a   : > { %v8373_v55 = vmul.f32 %v8351_v21, %v14158_v29  ;;  %v8392_v35 = vsub.f32 %v7985_v52, %v8370_v46  ;;  %v8393_v12 = vsub.f32 %v7986_v39, %v8371_v57  ;;  %v8437_v22 = vmul.f32 9261.0, %v8415_v37  ;;  %v14160_v37 = vld [vmem:[#allocation38_spill] sm:$0xff]  ;;  %v14165_v57 = vld [vmem:[#allocation23_spill] sm:$0xff] }
 0x39b   : > { %v8438_v28 = vmul.f32 9261.0, %v8416_v36  ;;  %v8439_v10 = vmul.f32 9261.0, %v8417_v50  ;;  %v10279_v13 = vpop.f32.mrb[94].mxu1  ;;  %v8394_v44 = vsub.f32 %v7995_v23, %v8372_v1  ;;  %v13489_v62 = vmul.f32 %v8457_v9, %v14159_v0  ;;  %v14161_v23 = vld [vmem:[#allocation22_spill] sm:$0xff] }
 0x39c   : > { %v8395_v41 = vsub.f32 %v7996_v33, %v8373_v55  ;;  %v8458_v48 = vadd.f32 %v8436_v61, %v8392_v35  ;;  %v13492_v6 = vadd.f32 %v10279_v13, %v13469_v54  ;;  %v6890_v11 = vpop.f32.mrb[95].mxu1  ;;  %v8459_v16 = vadd.f32 %v8437_v22, %v8393_v12  ;;  %v14163_v36 = vld [vmem:[#allocation52_spill] sm:$0xff]  ;;  %v14166_v1 = vld [vmem:[#allocation33_spill] sm:$0xff]  ;;  %v14169_v35 = vld [vmem:[#allocation51_spill] sm:$0xff] }
 0x39d   : > { %v13495_v27 = vadd.f32 %v13485_v25, %v6890_v11  ;;  %v8460_v46 = vadd.f32 %v8438_v28, %v8394_v44  ;;  %v8507_v18 = vadd.f32 1e-05, %v13329_v58  ;;  %v8506_v24 = vadd.f32 1e-05, %v13335_v47  ;;  %v14168_v47 = vld [vmem:[#allocation44_spill] sm:$0xff]  ;;  %v14170_v12 = vld [vmem:[#allocation58_spill] sm:$0xff] }
 0x39e   : > { %v8461_v39 = vadd.f32 %v8439_v10, %v8395_v41  ;;  %v13498_v52 = vmul.f32 %v8458_v48, %v14160_v37  ;;  %v13501_v33 = vmul.f32 %v8459_v16, %v14161_v23  ;;  %v8509_v7 = vadd.f32 1e-05, %v14164_v59  ;;  %v14171_v28 = vld [vmem:[#allocation74_spill] sm:$0xff]  ;;  %v14173_v41 = vld [vmem:[#allocation93_spill] sm:$0xff]  ;;  %v14175_v16 = vld [vmem:[#allocation100_spill] sm:$0xff] }
 0x39f   : > { %v10286_v21 = vpop.f32.mrb[96].mxu1  ;;  %v13507_v34 = vmul.f32 %v8460_v46, %v14162_v5  ;;  %v8508_v31 = vadd.f32 1e-05, %v14165_v57  ;;  %10817 = vrcp.f32 %v8507_v18  ;;  %v8511_v40 = vadd.f32 1e-05, %v13365_v17  ;;  %v14172_v10 = vld [vmem:[#allocation90_spill] sm:$0xff] }
 0x3a0   : > { %v13504_v9 = vadd.f32 %v10286_v21, %v13492_v6  ;;  %v6965_v2 = vpop.f32.mrb[97].mxu1  ;;  %v13510_v50 = vmul.f32 %v8461_v39, %v14163_v36  ;;  %10819 = vrcp.f32 %v8506_v24  ;;  %v8510_v8 = vadd.f32 1e-05, %v13370_v4  ;;  %v14174_v48 = vld [vmem:[#allocation97_spill] sm:$0xff]  ;;  %v14177_v37 = vld [vmem:[#allocation115_spill] sm:$0xff]  ;;  %v14178_v23 = vld [vmem:[#allocation136_spill] sm:$0xff] }
 0x3a1   : > { %v13513_v60 = vadd.f32 %v13495_v27, %v6965_v2  ;;  %v13522_v30 = vmul.f32 9261.0, %v14166_v1  ;;  %10821 = vrcp.f32 %v8509_v7  ;;  %v8513_v61 = vadd.f32 1e-05, %v13386_v45  ;;  %v14176_v46 = vld [vmem:[#allocation109_spill] sm:$0xff]  ;;  %v14180_v18 = vld [vmem:[#allocation138_spill] sm:$0xff] }
 0x3a2   : > { %v13526_v58 = vmul.f32 9261.0, %v14167_v43  ;;  %v13529_v29 = vmul.f32 9261.0, %v14168_v47  ;;  %10823 = vrcp.f32 %v8508_v31  ;;  %v8512_v55 = vadd.f32 1e-05, %v13392_v53 }
 0x3a3   : > { %v13533_v17 = vmul.f32 9261.0, %v14169_v35  ;;  %v13536_v4 = vmul.f32 9261.0, %v14170_v12  ;;  %10825 = vrcp.f32 %v8511_v40  ;;  %v8515_v22 = vadd.f32 1e-05, %v13404_v14 }
 0x3a4   : > { %v13540_v45 = vmul.f32 9261.0, %v14171_v28  ;;  %v13543_v13 = vmul.f32 9261.0, %v14172_v10  ;;  %10827 = vrcp.f32 %v8510_v8  ;;  %v8514_v44 = vadd.f32 1e-05, %v13412_v63 }
 0x3a5   : > { %v13547_v53 = vmul.f32 9261.0, %v14173_v41  ;;  %v13550_v0 = vmul.f32 9261.0, %v14174_v48  ;;  %10829 = vrcp.f32 %v8513_v61  ;;  %v8517_v11 = vadd.f32 1e-05, %v13443_v20 }
 0x3a6   : > { %v13554_v14 = vmul.f32 9261.0, %v14175_v16  ;;  %v13557_v39 = vmul.f32 9261.0, %v14176_v46  ;;  %10831 = vrcp.f32 %v8512_v55  ;;  %v8519_v21 = vadd.f32 1e-05, %v13446_v38 }
 0x3a7   : > { %v13561_v63 = vmul.f32 9261.0, %v14177_v37  ;;  %v13564_v2 = vmul.f32 9261.0, %v14178_v23  ;;  %10833 = vrcp.f32 %v8515_v22  ;;  %v8521_v5 = vadd.f32 1e-05, %v13453_v26 }
 0x3a8   : > { %v14179_v36 = vld [vmem:[#allocation137_spill] sm:$0xff]  ;;  %v13571_v24 = vmul.f32 9261.0, %v14180_v18  ;;  %10835 = vrcp.f32 %v8514_v44  ;;  %v8516_v59 = vadd.f32 1e-05, %v13473_v56  ;;  %v14181_v38 = vld [vmem:[#allocation139_spill] sm:$0xff] }
 0x3a9   : > { %v13568_v20 = vmul.f32 9261.0, %v14179_v36  ;;  %v13575_v57 = vmul.f32 9261.0, %v14181_v38  ;;  %v10818_v31 = vpop.eup %10817  ;;  %10837 = vrcp.f32 %v8517_v11  ;;  %v8518_v40 = vadd.f32 1e-05, %v13476_v42 }
 0x3aa   : > { %v14182_v1 = vld [vmem:[#allocation140_spill] sm:$0xff]  ;;  %v10820_v43 = vpop.eup %10819  ;;  %10839 = vrcp.f32 %v8519_v21  ;;  %v8520_v47 = vadd.f32 1e-05, %v13479_v51  ;;  %v14183_v55 = vld [vmem:[#allocation141_spill] sm:$0xff]  ;;  %v14184_v22 = vld [vmem:[#allocation31_spill] sm:$0xff] }
 0x3ab   : > { %v13580_v61 = vmul.f32 9261.0, %v14182_v1  ;;  %v13585_v35 = vmul.f32 9261.0, %v14183_v55  ;;  %v13587_v12 = vpop.eup %10821  ;;  %10841 = vrcp.f32 %v8521_v5  ;;  %v14185_v28 = vld [vmem:[#allocation142_spill] sm:$0xff]  ;;  %v14186_v48 = vld [vmem:[#allocation35_spill] sm:$0xff] }
 0x3ac   : > { %v13591_v10 = vmul.f32 9261.0, %v14185_v28  ;;  %v8522_v44 = vadd.f32 1e-05, %v13482_v49  ;;  %v13594_v41 = vpop.eup %10823  ;;  %10843 = vrcp.f32 %v8516_v59  ;;  %v14187_v16 = vld [vmem:[#allocation143_spill] sm:$0xff]  ;;  %v14188_v23 = vld [vmem:[#allocation21_spill] sm:$0xff] }
 0x3ad   : > { %v13598_v46 = vmul.f32 9261.0, %v14187_v16  ;;  %v8523_v21 = vadd.f32 1e-05, %v13489_v62  ;;  %v13601_v37 = vpop.eup %10825  ;;  %10845 = vrcp.f32 %v8518_v40  ;;  %v14191_v59 = vld [vmem:[#allocation29_spill] sm:$0xff] }
 0x3ae   : > { %v13607_v38 = vpop.eup %10827  ;;  %10847 = vrcp.f32 %v8520_v47  ;;  %v14192_v55 = vld [vmem:[#allocation145_spill] sm:$0xff]  ;;  %v14195_v47 = vld [vmem:[#allocation48_spill] sm:$0xff] }
 0x3af   : > { %v13613_v62 = vpop.eup %10829  ;;  %v14194_v28 = vld [vmem:[#allocation41_spill] sm:$0xff]  ;;  %10849 = vrcp.f32 %v8522_v44 }
 0x3b0   : > { %10851 = vrcp.f32 %v8523_v21 }
 0x3cb   : > { %v10328_v7 = vpop.f32.mrb[98].mxu1 }
 0x3cc   : > { %v10696_v8 = vadd.f32 %v10328_v7, %v13504_v9  ;;  %v7415_v26 = vpop.f32.mrb[99].mxu1  ;;  %v14189_v7 = vld [vmem:[#allocation144_spill] sm:$0xff] }
 0x3cd   : > { %v10697_v56 = vadd.f32 %v13513_v60, %v7415_v26  ;;  %v13605_v49 = vmul.f32 9261.0, %v14189_v7  ;;  %v14196_v7 = vld [vmem:[#allocation42_spill] sm:$0xff] }
 0x3ce   : > { %v8067_v42 = vsub.f32 %v10696_v8, %v14184_v22  ;;  %v13611_v22 = vmul.f32 9261.0, %v14192_v55 }
 0x3cf   : > { %v8066_v51 = vsub.f32 %v10697_v56, %v14186_v48  ;;  %v10335_v11 = vpop.f32.mrb[100].mxu1  ;;  %14190 = vst [vmem:[#allocation24_spill] sm:$0xff] %v13605_v49  ;;  %v13618_v48 = vpop.eup %10831 }
 0x3d0   : > { %v8111_v5 = vsub.f32 %v8067_v42, %v14188_v23  ;;  %v7908_v36 = vadd.f32 %v10696_v8, %v10335_v11  ;;  %v7490_v18 = vpop.f32.mrb[101].mxu1  ;;  %14193 = vst [vmem:[#allocation25_spill] sm:$0xff] %v13611_v22  ;;  %v8524_v8 = vadd.f32 1e-05, %v13498_v52  ;;  %v13623_v23 = vpop.eup %10833  ;;  %v8526_v52 = vadd.f32 1e-05, %v13507_v34 }
 0x3d1   : > { %v8110_v26 = vsub.f32 %v8066_v51, %v14191_v59  ;;  %v7907_v1 = vadd.f32 %v10697_v56, %v7490_v18  ;;  %v8525_v56 = vadd.f32 1e-05, %v13501_v33  ;;  %v13627_v44 = vpop.eup %10835 }
 0x3d2   : > { %v8177_v40 = vadd.f32 %v13522_v30, %v8111_v5  ;;  %v8069_v42 = vsub.f32 %v7908_v36, %v14194_v28  ;;  %v14197_v28 = vld [vmem:[#allocation49_spill] sm:$0xff]  ;;  %v13631_v22 = vpop.eup %10837  ;;  %10853 = vrcp.f32 %v8524_v8 }
 0x3d3   : > { %v8176_v11 = vadd.f32 %v13526_v58, %v8110_v26  ;;  %v8068_v16 = vsub.f32 %v7907_v1, %v14195_v47  ;;  %v10342_v51 = vpop.f32.mrb[102].mxu1  ;;  %v8527_v47 = vadd.f32 1e-05, %v13510_v50  ;;  %10855 = vrcp.f32 %v8525_v56 }
 0x3d4   : > { %v8463_v18 = vmul.f32 %v8177_v40, %v8177_v40  ;;  %v8113_v30 = vsub.f32 %v8069_v42, %v14196_v7  ;;  %v7918_v5 = vadd.f32 %v10342_v51, %v7908_v36  ;;  %v7565_v59 = vpop.f32.mrb[103].mxu1  ;;  %v14198_v40 = vld [vmem:[#allocation55_spill] sm:$0xff]  ;;  %v13635_v36 = vpop.eup %10839  ;;  %v14199_v51 = vld [vmem:[#allocation60_spill] sm:$0xff]  ;;  %10857 = vrcp.f32 %v8526_v52 }
 0x3d5   : > { %v8462_v55 = vmul.f32 %v8176_v11, %v8176_v11  ;;  %v8112_v58 = vsub.f32 %v8068_v16, %v14197_v28  ;;  %v7917_v26 = vadd.f32 %v7907_v1, %v7565_v59  ;;  %v13639_v1 = vpop.eup %10841  ;;  %10859 = vrcp.f32 %v8527_v47 }
 0x3d6   : > { %v8531_v33 = vmul.f32 %v10818_v31, %v8463_v18  ;;  %v8179_v21 = vadd.f32 %v13529_v29, %v8113_v30  ;;  %v8071_v49 = vsub.f32 %v7918_v5, %v14198_v40  ;;  %v14200_v31 = vld [vmem:[#allocation56_spill] sm:$0xff]  ;;  %v13643_v59 = vpop.eup %10843 }
 0x3d7   : > { %v8529_v42 = vmul.f32 %v10820_v43, %v8462_v55  ;;  %v8178_v34 = vadd.f32 %v13533_v17, %v8112_v58  ;;  %v8070_v11 = vsub.f32 %v7917_v26, %v14199_v51  ;;  %v10349_v7 = vpop.f32.mrb[104].mxu1  ;;  %v14201_v55 = vld [vmem:[#allocation73_spill] sm:$0xff]  ;;  %v13647_v58 = vpop.eup %10845 }
 0x3d8   : > { %v8573_v50 = vsel %vm445_vm0, %v8531_v33, 0.0  ;;  %v8465_v16 = vmul.f32 %v8179_v21, %v8179_v21  ;;  %v8115_v18 = vsub.f32 %v8071_v49, %v14200_v31  ;;  %v7928_v29 = vadd.f32 %v10349_v7, %v7918_v5  ;;  %v7640_v30 = vpop.f32.mrb[105].mxu1  ;;  %v14202_v21 = vld [vmem:[#allocation75_spill] sm:$0xff]  ;;  %v13652_v49 = vpop.eup %10847 }
 0x3d9   : > { %v8572_v8 = vsel %vm445_vm0, %v8529_v42, 0.0  ;;  %v8464_v43 = vmul.f32 %v8178_v34, %v8178_v34  ;;  %v8114_v17 = vsub.f32 %v8070_v11, %v14201_v55  ;;  %v7927_v28 = vadd.f32 %v7917_v26, %v7640_v30  ;;  %v14203_v42 = vld [vmem:[#allocation91_spill] sm:$0xff]  ;;  %v13657_v26 = vpop.eup %10849 }
 0x3da   : > { %v8574_v56 = vadd.f32 %v8573_v50, %v8572_v8  ;;  %v8535_v40 = vmul.f32 %v13587_v12, %v8465_v16  ;;  %v8181_v33 = vadd.f32 %v13536_v4, %v8115_v18  ;;  %v8073_v51 = vsub.f32 %v7928_v29, %v14202_v21  ;;  %v14204_v50 = vld [vmem:[#allocation87_spill] sm:$0xff]  ;;  %v13660_v4 = vpop.eup %10851  ;;  %v14206_v21 = vld [vmem:[#allocation94_spill] sm:$0xff] }
 0x3db   : > { %v8533_v5 = vmul.f32 %v13594_v41, %v8464_v43  ;;  %v8180_v7 = vadd.f32 %v13540_v45, %v8114_v17  ;;  %v8072_v34 = vsub.f32 %v7927_v28, %v14203_v42  ;;  %v14205_v41 = vld [vmem:[#allocation92_spill] sm:$0xff]  ;;  %v14207_v42 = vld [vmem:[#allocation98_spill] sm:$0xff] }
 0x3dc   : > { %v8467_v11 = vmul.f32 %v8181_v33, %v8181_v33  ;;  %v8117_v30 = vsub.f32 %v8073_v51, %v14204_v50  ;;  %v8577_v51 = vsel %vm445_vm0, %v8535_v40, 0.0 }
 0x3dd   : > { %v8575_v18 = vsel %vm445_vm0, %v8533_v5, 0.0  ;;  %v8466_v8 = vmul.f32 %v8180_v7, %v8180_v7  ;;  %v8116_v43 = vsub.f32 %v8072_v34, %v14205_v41  ;;  %v13671_v7 = vpop.eup %10853 }
 0x3de   : > { %v8576_v55 = vadd.f32 %v8575_v18, %v8574_v56  ;;  %v8539_v17 = vmul.f32 %v13601_v37, %v8467_v11  ;;  %v8183_v52 = vadd.f32 %v13543_v13, %v8117_v30  ;;  %v14208_v37 = vld [vmem:[#allocation95_spill] sm:$0xff]  ;;  %v13675_v50 = vpop.eup %10855 }
 0x3df   : > { %v8182_v47 = vadd.f32 %v13547_v53, %v8116_v43 }
 0x3e0   : > { %v8578_v56 = vadd.f32 %v8577_v51, %v8576_v55  ;;  %v8469_v34 = vmul.f32 %v8183_v52, %v8183_v52 }
 0x3e1   : > { %v10356_v31 = vpop.f32.mrb[106].mxu1  ;;  %v8468_v30 = vmul.f32 %v8182_v47, %v8182_v47  ;;  %v13687_v47 = vpop.eup %10857 }
 0x3e2   : > { %v7938_v12 = vadd.f32 %v10356_v31, %v7928_v29  ;;  %v7715_v16 = vpop.f32.mrb[107].mxu1  ;;  %v8537_v29 = vmul.f32 %v13607_v38, %v8466_v8  ;;  %v14209_v38 = vld [vmem:[#allocation99_spill] sm:$0xff]  ;;  %v8543_v8 = vmul.f32 %v13613_v62, %v8469_v34 }
 0x3e3   : > { %v7937_v45 = vadd.f32 %v7927_v28, %v7715_v16  ;;  %v8581_v28 = vsel %vm445_vm0, %v8539_v17, 0.0  ;;  %v8541_v55 = vmul.f32 %v13618_v48, %v8468_v30  ;;  %v14211_v48 = vld [vmem:[#allocation104_spill] sm:$0xff]  ;;  %v14213_v34 = vld [vmem:[#allocation107_spill] sm:$0xff] }
 0x3e4   : > { %v8075_v33 = vsub.f32 %v7938_v12, %v14206_v21  ;;  %v8579_v40 = vsel %vm445_vm0, %v8537_v29, 0.0 }
 0x3e5   : > { %v8074_v31 = vsub.f32 %v7937_v45, %v14207_v42  ;;  %v8580_v18 = vadd.f32 %v8579_v40, %v8578_v56  ;;  %v8583_v62 = vsel %vm445_vm0, %v8541_v55, 0.0 }
 0x3e6   : > { %v8119_v11 = vsub.f32 %v8075_v33, %v14208_v37  ;;  %v8585_v33 = vsel %vm445_vm0, %v8543_v8, 0.0 }
 0x3e7   : > { %v8118_v16 = vsub.f32 %v8074_v31, %v14209_v38  ;;  %v8582_v51 = vadd.f32 %v8581_v28, %v8580_v18  ;;  %v14215_v18 = vld [vmem:[#allocation110_spill] sm:$0xff] }
 0x3e8   : > { %v10363_v5 = vpop.f32.mrb[108].mxu1  ;;  %v8185_v41 = vadd.f32 %v13550_v0, %v8119_v11  ;;  %v14214_v11 = vld [vmem:[#allocation108_spill] sm:$0xff] }
 0x3e9   : > { %v7790_v13 = vpop.f32.mrb[109].mxu1  ;;  %v7948_v53 = vadd.f32 %v10363_v5, %v7938_v12  ;;  %v8184_v17 = vadd.f32 %v13554_v14, %v8118_v16  ;;  %v13692_v14 = vpop.eup %10859  ;;  %v14212_v5 = vld [vmem:[#allocation105_spill] sm:$0xff] }
 0x3ea   : > { %v7947_v43 = vadd.f32 %v7937_v45, %v7790_v13  ;;  %v8471_v29 = vmul.f32 %v8185_v41, %v8185_v41  ;;  %v14210_v45 = vld [vmem:[#allocation101_spill] sm:$0xff] }
 0x3eb   : > { %v7958_v52 = vsub.f32 %v7948_v53, %v13418_v3  ;;  %v7968_v21 = vsub.f32 %v7948_v53, %v13458_v15  ;;  %v7978_v12 = vsub.f32 %v7948_v53, %v13469_v54  ;;  %v8470_v0 = vmul.f32 %v8184_v17, %v8184_v17 }
 0x3ec   : > { %v8077_v42 = vsub.f32 %v7948_v53, %v14210_v45  ;;  %v8584_v3 = vadd.f32 %v8583_v62, %v8582_v51  ;;  %v8547_v15 = vmul.f32 %v13623_v23, %v8471_v29  ;;  %v7957_v28 = vsub.f32 %v7947_v43, %v13427_v19  ;;  %v14216_v19 = vld [vmem:[#allocation111_spill] sm:$0xff]  ;;  %v14219_v62 = vld [vmem:[#allocation114_spill] sm:$0xff] }
 0x3ed   : > { %v8079_v31 = vsub.f32 %v7958_v52, %v14211_v48  ;;  %v8081_v56 = vsub.f32 %v7968_v21, %v14212_v5  ;;  %v8545_v54 = vmul.f32 %v13627_v44, %v8470_v0  ;;  %v7967_v40 = vsub.f32 %v7947_v43, %v13466_v32  ;;  %v14217_v44 = vld [vmem:[#allocation112_spill] sm:$0xff]  ;;  %v14218_v21 = vld [vmem:[#allocation113_spill] sm:$0xff] }
 0x3ee   : > { %v8121_v37 = vsub.f32 %v8077_v42, %v14213_v34  ;;  %v8589_v30 = vsel %vm445_vm0, %v8547_v15, 0.0  ;;  %v8586_v38 = vadd.f32 %v8585_v33, %v8584_v3  ;;  %v7977_v16 = vsub.f32 %v7947_v43, %v13485_v25  ;;  %v14220_v48 = vld [vmem:[#allocation121_spill] sm:$0xff]  ;;  %v14221_v3 = vld [vmem:[#allocation122_spill] sm:$0xff]  ;;  %v14224_v34 = vld [vmem:[#allocation131_spill] sm:$0xff] }
 0x3ef   : > { %v8123_v13 = vsub.f32 %v8079_v31, %v14214_v11  ;;  %v8076_v8 = vsub.f32 %v7947_v43, %v14215_v18  ;;  %v8587_v23 = vsel %vm445_vm0, %v8545_v54, 0.0  ;;  %v8078_v55 = vsub.f32 %v7957_v28, %v14216_v19  ;;  %v14222_v28 = vld [vmem:[#allocation127_spill] sm:$0xff]  ;;  %v14223_v54 = vld [vmem:[#allocation130_spill] sm:$0xff] }
 0x3f0   : > { %v8187_v41 = vadd.f32 %v13557_v39, %v8121_v37  ;;  %v8080_v17 = vsub.f32 %v7967_v40, %v14217_v44  ;;  %v8588_v52 = vadd.f32 %v8587_v23, %v8586_v38  ;;  %v7987_v32 = vsub.f32 %v7947_v43, %v13495_v27  ;;  %v14225_v40 = vld [vmem:[#allocation132_spill] sm:$0xff]  ;;  %v14228_v38 = vld [vmem:[#allocation129_spill] sm:$0xff] }
 0x3f1   : > { %v8120_v51 = vsub.f32 %v8076_v8, %v14218_v21  ;;  %v7988_v29 = vsub.f32 %v7948_v53, %v13492_v6  ;;  %v8122_v25 = vsub.f32 %v8078_v55, %v14219_v62  ;;  %v7997_v0 = vsub.f32 %v7947_v43, %v13513_v60  ;;  %v14226_v43 = vld [vmem:[#allocation126_spill] sm:$0xff] }
 0x3f2   : > { %v8473_v33 = vmul.f32 %v8187_v41, %v8187_v41  ;;  %v7998_v45 = vsub.f32 %v7948_v53, %v13504_v9  ;;  %v8590_v42 = vadd.f32 %v8589_v30, %v8588_v52  ;;  %v8082_v31 = vsub.f32 %v7977_v16, %v14220_v48  ;;  %v14227_v53 = vld [vmem:[#allocation128_spill] sm:$0xff]  ;;  %v14231_v41 = vld [vmem:[#allocation133_spill] sm:$0xff]  ;;  %v14232_v55 = vld [vmem:[#allocation134_spill] sm:$0xff] }
 0x3f3   : > { %v8186_v39 = vadd.f32 %v13561_v63, %v8120_v51  ;;  %v8083_v15 = vsub.f32 %v7978_v12, %v14221_v3  ;;  %v8084_v27 = vsub.f32 %v7987_v32, %v14222_v28  ;;  %v8085_v6 = vsub.f32 %v7988_v29, %v14223_v54  ;;  %v14229_v12 = vld [vmem:[#allocation77_spill] sm:$0xff]  ;;  %v14233_v52 = vld [vmem:[#allocation135_spill] sm:$0xff] }
 0x3f4   : > { %v8551_v5 = vmul.f32 %v13631_v22, %v8473_v33  ;;  %v8086_v37 = vsub.f32 %v7997_v0, %v14224_v34  ;;  %v8087_v60 = vsub.f32 %v7998_v45, %v14225_v40  ;;  %v8124_v9 = vsub.f32 %v8080_v17, %v14226_v43  ;;  %v14230_v22 = vld [vmem:[#allocation15_spill] sm:$0xff] }
 0x3f5   : > { %v8472_v11 = vmul.f32 %v8186_v39, %v8186_v39  ;;  %v8125_v30 = vsub.f32 %v8081_v56, %v14227_v53  ;;  %v8126_v16 = vsub.f32 %v8082_v31, %v14228_v38  ;;  %v8127_v18 = vsub.f32 %v8083_v15, %v14229_v12  ;;  %v14234_v39 = vld [vmem:[#allocation24_spill] sm:$0xff] }
 0x3f6   : > { %v8593_v63 = vsel %vm445_vm0, %v8551_v5, 0.0  ;;  %v8128_v8 = vsub.f32 %v8084_v27, %v14230_v22  ;;  %v8129_v19 = vsub.f32 %v8085_v6, %v14231_v41  ;;  %v8130_v44 = vsub.f32 %v8086_v37, %v14232_v55 }
 0x3f7   : > { %v8549_v23 = vmul.f32 %v13643_v59, %v8472_v11  ;;  %v8131_v21 = vsub.f32 %v8087_v60, %v14233_v52  ;;  %v8188_v17 = vadd.f32 %v13564_v2, %v8122_v25  ;;  %v8189_v56 = vadd.f32 %v13568_v20, %v8123_v13  ;;  %v14235_v2 = vld [vmem:[#allocation25_spill] sm:$0xff] }
 0x3f8   : > { %v8190_v51 = vadd.f32 %v13571_v24, %v8124_v9  ;;  %v8191_v32 = vadd.f32 %v13575_v57, %v8125_v30  ;;  %v8192_v33 = vadd.f32 %v13580_v61, %v8126_v16  ;;  %v8193_v59 = vadd.f32 %v13585_v35, %v8127_v18 }
 0x3f9   : > { %v8591_v29 = vsel %vm445_vm0, %v8549_v23, 0.0  ;;  %v8194_v62 = vadd.f32 %v13591_v10, %v8128_v8  ;;  %v8195_v45 = vadd.f32 %v13598_v46, %v8129_v19  ;;  %v8196_v48 = vadd.f32 %v14234_v39, %v8130_v44 }
 0x3fa   : > { %v8592_v0 = vadd.f32 %v8591_v29, %v8590_v42  ;;  %v8197_v25 = vadd.f32 %v14235_v2, %v8131_v21  ;;  %v8474_v20 = vmul.f32 %v8188_v17, %v8188_v17  ;;  %v8475_v13 = vmul.f32 %v8189_v56, %v8189_v56 }
 0x3fb   : > { %v8476_v24 = vmul.f32 %v8190_v51, %v8190_v51  ;;  %v8477_v31 = vmul.f32 %v8191_v32, %v8191_v32  ;;  %v8478_v3 = vmul.f32 %v8192_v33, %v8192_v33  ;;  %v8479_v15 = vmul.f32 %v8193_v59, %v8193_v59 }
 0x3fc   : > { %v8594_v57 = vadd.f32 %v8593_v63, %v8592_v0  ;;  %v8480_v5 = vmul.f32 %v8194_v62, %v8194_v62  ;;  %v8481_v61 = vmul.f32 %v8195_v45, %v8195_v45  ;;  %v8482_v28 = vmul.f32 %v8196_v48, %v8196_v48 }
 0x3fd   : > { %v8483_v35 = vmul.f32 %v8197_v25, %v8197_v25  ;;  %v8553_v10 = vmul.f32 %v13647_v58, %v8474_v20  ;;  %v8555_v46 = vmul.f32 %v13635_v36, %v8475_v13  ;;  %v8557_v27 = vmul.f32 %v13652_v49, %v8476_v24 }
 0x3fe   : > { %v8595_v42 = vadd.f32 %v8594_v57, %v8591_v29  ;;  %v8559_v54 = vmul.f32 %v13639_v1, %v8477_v31  ;;  %v8561_v6 = vmul.f32 %v13657_v26, %v8478_v3  ;;  %v8563_v34 = vmul.f32 %v13660_v4, %v8479_v15 }
 0x3ff   : > { %v8565_v37 = vmul.f32 %v13671_v7, %v8480_v5  ;;  %v8567_v11 = vmul.f32 %v13675_v50, %v8481_v61  ;;  %v8569_v40 = vmul.f32 %v13687_v47, %v8482_v28  ;;  %v8571_v60 = vmul.f32 %v13692_v14, %v8483_v35 }
 0x400   : > { %v8596_v58 = vadd.f32 %v8595_v42, %v8593_v63  ;;  %v8605_v26 = vsel %vm445_vm0, %v8553_v10, 0.0  ;;  %v8607_v7 = vsel %vm445_vm0, %v8555_v46, 0.0  ;;  %v8609_v50 = vsel %vm445_vm0, %v8557_v27, 0.0 }
 0x401   : > { %v8611_v14 = vsel %vm445_vm0, %v8559_v54, 0.0  ;;  %v8613_v18 = vsel %vm445_vm0, %v8561_v6, 0.0  ;;  %v8615_v8 = vsel %vm445_vm0, %v8563_v34, 0.0  ;;  %v8619_v19 = vsel %vm445_vm0, %v8567_v11, 0.0 }
 0x402   : > { %v8597_v43 = vadd.f32 %v8596_v58, %v8591_v29  ;;  %v8621_v44 = vsel %vm445_vm0, %v8569_v40, 0.0  ;;  %v8623_v21 = vsel %vm445_vm0, %v8571_v60, 0.0 }
 0x404   : > { %v8598_v9 = vadd.f32 %v8597_v43, %v8593_v63 }
 0x406   : > { %v8599_v36 = vadd.f32 %v8598_v9, %v8591_v29 }
 0x408   : > { %v8600_v53 = vadd.f32 %v8599_v36, %v8593_v63 }
 0x40a   : > { %v8601_v49 = vadd.f32 %v8600_v53, %v8591_v29 }
 0x40c   : > { %v8602_v30 = vadd.f32 %v8601_v49, %v8593_v63 }
 0x40e   : > { %v8603_v1 = vadd.f32 %v8602_v30, %v8591_v29 }
 0x410   : > { %v8604_v38 = vadd.f32 %v8603_v1, %v8593_v63  ;;  %v8617_v63 = vsel %vm445_vm0, %v8565_v37, 0.0 }
 0x412   : > { %v8606_v4 = vadd.f32 %v8605_v26, %v8604_v38 }
 0x414   : > { %v8608_v16 = vadd.f32 %v8607_v7, %v8606_v4 }
 0x416   : > { %v8610_v47 = vadd.f32 %v8609_v50, %v8608_v16 }
 0x418   : > { %v8612_v12 = vadd.f32 %v8611_v14, %v8610_v47 }
 0x41a   : > { %v8614_v22 = vadd.f32 %v8613_v18, %v8612_v12 }
 0x41c   : > { %v8616_v23 = vadd.f32 %v8615_v8, %v8614_v22 }
 0x41e   : > { %v8618_v41 = vadd.f32 %v8617_v63, %v8616_v23 }
 0x420   : > { %v8620_v55 = vadd.f32 %v8619_v19, %v8618_v41 }
 0x422   : > { %v8622_v52 = vadd.f32 %v8621_v44, %v8620_v55 }
 0x424   : > { %v8624_v17 = vadd.f32 %v8623_v21, %v8622_v52 }
 0x426   : > { %8625 = vadd.xlane.f32.xlu0 %v8624_v17 }
 0x4b3   : > { %v8626_v56 = vpop.xlane.xlu0 %8625 }
 0x4b4   : > { %v8627_v51 = vrot.slane %v8626_v56, 4 }
 0x4b6   : > { %v8628_v32 = vadd.f32 %v8627_v51, %v8626_v56 }
 0x4b8   : > { %v8629_v29 = vrot.slane %v8628_v32, 2 }
 0x4ba   : > { %v8630_v33 = vadd.f32 %v8629_v29, %v8628_v32 }
 0x4bc   : > { %v8631_v59 = vrot.slane %v8630_v33, 1 }
 0x4be   : > { %v8632_v62 = vadd.f32 %v8631_v59, %v8630_v33 }
 0x4c0   : > { %10748 = vpush %v8632_v62 }
 0x4f1   : > { %s10749_s23 = spop %10748 }
 0x4f2   : > { %v8634_v0 = vstv %s10749_s23 }
 0x4f3   : > { %8636 = vst.msk [vmem:[%s282_s10] sm:$0x1] %vm8635_vm1, %v8634_v0 }
 0x4f4 PF: > { %p18_p12 = scmp.ge.s32.totalorder %s11157_s5, 4   ;;  %s14236_s15 = smov %s11017_s16 }
 0x4f5   : > { %s14237_s16 = smov %s11021_s17  ;;  %s14238_s17 = smov %s11168_s8 }
 0x4f6   : > { %s14239_s18 = smov %s11157_s5  ;;  %20 = sbr.rel (!%p18_p12) target bundleno = 6 (0x6), region = 97 }
 0x4fd   :  { %8654 = vsyncpa [#allocation3], 1 }
 0x4fe   :  { %8656 = vsyncpa [#allocation3 + $0x1], 1 }
 0x4ff   :  { %8657 = vsyncpa [#allocation5], 1 }
 0x500   :  { %8659 = vsyncpa [#allocation5 + $0x1], 1 }
 0x501   :  { %8660 = vsyncpa [#allocation8], 1 }

</bundles_post_ra>
